<compile_context>
chip_gen: v5e
topology: v5e:2x2
jax: 0.10.0
libtpu: 0.0.40
codegen_flags: <defaults>
</compile_context>

<pallas_src>
import jax
import jax.numpy as jnp
from jax.experimental import pallas as pl
from jax.experimental.pallas import tpu as pltpu


# ----------------------------- fused forward kernel --------------------------
def _make_fused_kernel(num_layers):
    """Builds the fused kernel for a fixed (static) number of GRU layers."""

    def kernel(*refs):
        # refs: x, h0, [wih, whh, b, bhn] * L, fcw, fcb  |  fc_out, hT  |  y_scr * L
        x_ref, h0_ref = refs[0], refs[1]
        pos = 2
        layer_refs = []
        for _ in range(num_layers):
            layer_refs.append(refs[pos:pos + 4])
            pos += 4
        fcw_ref, fcb_ref = refs[pos], refs[pos + 1]
        fc_ref, hT_ref = refs[pos + 2], refs[pos + 3]
        scratches = refs[pos + 4:pos + 4 + num_layers]

        f32 = jnp.float32
        B, T, H = scratches[0].shape
        BT = B * T
        cdt = fcw_ref.dtype                      # bf16 compute dtype for MXU inputs

        layer_in = x_ref[...].astype(cdt)        # (B*T, Din), batch-major rows (b*T+t)
        for l in range(num_layers):
            wih_ref, whh_ref, b_ref, bhn_ref = layer_refs[l]
            y_scr = scratches[l]

            # Hoisted input projection for ALL timesteps: one matmul per gate,
            # biases folded (b_ih, plus b_hh for r/z).  Off the serial path.
            gi = []
            for g in range(3):
                p = jnp.dot(layer_in, wih_ref[g],
                            preferred_element_type=f32) + b_ref[g]
                gi.append(p.reshape(B, T, H))    # (B, T, H) f32
            gi_r, gi_z, gi_n = gi

            whh_r = whh_ref[0]                   # (H, H) bf16, per-gate (no slicing)
            whh_z = whh_ref[1]
            whh_n = whh_ref[2]
            bhn = bhn_ref[...]                   # (1, H) f32

            h = h0_ref[l].astype(f32)            # (B, H) recurrent carry (f32)
            for t in range(T):                   # fully unrolled recurrence
                hb = h.astype(cdt)
                a_r = gi_r[:, t] + jnp.dot(hb, whh_r, preferred_element_type=f32)
                a_z = gi_z[:, t] + jnp.dot(hb, whh_z, preferred_element_type=f32)
                g_n = jnp.dot(hb, whh_n, preferred_element_type=f32) + bhn
                r = jax.nn.sigmoid(a_r)
                z = jax.nn.sigmoid(a_z)
                n = jnp.tanh(gi_n[:, t] + r * g_n)
                h = (1.0 - z) * n + z * h        # f32 gate math (v5e has no bf16 VALU)
                y_scr[:, pl.ds(t, 1), :] = h[:, None, :]

            hT_ref[l] = h.astype(hT_ref.dtype)
            # Next layer's input; inter-layer dropout is identity in eval mode.
            layer_in = y_scr[...].reshape(BT, H).astype(cdt)

        # FC head fused into the epilogue: one (B*T, H) x (H, V) matmul on the
        # in-VMEM GRU output.  Row order b*T+t matches PyTorch reshape(-1, H).
        fc_ref[...] = (jnp.dot(layer_in, fcw_ref[...],
                               preferred_element_type=f32)
                       + fcb_ref[...]).astype(fc_ref.dtype)

    return kernel


def _full_spec(shape):
    nd = len(shape)
    return pl.BlockSpec(shape, lambda i, _nd=nd: (0,) * _nd)


@jax.jit
def char_gru_forward(x, hidden, prep):
    """x: (B, T, Vin) f32, hidden: (L, B, H) f32, prep: prepare_params() output.

    Returns (fc_out (B*T, Vout) f32, new_hidden (L, B, H) f32)."""
    B, T, Vin = x.shape
    L, _, H = hidden.shape
    Vout = prep["fcw"].shape[-1]
    x2 = x.reshape(B * T, Vin)                   # contiguous flatten -> free bitcast

    args = [x2, hidden]
    for lp in prep["layers"]:
        args += [lp["wih"], lp["whh"], lp["b"], lp["bhn"]]
    args += [prep["fcw"], prep["fcb"]]

    out_shape = (jax.ShapeDtypeStruct((B * T, Vout), jnp.float32),
                 jax.ShapeDtypeStruct((L, B, H), jnp.float32))

    grid_spec = pltpu.PrefetchScalarGridSpec(
        num_scalar_prefetch=0,
        grid=(1,),                               # whole forward = one program
        in_specs=[_full_spec(a.shape) for a in args],
        out_specs=[_full_spec((B * T, Vout)), _full_spec((L, B, H))],
        scratch_shapes=[pltpu.VMEM((B, T, H), jnp.float32) for _ in range(L)],
    )

    fc_out, new_hidden = pl.pallas_call(
        _make_fused_kernel(L),
        out_shape=out_shape,
        grid_spec=grid_spec,
        compiler_params=pltpu.CompilerParams(dimension_semantics=("arbitrary",)),
    )(*args)
    return fc_out, new_hidden


# ------------------------- one-time parameter preparation --------------------
def prepare_params(params, compute_dtype=jnp.bfloat16):
    """Pre-transpose, split per gate (r,z,n), fold biases, cast MXU inputs to bf16.

    Done once at load time so no per-call transposes/reshapes are traced."""
    layers = []
    for p in params["gru"]:
        w_ih, w_hh = p["w_ih"], p["w_hh"]            # (3H, Din), (3H, H)
        b_ih, b_hh = p["b_ih"], p["b_hh"]            # (3H,), (3H,)
        H = w_hh.shape[1]
        wih = jnp.stack([w_ih[g * H:(g + 1) * H, :].T for g in range(3)], 0)  # (3,Din,H)
        whh = jnp.stack([w_hh[g * H:(g + 1) * H, :].T for g in range(3)], 0)  # (3,H,H)
        b_r = b_ih[0:H] + b_hh[0:H]                  # r: both biases foldable
        b_z = b_ih[H:2 * H] + b_hh[H:2 * H]          # z: both biases foldable
        b_n = b_ih[2 * H:3 * H]                      # n: only b_in (b_hn gated by r)
        b = jnp.stack([b_r, b_z, b_n], 0).reshape(3, 1, H).astype(jnp.float32)
        bhn = b_hh[2 * H:3 * H].reshape(1, H).astype(jnp.float32)
        layers.append({"wih": wih.astype(compute_dtype),
                       "whh": whh.astype(compute_dtype),
                       "b": b, "bhn": bhn})
    fcw = jnp.transpose(params["fc_w"]).astype(compute_dtype)     # (H, V)
    fcb = params["fc_b"].reshape(1, -1).astype(jnp.float32)       # (1, V)
    return {"layers": layers, "fcw": fcw, "fcb": fcb}


# ------------------------------- param init ----------------------------------
def init_params(key, vocab, hidden_size, num_layers):
    """Deterministic init mirroring PyTorch's uniform(-1/sqrt(H), 1/sqrt(H))."""
    k = 1.0 / jnp.sqrt(jnp.float32(hidden_size))
    params = {"gru": []}
    for l in range(num_layers):
        din = vocab if l == 0 else hidden_size
        key, k1, k2, k3, k4 = jax.random.split(key, 5)
        params["gru"].append({
            "w_ih": jax.random.uniform(k1, (3 * hidden_size, din), jnp.float32, -k, k),
            "w_hh": jax.random.uniform(k2, (3 * hidden_size, hidden_size),
                                       jnp.float32, -k, k),
            "b_ih": jax.random.uniform(k3, (3 * hidden_size,), jnp.float32, -k, k),
            "b_hh": jax.random.uniform(k4, (3 * hidden_size,), jnp.float32, -k, k),
        })
    key, k5, k6 = jax.random.split(key, 3)
    params["fc_w"] = jax.random.uniform(k5, (vocab, hidden_size), jnp.float32, -k, k)
    params["fc_b"] = jax.random.uniform(k6, (vocab,), jnp.float32, -k, k)
    return params


# ------------------------- pure-JAX f32 reference (check) --------------------
def reference_forward(x, hidden, params):
    B, T, _ = x.shape
    H = hidden.shape[-1]
    layer_in = x
    new_h = []
    for l, p in enumerate(params["gru"]):
        w_ih, w_hh, b_ih, b_hh = p["w_ih"], p["w_hh"], p["b_ih"], p["b_hh"]
        h = hidden[l]
        outs = []
        for t in range(T):
            x_t = layer_in[:, t, :]
            gi = x_t @ w_ih.T + b_ih
            gh = h @ w_hh.T + b_hh
            i_r, i_z, i_n = gi[:, :H], gi[:, H:2 * H], gi[:, 2 * H:]
            h_r, h_z, h_n = gh[:, :H], gh[:, H:2 * H], gh[:, 2 * H:]
            r = jax.nn.sigmoid(i_r + h_r)
            z = jax.nn.sigmoid(i_z + h_z)
            n = jnp.tanh(i_n + r * h_n)
            h = (1.0 - z) * n + z * h
            outs.append(h)
        layer_in = jnp.stack(outs, axis=1)
        new_h.append(h)
    fc_out = layer_in.reshape(-1, H) @ params["fc_w"].T + params["fc_b"]
    return fc_out, jnp.stack(new_h, 0)


if __name__ == "__main__":
    tokens = [chr(ord("a") + i) for i in range(16)]   # 16-char vocabulary
    VOCAB = len(tokens)
    HIDDEN = 32
    LAYERS = 2
    BATCH = 2
    SEQ = 8

    root = jax.random.PRNGKey(0)
    pkey, xkey = jax.random.split(root)
    params = init_params(pkey, VOCAB, HIDDEN, LAYERS)
    prep = prepare_params(params)                      # one-time weight prep

    # one-hot char inputs, like the training pipeline feeding CharGruNet
    idx = jax.random.randint(xkey, (BATCH, SEQ), 0, VOCAB)
    x = jax.nn.one_hot(idx, VOCAB, dtype=jnp.float32)          # (B, T, V)
    hidden0 = jnp.zeros((LAYERS, BATCH, HIDDEN), jnp.float32)  # init_hidden()

    fc_out, hidden_out = char_gru_forward(x, hidden0, prep)
    jax.block_until_ready((fc_out, hidden_out))

    assert fc_out.shape == (BATCH * SEQ, VOCAB)
    assert hidden_out.shape == (LAYERS, BATCH, HIDDEN)

    # sanity check vs f32 reference (bf16 MXU inputs -> loose tolerance)
    ref_fc, ref_h = reference_forward(x, hidden0, params)
    assert jnp.allclose(fc_out, ref_fc, atol=5e-2, rtol=5e-2), \
        float(jnp.max(jnp.abs(fc_out - ref_fc)))
    assert jnp.allclose(hidden_out, ref_h, atol=5e-2, rtol=5e-2), \
        float(jnp.max(jnp.abs(hidden_out - ref_h)))

    print("KERNEL_OK")
</pallas_src>

<mosaic_0001>
module attributes {stable_mosaic.version = 11 : i64} {
  func.func @kernel(%arg0: i32, %arg1: memref<16x16xf32, #tpu.memory_space<vmem>>, %arg2: memref<2x2x32xf32, #tpu.memory_space<vmem>>, %arg3: memref<3x16x32xbf16, #tpu.memory_space<vmem>>, %arg4: memref<3x32x32xbf16, #tpu.memory_space<vmem>>, %arg5: memref<3x1x32xf32, #tpu.memory_space<vmem>>, %arg6: memref<1x32xf32, #tpu.memory_space<vmem>>, %arg7: memref<3x32x32xbf16, #tpu.memory_space<vmem>>, %arg8: memref<3x32x32xbf16, #tpu.memory_space<vmem>>, %arg9: memref<3x1x32xf32, #tpu.memory_space<vmem>>, %arg10: memref<1x32xf32, #tpu.memory_space<vmem>>, %arg11: memref<32x16xbf16, #tpu.memory_space<vmem>>, %arg12: memref<1x16xf32, #tpu.memory_space<vmem>>, %arg13: memref<16x16xf32, #tpu.memory_space<vmem>>, %arg14: memref<2x2x32xf32, #tpu.memory_space<vmem>>, %arg15: memref<2x8x32xf32, #tpu.memory_space<vmem>>, %arg16: memref<2x8x32xf32, #tpu.memory_space<vmem>>) attributes {dimension_semantics = [#tpu.dimension_semantics<arbitrary>], iteration_bounds = array<i64: 1>, scalar_prefetch = 0 : i64, scratch_operands = 2 : i64, tpu.core_type = #tpu.core_type<tc>, window_params = [{pipeline_mode = #tpu.pipeline_mode<synchronous>, transform_indices = @transform_0, window_bounds = array<i64: 16, 16>}, {pipeline_mode = #tpu.pipeline_mode<synchronous>, transform_indices = @transform_1, window_bounds = array<i64: 2, 2, 32>}, {pipeline_mode = #tpu.pipeline_mode<synchronous>, transform_indices = @transform_2, window_bounds = array<i64: 3, 16, 32>}, {pipeline_mode = #tpu.pipeline_mode<synchronous>, transform_indices = @transform_3, window_bounds = array<i64: 3, 32, 32>}, {pipeline_mode = #tpu.pipeline_mode<synchronous>, transform_indices = @transform_4, window_bounds = array<i64: 3, 1, 32>}, {pipeline_mode = #tpu.pipeline_mode<synchronous>, transform_indices = @transform_5, window_bounds = array<i64: 1, 32>}, {pipeline_mode = #tpu.pipeline_mode<synchronous>, transform_indices = @transform_6, window_bounds = array<i64: 3, 32, 32>}, {pipeline_mode = #tpu.pipeline_mode<synchronous>, transform_indices = @transform_7, window_bounds = array<i64: 3, 32, 32>}, {pipeline_mode = #tpu.pipeline_mode<synchronous>, transform_indices = @transform_8, window_bounds = array<i64: 3, 1, 32>}, {pipeline_mode = #tpu.pipeline_mode<synchronous>, transform_indices = @transform_9, window_bounds = array<i64: 1, 32>}, {pipeline_mode = #tpu.pipeline_mode<synchronous>, transform_indices = @transform_10, window_bounds = array<i64: 32, 16>}, {pipeline_mode = #tpu.pipeline_mode<synchronous>, transform_indices = @transform_11, window_bounds = array<i64: 1, 16>}, {pipeline_mode = #tpu.pipeline_mode<synchronous>, transform_indices = @transform_12, window_bounds = array<i64: 16, 16>}, {pipeline_mode = #tpu.pipeline_mode<synchronous>, transform_indices = @transform_13, window_bounds = array<i64: 2, 2, 32>}]} {
    %c0 = arith.constant 0 : index
    %c0_0 = arith.constant 0 : index
    %0 = vector.load %arg1[%c0, %c0_0] : memref<16x16xf32, #tpu.memory_space<vmem>>, vector<16x16xf32>
    %1 = arith.truncf %0 : vector<16x16xf32> to vector<16x16xbf16>
    %c0_1 = arith.constant 0 : index
    %c0_2 = arith.constant 0 : index
    %c0_3 = arith.constant 0 : index
    %2 = vector.load %arg3[%c0_1, %c0_2, %c0_3] : memref<3x16x32xbf16, #tpu.memory_space<vmem>>, vector<1x16x32xbf16>
    %3 = vector.shape_cast %2 : vector<1x16x32xbf16> to vector<16x32xbf16>
    %cst = arith.constant dense<0.000000e+00> : vector<16x32xf32>
    %4 = tpu.matmul %1, %3, %cst {dimension_numbers = #tpu.dot_dimension_numbers<[1], [0], [0], [1], [0, 0, 1, 1], [], []>} : vector<16x16xbf16>, vector<16x32xbf16>, vector<16x32xf32> -> vector<16x32xf32>
    %c0_4 = arith.constant 0 : index
    %c0_5 = arith.constant 0 : index
    %c0_6 = arith.constant 0 : index
    %5 = vector.load %arg5[%c0_4, %c0_5, %c0_6] : memref<3x1x32xf32, #tpu.memory_space<vmem>>, vector<1x1x32xf32>
    %6 = vector.shape_cast %5 : vector<1x1x32xf32> to vector<1x32xf32>
    %7 = vector.broadcast %6 : vector<1x32xf32> to vector<16x32xf32>
    %8 = arith.addf %4, %7 : vector<16x32xf32>
    %9 = vector.shape_cast %8 : vector<16x32xf32> to vector<2x8x32xf32>
    %c1 = arith.constant 1 : index
    %c0_7 = arith.constant 0 : index
    %c0_8 = arith.constant 0 : index
    %10 = vector.load %arg3[%c1, %c0_7, %c0_8] : memref<3x16x32xbf16, #tpu.memory_space<vmem>>, vector<1x16x32xbf16>
    %11 = vector.shape_cast %10 : vector<1x16x32xbf16> to vector<16x32xbf16>
    %cst_9 = arith.constant dense<0.000000e+00> : vector<16x32xf32>
    %12 = tpu.matmul %1, %11, %cst_9 {dimension_numbers = #tpu.dot_dimension_numbers<[1], [0], [0], [1], [0, 0, 1, 1], [], []>} : vector<16x16xbf16>, vector<16x32xbf16>, vector<16x32xf32> -> vector<16x32xf32>
    %c1_10 = arith.constant 1 : index
    %c0_11 = arith.constant 0 : index
    %c0_12 = arith.constant 0 : index
    %13 = vector.load %arg5[%c1_10, %c0_11, %c0_12] : memref<3x1x32xf32, #tpu.memory_space<vmem>>, vector<1x1x32xf32>
    %14 = vector.shape_cast %13 : vector<1x1x32xf32> to vector<1x32xf32>
    %15 = vector.broadcast %14 : vector<1x32xf32> to vector<16x32xf32>
    %16 = arith.addf %12, %15 : vector<16x32xf32>
    %17 = vector.shape_cast %16 : vector<16x32xf32> to vector<2x8x32xf32>
    %c2 = arith.constant 2 : index
    %c0_13 = arith.constant 0 : index
    %c0_14 = arith.constant 0 : index
    %18 = vector.load %arg3[%c2, %c0_13, %c0_14] : memref<3x16x32xbf16, #tpu.memory_space<vmem>>, vector<1x16x32xbf16>
    %19 = vector.shape_cast %18 : vector<1x16x32xbf16> to vector<16x32xbf16>
    %cst_15 = arith.constant dense<0.000000e+00> : vector<16x32xf32>
    %20 = tpu.matmul %1, %19, %cst_15 {dimension_numbers = #tpu.dot_dimension_numbers<[1], [0], [0], [1], [0, 0, 1, 1], [], []>} : vector<16x16xbf16>, vector<16x32xbf16>, vector<16x32xf32> -> vector<16x32xf32>
    %c2_16 = arith.constant 2 : index
    %c0_17 = arith.constant 0 : index
    %c0_18 = arith.constant 0 : index
    %21 = vector.load %arg5[%c2_16, %c0_17, %c0_18] : memref<3x1x32xf32, #tpu.memory_space<vmem>>, vector<1x1x32xf32>
    %22 = vector.shape_cast %21 : vector<1x1x32xf32> to vector<1x32xf32>
    %23 = vector.broadcast %22 : vector<1x32xf32> to vector<16x32xf32>
    %24 = arith.addf %20, %23 : vector<16x32xf32>
    %25 = vector.shape_cast %24 : vector<16x32xf32> to vector<2x8x32xf32>
    %c0_19 = arith.constant 0 : index
    %c0_20 = arith.constant 0 : index
    %c0_21 = arith.constant 0 : index
    %26 = vector.load %arg4[%c0_19, %c0_20, %c0_21] : memref<3x32x32xbf16, #tpu.memory_space<vmem>>, vector<1x32x32xbf16>
    %27 = vector.shape_cast %26 : vector<1x32x32xbf16> to vector<32x32xbf16>
    %c1_22 = arith.constant 1 : index
    %c0_23 = arith.constant 0 : index
    %c0_24 = arith.constant 0 : index
    %28 = vector.load %arg4[%c1_22, %c0_23, %c0_24] : memref<3x32x32xbf16, #tpu.memory_space<vmem>>, vector<1x32x32xbf16>
    %29 = vector.shape_cast %28 : vector<1x32x32xbf16> to vector<32x32xbf16>
    %c2_25 = arith.constant 2 : index
    %c0_26 = arith.constant 0 : index
    %c0_27 = arith.constant 0 : index
    %30 = vector.load %arg4[%c2_25, %c0_26, %c0_27] : memref<3x32x32xbf16, #tpu.memory_space<vmem>>, vector<1x32x32xbf16>
    %31 = vector.shape_cast %30 : vector<1x32x32xbf16> to vector<32x32xbf16>
    %c0_28 = arith.constant 0 : index
    %c0_29 = arith.constant 0 : index
    %32 = vector.load %arg6[%c0_28, %c0_29] : memref<1x32xf32, #tpu.memory_space<vmem>>, vector<1x32xf32>
    %c0_30 = arith.constant 0 : index
    %c0_31 = arith.constant 0 : index
    %c0_32 = arith.constant 0 : index
    %33 = vector.load %arg2[%c0_30, %c0_31, %c0_32] : memref<2x2x32xf32, #tpu.memory_space<vmem>>, vector<1x2x32xf32>
    %34 = vector.shape_cast %33 : vector<1x2x32xf32> to vector<2x32xf32>
    %35 = arith.truncf %34 : vector<2x32xf32> to vector<2x32xbf16>
    %36 = vector.extract_strided_slice %9 {offsets = [0, 0, 0], sizes = [2, 1, 32], strides = [1, 1, 1]} : vector<2x8x32xf32> to vector<2x1x32xf32>
    %37 = vector.shape_cast %36 : vector<2x1x32xf32> to vector<2x32xf32>
    %cst_33 = arith.constant dense<0.000000e+00> : vector<2x32xf32>
    %38 = tpu.matmul %35, %27, %cst_33 {dimension_numbers = #tpu.dot_dimension_numbers<[1], [0], [0], [1], [0, 0, 1, 1], [], []>} : vector<2x32xbf16>, vector<32x32xbf16>, vector<2x32xf32> -> vector<2x32xf32>
    %39 = arith.addf %37, %38 : vector<2x32xf32>
    %40 = vector.extract_strided_slice %17 {offsets = [0, 0, 0], sizes = [2, 1, 32], strides = [1, 1, 1]} : vector<2x8x32xf32> to vector<2x1x32xf32>
    %41 = vector.shape_cast %40 : vector<2x1x32xf32> to vector<2x32xf32>
    %cst_34 = arith.constant dense<0.000000e+00> : vector<2x32xf32>
    %42 = tpu.matmul %35, %29, %cst_34 {dimension_numbers = #tpu.dot_dimension_numbers<[1], [0], [0], [1], [0, 0, 1, 1], [], []>} : vector<2x32xbf16>, vector<32x32xbf16>, vector<2x32xf32> -> vector<2x32xf32>
    %43 = arith.addf %41, %42 : vector<2x32xf32>
    %cst_35 = arith.constant dense<0.000000e+00> : vector<2x32xf32>
    %44 = tpu.matmul %35, %31, %cst_35 {dimension_numbers = #tpu.dot_dimension_numbers<[1], [0], [0], [1], [0, 0, 1, 1], [], []>} : vector<2x32xbf16>, vector<32x32xbf16>, vector<2x32xf32> -> vector<2x32xf32>
    %45 = vector.broadcast %32 : vector<1x32xf32> to vector<2x32xf32>
    %46 = arith.addf %44, %45 : vector<2x32xf32>
    %47 = arith.negf %39 : vector<2x32xf32>
    %48 = math.exp %47 : vector<2x32xf32>
    %cst_36 = arith.constant 1.000000e+00 : f32
    %49 = vector.broadcast %cst_36 : f32 to vector<2x32xf32>
    %50 = arith.addf %49, %48 : vector<2x32xf32>
    %51 = arith.divf %49, %50 : vector<2x32xf32>
    %52 = arith.negf %43 : vector<2x32xf32>
    %53 = math.exp %52 : vector<2x32xf32>
    %cst_37 = arith.constant 1.000000e+00 : f32
    %54 = vector.broadcast %cst_37 : f32 to vector<2x32xf32>
    %55 = arith.addf %54, %53 : vector<2x32xf32>
    %56 = arith.divf %54, %55 : vector<2x32xf32>
    %57 = vector.extract_strided_slice %25 {offsets = [0, 0, 0], sizes = [2, 1, 32], strides = [1, 1, 1]} : vector<2x8x32xf32> to vector<2x1x32xf32>
    %58 = vector.shape_cast %57 : vector<2x1x32xf32> to vector<2x32xf32>
    %59 = arith.mulf %51, %46 : vector<2x32xf32>
    %60 = arith.addf %58, %59 : vector<2x32xf32>
    %61 = math.tanh %60 : vector<2x32xf32>
    %cst_38 = arith.constant 1.000000e+00 : f32
    %62 = vector.broadcast %cst_38 : f32 to vector<2x32xf32>
    %63 = arith.subf %62, %56 : vector<2x32xf32>
    %64 = arith.mulf %63, %61 : vector<2x32xf32>
    %65 = arith.mulf %56, %34 : vector<2x32xf32>
    %66 = arith.addf %64, %65 : vector<2x32xf32>
    %67 = vector.shape_cast %66 : vector<2x32xf32> to vector<2x1x32xf32>
    %c0_39 = arith.constant 0 : index
    %c0_40 = arith.constant 0 : index
    %c0_41 = arith.constant 0 : index
    %68 = vector.load %arg15[%c0_39, %c0_40, %c0_41] : memref<2x8x32xf32, #tpu.memory_space<vmem>>, vector<2x1x32xf32>
    tpu.vector_store %arg15[%c0_39, %c0_40, %c0_41], %67 {strides = array<i32>} : memref<2x8x32xf32, #tpu.memory_space<vmem>>, vector<2x1x32xf32>,
    %69 = arith.truncf %66 : vector<2x32xf32> to vector<2x32xbf16>
    %70 = vector.extract_strided_slice %9 {offsets = [0, 1, 0], sizes = [2, 1, 32], strides = [1, 1, 1]} : vector<2x8x32xf32> to vector<2x1x32xf32>
    %71 = vector.shape_cast %70 : vector<2x1x32xf32> to vector<2x32xf32>
    %cst_42 = arith.constant dense<0.000000e+00> : vector<2x32xf32>
    %72 = tpu.matmul %69, %27, %cst_42 {dimension_numbers = #tpu.dot_dimension_numbers<[1], [0], [0], [1], [0, 0, 1, 1], [], []>} : vector<2x32xbf16>, vector<32x32xbf16>, vector<2x32xf32> -> vector<2x32xf32>
    %73 = arith.addf %71, %72 : vector<2x32xf32>
    %74 = vector.extract_strided_slice %17 {offsets = [0, 1, 0], sizes = [2, 1, 32], strides = [1, 1, 1]} : vector<2x8x32xf32> to vector<2x1x32xf32>
    %75 = vector.shape_cast %74 : vector<2x1x32xf32> to vector<2x32xf32>
    %cst_43 = arith.constant dense<0.000000e+00> : vector<2x32xf32>
    %76 = tpu.matmul %69, %29, %cst_43 {dimension_numbers = #tpu.dot_dimension_numbers<[1], [0], [0], [1], [0, 0, 1, 1], [], []>} : vector<2x32xbf16>, vector<32x32xbf16>, vector<2x32xf32> -> vector<2x32xf32>
    %77 = arith.addf %75, %76 : vector<2x32xf32>
    %cst_44 = arith.constant dense<0.000000e+00> : vector<2x32xf32>
    %78 = tpu.matmul %69, %31, %cst_44 {dimension_numbers = #tpu.dot_dimension_numbers<[1], [0], [0], [1], [0, 0, 1, 1], [], []>} : vector<2x32xbf16>, vector<32x32xbf16>, vector<2x32xf32> -> vector<2x32xf32>
    %79 = vector.broadcast %32 : vector<1x32xf32> to vector<2x32xf32>
    %80 = arith.addf %78, %79 : vector<2x32xf32>
    %81 = arith.negf %73 : vector<2x32xf32>
    %82 = math.exp %81 : vector<2x32xf32>
    %cst_45 = arith.constant 1.000000e+00 : f32
    %83 = vector.broadcast %cst_45 : f32 to vector<2x32xf32>
    %84 = arith.addf %83, %82 : vector<2x32xf32>
    %85 = arith.divf %83, %84 : vector<2x32xf32>
    %86 = arith.negf %77 : vector<2x32xf32>
    %87 = math.exp %86 : vector<2x32xf32>
    %cst_46 = arith.constant 1.000000e+00 : f32
    %88 = vector.broadcast %cst_46 : f32 to vector<2x32xf32>
    %89 = arith.addf %88, %87 : vector<2x32xf32>
    %90 = arith.divf %88, %89 : vector<2x32xf32>
    %91 = vector.extract_strided_slice %25 {offsets = [0, 1, 0], sizes = [2, 1, 32], strides = [1, 1, 1]} : vector<2x8x32xf32> to vector<2x1x32xf32>
    %92 = vector.shape_cast %91 : vector<2x1x32xf32> to vector<2x32xf32>
    %93 = arith.mulf %85, %80 : vector<2x32xf32>
    %94 = arith.addf %92, %93 : vector<2x32xf32>
    %95 = math.tanh %94 : vector<2x32xf32>
    %cst_47 = arith.constant 1.000000e+00 : f32
    %96 = vector.broadcast %cst_47 : f32 to vector<2x32xf32>
    %97 = arith.subf %96, %90 : vector<2x32xf32>
    %98 = arith.mulf %97, %95 : vector<2x32xf32>
    %99 = arith.mulf %90, %66 : vector<2x32xf32>
    %100 = arith.addf %98, %99 : vector<2x32xf32>
    %101 = vector.shape_cast %100 : vector<2x32xf32> to vector<2x1x32xf32>
    %c0_48 = arith.constant 0 : index
    %c1_49 = arith.constant 1 : index
    %c0_50 = arith.constant 0 : index
    %102 = vector.load %arg15[%c0_48, %c1_49, %c0_50] : memref<2x8x32xf32, #tpu.memory_space<vmem>>, vector<2x1x32xf32>
    tpu.vector_store %arg15[%c0_48, %c1_49, %c0_50], %101 {strides = array<i32>} : memref<2x8x32xf32, #tpu.memory_space<vmem>>, vector<2x1x32xf32>,
    %103 = arith.truncf %100 : vector<2x32xf32> to vector<2x32xbf16>
    %104 = vector.extract_strided_slice %9 {offsets = [0, 2, 0], sizes = [2, 1, 32], strides = [1, 1, 1]} : vector<2x8x32xf32> to vector<2x1x32xf32>
    %105 = vector.shape_cast %104 : vector<2x1x32xf32> to vector<2x32xf32>
    %cst_51 = arith.constant dense<0.000000e+00> : vector<2x32xf32>
    %106 = tpu.matmul %103, %27, %cst_51 {dimension_numbers = #tpu.dot_dimension_numbers<[1], [0], [0], [1], [0, 0, 1, 1], [], []>} : vector<2x32xbf16>, vector<32x32xbf16>, vector<2x32xf32> -> vector<2x32xf32>
    %107 = arith.addf %105, %106 : vector<2x32xf32>
    %108 = vector.extract_strided_slice %17 {offsets = [0, 2, 0], sizes = [2, 1, 32], strides = [1, 1, 1]} : vector<2x8x32xf32> to vector<2x1x32xf32>
    %109 = vector.shape_cast %108 : vector<2x1x32xf32> to vector<2x32xf32>
    %cst_52 = arith.constant dense<0.000000e+00> : vector<2x32xf32>
    %110 = tpu.matmul %103, %29, %cst_52 {dimension_numbers = #tpu.dot_dimension_numbers<[1], [0], [0], [1], [0, 0, 1, 1], [], []>} : vector<2x32xbf16>, vector<32x32xbf16>, vector<2x32xf32> -> vector<2x32xf32>
    %111 = arith.addf %109, %110 : vector<2x32xf32>
    %cst_53 = arith.constant dense<0.000000e+00> : vector<2x32xf32>
    %112 = tpu.matmul %103, %31, %cst_53 {dimension_numbers = #tpu.dot_dimension_numbers<[1], [0], [0], [1], [0, 0, 1, 1], [], []>} : vector<2x32xbf16>, vector<32x32xbf16>, vector<2x32xf32> -> vector<2x32xf32>
    %113 = vector.broadcast %32 : vector<1x32xf32> to vector<2x32xf32>
    %114 = arith.addf %112, %113 : vector<2x32xf32>
    %115 = arith.negf %107 : vector<2x32xf32>
    %116 = math.exp %115 : vector<2x32xf32>
    %cst_54 = arith.constant 1.000000e+00 : f32
    %117 = vector.broadcast %cst_54 : f32 to vector<2x32xf32>
    %118 = arith.addf %117, %116 : vector<2x32xf32>
    %119 = arith.divf %117, %118 : vector<2x32xf32>
    %120 = arith.negf %111 : vector<2x32xf32>
    %121 = math.exp %120 : vector<2x32xf32>
    %cst_55 = arith.constant 1.000000e+00 : f32
    %122 = vector.broadcast %cst_55 : f32 to vector<2x32xf32>
    %123 = arith.addf %122, %121 : vector<2x32xf32>
    %124 = arith.divf %122, %123 : vector<2x32xf32>
    %125 = vector.extract_strided_slice %25 {offsets = [0, 2, 0], sizes = [2, 1, 32], strides = [1, 1, 1]} : vector<2x8x32xf32> to vector<2x1x32xf32>
    %126 = vector.shape_cast %125 : vector<2x1x32xf32> to vector<2x32xf32>
    %127 = arith.mulf %119, %114 : vector<2x32xf32>
    %128 = arith.addf %126, %127 : vector<2x32xf32>
    %129 = math.tanh %128 : vector<2x32xf32>
    %cst_56 = arith.constant 1.000000e+00 : f32
    %130 = vector.broadcast %cst_56 : f32 to vector<2x32xf32>
    %131 = arith.subf %130, %124 : vector<2x32xf32>
    %132 = arith.mulf %131, %129 : vector<2x32xf32>
    %133 = arith.mulf %124, %100 : vector<2x32xf32>
    %134 = arith.addf %132, %133 : vector<2x32xf32>
    %135 = vector.shape_cast %134 : vector<2x32xf32> to vector<2x1x32xf32>
    %c0_57 = arith.constant 0 : index
    %c2_58 = arith.constant 2 : index
    %c0_59 = arith.constant 0 : index
    %136 = vector.load %arg15[%c0_57, %c2_58, %c0_59] : memref<2x8x32xf32, #tpu.memory_space<vmem>>, vector<2x1x32xf32>
    tpu.vector_store %arg15[%c0_57, %c2_58, %c0_59], %135 {strides = array<i32>} : memref<2x8x32xf32, #tpu.memory_space<vmem>>, vector<2x1x32xf32>,
    %137 = arith.truncf %134 : vector<2x32xf32> to vector<2x32xbf16>
    %138 = vector.extract_strided_slice %9 {offsets = [0, 3, 0], sizes = [2, 1, 32], strides = [1, 1, 1]} : vector<2x8x32xf32> to vector<2x1x32xf32>
    %139 = vector.shape_cast %138 : vector<2x1x32xf32> to vector<2x32xf32>
    %cst_60 = arith.constant dense<0.000000e+00> : vector<2x32xf32>
    %140 = tpu.matmul %137, %27, %cst_60 {dimension_numbers = #tpu.dot_dimension_numbers<[1], [0], [0], [1], [0, 0, 1, 1], [], []>} : vector<2x32xbf16>, vector<32x32xbf16>, vector<2x32xf32> -> vector<2x32xf32>
    %141 = arith.addf %139, %140 : vector<2x32xf32>
    %142 = vector.extract_strided_slice %17 {offsets = [0, 3, 0], sizes = [2, 1, 32], strides = [1, 1, 1]} : vector<2x8x32xf32> to vector<2x1x32xf32>
    %143 = vector.shape_cast %142 : vector<2x1x32xf32> to vector<2x32xf32>
    %cst_61 = arith.constant dense<0.000000e+00> : vector<2x32xf32>
    %144 = tpu.matmul %137, %29, %cst_61 {dimension_numbers = #tpu.dot_dimension_numbers<[1], [0], [0], [1], [0, 0, 1, 1], [], []>} : vector<2x32xbf16>, vector<32x32xbf16>, vector<2x32xf32> -> vector<2x32xf32>
    %145 = arith.addf %143, %144 : vector<2x32xf32>
    %cst_62 = arith.constant dense<0.000000e+00> : vector<2x32xf32>
    %146 = tpu.matmul %137, %31, %cst_62 {dimension_numbers = #tpu.dot_dimension_numbers<[1], [0], [0], [1], [0, 0, 1, 1], [], []>} : vector<2x32xbf16>, vector<32x32xbf16>, vector<2x32xf32> -> vector<2x32xf32>
    %147 = vector.broadcast %32 : vector<1x32xf32> to vector<2x32xf32>
    %148 = arith.addf %146, %147 : vector<2x32xf32>
    %149 = arith.negf %141 : vector<2x32xf32>
    %150 = math.exp %149 : vector<2x32xf32>
    %cst_63 = arith.constant 1.000000e+00 : f32
    %151 = vector.broadcast %cst_63 : f32 to vector<2x32xf32>
    %152 = arith.addf %151, %150 : vector<2x32xf32>
    %153 = arith.divf %151, %152 : vector<2x32xf32>
    %154 = arith.negf %145 : vector<2x32xf32>
    %155 = math.exp %154 : vector<2x32xf32>
    %cst_64 = arith.constant 1.000000e+00 : f32
    %156 = vector.broadcast %cst_64 : f32 to vector<2x32xf32>
    %157 = arith.addf %156, %155 : vector<2x32xf32>
    %158 = arith.divf %156, %157 : vector<2x32xf32>
    %159 = vector.extract_strided_slice %25 {offsets = [0, 3, 0], sizes = [2, 1, 32], strides = [1, 1, 1]} : vector<2x8x32xf32> to vector<2x1x32xf32>
    %160 = vector.shape_cast %159 : vector<2x1x32xf32> to vector<2x32xf32>
    %161 = arith.mulf %153, %148 : vector<2x32xf32>
    %162 = arith.addf %160, %161 : vector<2x32xf32>
    %163 = math.tanh %162 : vector<2x32xf32>
    %cst_65 = arith.constant 1.000000e+00 : f32
    %164 = vector.broadcast %cst_65 : f32 to vector<2x32xf32>
    %165 = arith.subf %164, %158 : vector<2x32xf32>
    %166 = arith.mulf %165, %163 : vector<2x32xf32>
    %167 = arith.mulf %158, %134 : vector<2x32xf32>
    %168 = arith.addf %166, %167 : vector<2x32xf32>
    %169 = vector.shape_cast %168 : vector<2x32xf32> to vector<2x1x32xf32>
    %c0_66 = arith.constant 0 : index
    %c3 = arith.constant 3 : index
    %c0_67 = arith.constant 0 : index
    %170 = vector.load %arg15[%c0_66, %c3, %c0_67] : memref<2x8x32xf32, #tpu.memory_space<vmem>>, vector<2x1x32xf32>
    tpu.vector_store %arg15[%c0_66, %c3, %c0_67], %169 {strides = array<i32>} : memref<2x8x32xf32, #tpu.memory_space<vmem>>, vector<2x1x32xf32>,
    %171 = arith.truncf %168 : vector<2x32xf32> to vector<2x32xbf16>
    %172 = vector.extract_strided_slice %9 {offsets = [0, 4, 0], sizes = [2, 1, 32], strides = [1, 1, 1]} : vector<2x8x32xf32> to vector<2x1x32xf32>
    %173 = vector.shape_cast %172 : vector<2x1x32xf32> to vector<2x32xf32>
    %cst_68 = arith.constant dense<0.000000e+00> : vector<2x32xf32>
    %174 = tpu.matmul %171, %27, %cst_68 {dimension_numbers = #tpu.dot_dimension_numbers<[1], [0], [0], [1], [0, 0, 1, 1], [], []>} : vector<2x32xbf16>, vector<32x32xbf16>, vector<2x32xf32> -> vector<2x32xf32>
    %175 = arith.addf %173, %174 : vector<2x32xf32>
    %176 = vector.extract_strided_slice %17 {offsets = [0, 4, 0], sizes = [2, 1, 32], strides = [1, 1, 1]} : vector<2x8x32xf32> to vector<2x1x32xf32>
    %177 = vector.shape_cast %176 : vector<2x1x32xf32> to vector<2x32xf32>
    %cst_69 = arith.constant dense<0.000000e+00> : vector<2x32xf32>
    %178 = tpu.matmul %171, %29, %cst_69 {dimension_numbers = #tpu.dot_dimension_numbers<[1], [0], [0], [1], [0, 0, 1, 1], [], []>} : vector<2x32xbf16>, vector<32x32xbf16>, vector<2x32xf32> -> vector<2x32xf32>
    %179 = arith.addf %177, %178 : vector<2x32xf32>
    %cst_70 = arith.constant dense<0.000000e+00> : vector<2x32xf32>
    %180 = tpu.matmul %171, %31, %cst_70 {dimension_numbers = #tpu.dot_dimension_numbers<[1], [0], [0], [1], [0, 0, 1, 1], [], []>} : vector<2x32xbf16>, vector<32x32xbf16>, vector<2x32xf32> -> vector<2x32xf32>
    %181 = vector.broadcast %32 : vector<1x32xf32> to vector<2x32xf32>
    %182 = arith.addf %180, %181 : vector<2x32xf32>
    %183 = arith.negf %175 : vector<2x32xf32>
    %184 = math.exp %183 : vector<2x32xf32>
    %cst_71 = arith.constant 1.000000e+00 : f32
    %185 = vector.broadcast %cst_71 : f32 to vector<2x32xf32>
    %186 = arith.addf %185, %184 : vector<2x32xf32>
    %187 = arith.divf %185, %186 : vector<2x32xf32>
    %188 = arith.negf %179 : vector<2x32xf32>
    %189 = math.exp %188 : vector<2x32xf32>
    %cst_72 = arith.constant 1.000000e+00 : f32
    %190 = vector.broadcast %cst_72 : f32 to vector<2x32xf32>
    %191 = arith.addf %190, %189 : vector<2x32xf32>
    %192 = arith.divf %190, %191 : vector<2x32xf32>
    %193 = vector.extract_strided_slice %25 {offsets = [0, 4, 0], sizes = [2, 1, 32], strides = [1, 1, 1]} : vector<2x8x32xf32> to vector<2x1x32xf32>
    %194 = vector.shape_cast %193 : vector<2x1x32xf32> to vector<2x32xf32>
    %195 = arith.mulf %187, %182 : vector<2x32xf32>
    %196 = arith.addf %194, %195 : vector<2x32xf32>
    %197 = math.tanh %196 : vector<2x32xf32>
    %cst_73 = arith.constant 1.000000e+00 : f32
    %198 = vector.broadcast %cst_73 : f32 to vector<2x32xf32>
    %199 = arith.subf %198, %192 : vector<2x32xf32>
    %200 = arith.mulf %199, %197 : vector<2x32xf32>
    %201 = arith.mulf %192, %168 : vector<2x32xf32>
    %202 = arith.addf %200, %201 : vector<2x32xf32>
    %203 = vector.shape_cast %202 : vector<2x32xf32> to vector<2x1x32xf32>
    %c0_74 = arith.constant 0 : index
    %c4 = arith.constant 4 : index
    %c0_75 = arith.constant 0 : index
    %204 = vector.load %arg15[%c0_74, %c4, %c0_75] : memref<2x8x32xf32, #tpu.memory_space<vmem>>, vector<2x1x32xf32>
    tpu.vector_store %arg15[%c0_74, %c4, %c0_75], %203 {strides = array<i32>} : memref<2x8x32xf32, #tpu.memory_space<vmem>>, vector<2x1x32xf32>,
    %205 = arith.truncf %202 : vector<2x32xf32> to vector<2x32xbf16>
    %206 = vector.extract_strided_slice %9 {offsets = [0, 5, 0], sizes = [2, 1, 32], strides = [1, 1, 1]} : vector<2x8x32xf32> to vector<2x1x32xf32>
    %207 = vector.shape_cast %206 : vector<2x1x32xf32> to vector<2x32xf32>
    %cst_76 = arith.constant dense<0.000000e+00> : vector<2x32xf32>
    %208 = tpu.matmul %205, %27, %cst_76 {dimension_numbers = #tpu.dot_dimension_numbers<[1], [0], [0], [1], [0, 0, 1, 1], [], []>} : vector<2x32xbf16>, vector<32x32xbf16>, vector<2x32xf32> -> vector<2x32xf32>
    %209 = arith.addf %207, %208 : vector<2x32xf32>
    %210 = vector.extract_strided_slice %17 {offsets = [0, 5, 0], sizes = [2, 1, 32], strides = [1, 1, 1]} : vector<2x8x32xf32> to vector<2x1x32xf32>
    %211 = vector.shape_cast %210 : vector<2x1x32xf32> to vector<2x32xf32>
    %cst_77 = arith.constant dense<0.000000e+00> : vector<2x32xf32>
    %212 = tpu.matmul %205, %29, %cst_77 {dimension_numbers = #tpu.dot_dimension_numbers<[1], [0], [0], [1], [0, 0, 1, 1], [], []>} : vector<2x32xbf16>, vector<32x32xbf16>, vector<2x32xf32> -> vector<2x32xf32>
    %213 = arith.addf %211, %212 : vector<2x32xf32>
    %cst_78 = arith.constant dense<0.000000e+00> : vector<2x32xf32>
    %214 = tpu.matmul %205, %31, %cst_78 {dimension_numbers = #tpu.dot_dimension_numbers<[1], [0], [0], [1], [0, 0, 1, 1], [], []>} : vector<2x32xbf16>, vector<32x32xbf16>, vector<2x32xf32> -> vector<2x32xf32>
    %215 = vector.broadcast %32 : vector<1x32xf32> to vector<2x32xf32>
    %216 = arith.addf %214, %215 : vector<2x32xf32>
    %217 = arith.negf %209 : vector<2x32xf32>
    %218 = math.exp %217 : vector<2x32xf32>
    %cst_79 = arith.constant 1.000000e+00 : f32
    %219 = vector.broadcast %cst_79 : f32 to vector<2x32xf32>
    %220 = arith.addf %219, %218 : vector<2x32xf32>
    %221 = arith.divf %219, %220 : vector<2x32xf32>
    %222 = arith.negf %213 : vector<2x32xf32>
    %223 = math.exp %222 : vector<2x32xf32>
    %cst_80 = arith.constant 1.000000e+00 : f32
    %224 = vector.broadcast %cst_80 : f32 to vector<2x32xf32>
    %225 = arith.addf %224, %223 : vector<2x32xf32>
    %226 = arith.divf %224, %225 : vector<2x32xf32>
    %227 = vector.extract_strided_slice %25 {offsets = [0, 5, 0], sizes = [2, 1, 32], strides = [1, 1, 1]} : vector<2x8x32xf32> to vector<2x1x32xf32>
    %228 = vector.shape_cast %227 : vector<2x1x32xf32> to vector<2x32xf32>
    %229 = arith.mulf %221, %216 : vector<2x32xf32>
    %230 = arith.addf %228, %229 : vector<2x32xf32>
    %231 = math.tanh %230 : vector<2x32xf32>
    %cst_81 = arith.constant 1.000000e+00 : f32
    %232 = vector.broadcast %cst_81 : f32 to vector<2x32xf32>
    %233 = arith.subf %232, %226 : vector<2x32xf32>
    %234 = arith.mulf %233, %231 : vector<2x32xf32>
    %235 = arith.mulf %226, %202 : vector<2x32xf32>
    %236 = arith.addf %234, %235 : vector<2x32xf32>
    %237 = vector.shape_cast %236 : vector<2x32xf32> to vector<2x1x32xf32>
    %c0_82 = arith.constant 0 : index
    %c5 = arith.constant 5 : index
    %c0_83 = arith.constant 0 : index
    %238 = vector.load %arg15[%c0_82, %c5, %c0_83] : memref<2x8x32xf32, #tpu.memory_space<vmem>>, vector<2x1x32xf32>
    tpu.vector_store %arg15[%c0_82, %c5, %c0_83], %237 {strides = array<i32>} : memref<2x8x32xf32, #tpu.memory_space<vmem>>, vector<2x1x32xf32>,
    %239 = arith.truncf %236 : vector<2x32xf32> to vector<2x32xbf16>
    %240 = vector.extract_strided_slice %9 {offsets = [0, 6, 0], sizes = [2, 1, 32], strides = [1, 1, 1]} : vector<2x8x32xf32> to vector<2x1x32xf32>
    %241 = vector.shape_cast %240 : vector<2x1x32xf32> to vector<2x32xf32>
    %cst_84 = arith.constant dense<0.000000e+00> : vector<2x32xf32>
    %242 = tpu.matmul %239, %27, %cst_84 {dimension_numbers = #tpu.dot_dimension_numbers<[1], [0], [0], [1], [0, 0, 1, 1], [], []>} : vector<2x32xbf16>, vector<32x32xbf16>, vector<2x32xf32> -> vector<2x32xf32>
    %243 = arith.addf %241, %242 : vector<2x32xf32>
    %244 = vector.extract_strided_slice %17 {offsets = [0, 6, 0], sizes = [2, 1, 32], strides = [1, 1, 1]} : vector<2x8x32xf32> to vector<2x1x32xf32>
    %245 = vector.shape_cast %244 : vector<2x1x32xf32> to vector<2x32xf32>
    %cst_85 = arith.constant dense<0.000000e+00> : vector<2x32xf32>
    %246 = tpu.matmul %239, %29, %cst_85 {dimension_numbers = #tpu.dot_dimension_numbers<[1], [0], [0], [1], [0, 0, 1, 1], [], []>} : vector<2x32xbf16>, vector<32x32xbf16>, vector<2x32xf32> -> vector<2x32xf32>
    %247 = arith.addf %245, %246 : vector<2x32xf32>
    %cst_86 = arith.constant dense<0.000000e+00> : vector<2x32xf32>
    %248 = tpu.matmul %239, %31, %cst_86 {dimension_numbers = #tpu.dot_dimension_numbers<[1], [0], [0], [1], [0, 0, 1, 1], [], []>} : vector<2x32xbf16>, vector<32x32xbf16>, vector<2x32xf32> -> vector<2x32xf32>
    %249 = vector.broadcast %32 : vector<1x32xf32> to vector<2x32xf32>
    %250 = arith.addf %248, %249 : vector<2x32xf32>
    %251 = arith.negf %243 : vector<2x32xf32>
    %252 = math.exp %251 : vector<2x32xf32>
    %cst_87 = arith.constant 1.000000e+00 : f32
    %253 = vector.broadcast %cst_87 : f32 to vector<2x32xf32>
    %254 = arith.addf %253, %252 : vector<2x32xf32>
    %255 = arith.divf %253, %254 : vector<2x32xf32>
    %256 = arith.negf %247 : vector<2x32xf32>
    %257 = math.exp %256 : vector<2x32xf32>
    %cst_88 = arith.constant 1.000000e+00 : f32
    %258 = vector.broadcast %cst_88 : f32 to vector<2x32xf32>
    %259 = arith.addf %258, %257 : vector<2x32xf32>
    %260 = arith.divf %258, %259 : vector<2x32xf32>
    %261 = vector.extract_strided_slice %25 {offsets = [0, 6, 0], sizes = [2, 1, 32], strides = [1, 1, 1]} : vector<2x8x32xf32> to vector<2x1x32xf32>
    %262 = vector.shape_cast %261 : vector<2x1x32xf32> to vector<2x32xf32>
    %263 = arith.mulf %255, %250 : vector<2x32xf32>
    %264 = arith.addf %262, %263 : vector<2x32xf32>
    %265 = math.tanh %264 : vector<2x32xf32>
    %cst_89 = arith.constant 1.000000e+00 : f32
    %266 = vector.broadcast %cst_89 : f32 to vector<2x32xf32>
    %267 = arith.subf %266, %260 : vector<2x32xf32>
    %268 = arith.mulf %267, %265 : vector<2x32xf32>
    %269 = arith.mulf %260, %236 : vector<2x32xf32>
    %270 = arith.addf %268, %269 : vector<2x32xf32>
    %271 = vector.shape_cast %270 : vector<2x32xf32> to vector<2x1x32xf32>
    %c0_90 = arith.constant 0 : index
    %c6 = arith.constant 6 : index
    %c0_91 = arith.constant 0 : index
    %272 = vector.load %arg15[%c0_90, %c6, %c0_91] : memref<2x8x32xf32, #tpu.memory_space<vmem>>, vector<2x1x32xf32>
    tpu.vector_store %arg15[%c0_90, %c6, %c0_91], %271 {strides = array<i32>} : memref<2x8x32xf32, #tpu.memory_space<vmem>>, vector<2x1x32xf32>,
    %273 = arith.truncf %270 : vector<2x32xf32> to vector<2x32xbf16>
    %274 = vector.extract_strided_slice %9 {offsets = [0, 7, 0], sizes = [2, 1, 32], strides = [1, 1, 1]} : vector<2x8x32xf32> to vector<2x1x32xf32>
    %275 = vector.shape_cast %274 : vector<2x1x32xf32> to vector<2x32xf32>
    %cst_92 = arith.constant dense<0.000000e+00> : vector<2x32xf32>
    %276 = tpu.matmul %273, %27, %cst_92 {dimension_numbers = #tpu.dot_dimension_numbers<[1], [0], [0], [1], [0, 0, 1, 1], [], []>} : vector<2x32xbf16>, vector<32x32xbf16>, vector<2x32xf32> -> vector<2x32xf32>
    %277 = arith.addf %275, %276 : vector<2x32xf32>
    %278 = vector.extract_strided_slice %17 {offsets = [0, 7, 0], sizes = [2, 1, 32], strides = [1, 1, 1]} : vector<2x8x32xf32> to vector<2x1x32xf32>
    %279 = vector.shape_cast %278 : vector<2x1x32xf32> to vector<2x32xf32>
    %cst_93 = arith.constant dense<0.000000e+00> : vector<2x32xf32>
    %280 = tpu.matmul %273, %29, %cst_93 {dimension_numbers = #tpu.dot_dimension_numbers<[1], [0], [0], [1], [0, 0, 1, 1], [], []>} : vector<2x32xbf16>, vector<32x32xbf16>, vector<2x32xf32> -> vector<2x32xf32>
    %281 = arith.addf %279, %280 : vector<2x32xf32>
    %cst_94 = arith.constant dense<0.000000e+00> : vector<2x32xf32>
    %282 = tpu.matmul %273, %31, %cst_94 {dimension_numbers = #tpu.dot_dimension_numbers<[1], [0], [0], [1], [0, 0, 1, 1], [], []>} : vector<2x32xbf16>, vector<32x32xbf16>, vector<2x32xf32> -> vector<2x32xf32>
    %283 = vector.broadcast %32 : vector<1x32xf32> to vector<2x32xf32>
    %284 = arith.addf %282, %283 : vector<2x32xf32>
    %285 = arith.negf %277 : vector<2x32xf32>
    %286 = math.exp %285 : vector<2x32xf32>
    %cst_95 = arith.constant 1.000000e+00 : f32
    %287 = vector.broadcast %cst_95 : f32 to vector<2x32xf32>
    %288 = arith.addf %287, %286 : vector<2x32xf32>
    %289 = arith.divf %287, %288 : vector<2x32xf32>
    %290 = arith.negf %281 : vector<2x32xf32>
    %291 = math.exp %290 : vector<2x32xf32>
    %cst_96 = arith.constant 1.000000e+00 : f32
    %292 = vector.broadcast %cst_96 : f32 to vector<2x32xf32>
    %293 = arith.addf %292, %291 : vector<2x32xf32>
    %294 = arith.divf %292, %293 : vector<2x32xf32>
    %295 = vector.extract_strided_slice %25 {offsets = [0, 7, 0], sizes = [2, 1, 32], strides = [1, 1, 1]} : vector<2x8x32xf32> to vector<2x1x32xf32>
    %296 = vector.shape_cast %295 : vector<2x1x32xf32> to vector<2x32xf32>
    %297 = arith.mulf %289, %284 : vector<2x32xf32>
    %298 = arith.addf %296, %297 : vector<2x32xf32>
    %299 = math.tanh %298 : vector<2x32xf32>
    %cst_97 = arith.constant 1.000000e+00 : f32
    %300 = vector.broadcast %cst_97 : f32 to vector<2x32xf32>
    %301 = arith.subf %300, %294 : vector<2x32xf32>
    %302 = arith.mulf %301, %299 : vector<2x32xf32>
    %303 = arith.mulf %294, %270 : vector<2x32xf32>
    %304 = arith.addf %302, %303 : vector<2x32xf32>
    %305 = vector.shape_cast %304 : vector<2x32xf32> to vector<2x1x32xf32>
    %c0_98 = arith.constant 0 : index
    %c7 = arith.constant 7 : index
    %c0_99 = arith.constant 0 : index
    %306 = vector.load %arg15[%c0_98, %c7, %c0_99] : memref<2x8x32xf32, #tpu.memory_space<vmem>>, vector<2x1x32xf32>
    tpu.vector_store %arg15[%c0_98, %c7, %c0_99], %305 {strides = array<i32>} : memref<2x8x32xf32, #tpu.memory_space<vmem>>, vector<2x1x32xf32>,
    %c0_100 = arith.constant 0 : index
    %c0_101 = arith.constant 0 : index
    %c0_102 = arith.constant 0 : index
    %307 = vector.load %arg14[%c0_100, %c0_101, %c0_102] : memref<2x2x32xf32, #tpu.memory_space<vmem>>, vector<1x2x32xf32>
    %308 = vector.shape_cast %307 : vector<1x2x32xf32> to vector<2x32xf32>
    %309 = vector.shape_cast %304 : vector<2x32xf32> to vector<1x2x32xf32>
    tpu.vector_store %arg14[%c0_100, %c0_101, %c0_102], %309 {strides = array<i32>} : memref<2x2x32xf32, #tpu.memory_space<vmem>>, vector<1x2x32xf32>,
    %c0_103 = arith.constant 0 : index
    %c0_104 = arith.constant 0 : index
    %c0_105 = arith.constant 0 : index
    %310 = vector.load %arg15[%c0_103, %c0_104, %c0_105] : memref<2x8x32xf32, #tpu.memory_space<vmem>>, vector<2x8x32xf32>
    %311 = vector.shape_cast %310 : vector<2x8x32xf32> to vector<16x32xf32>
    %312 = arith.truncf %311 : vector<16x32xf32> to vector<16x32xbf16>
    %c0_106 = arith.constant 0 : index
    %c0_107 = arith.constant 0 : index
    %c0_108 = arith.constant 0 : index
    %313 = vector.load %arg7[%c0_106, %c0_107, %c0_108] : memref<3x32x32xbf16, #tpu.memory_space<vmem>>, vector<1x32x32xbf16>
    %314 = vector.shape_cast %313 : vector<1x32x32xbf16> to vector<32x32xbf16>
    %cst_109 = arith.constant dense<0.000000e+00> : vector<16x32xf32>
    %315 = tpu.matmul %312, %314, %cst_109 {dimension_numbers = #tpu.dot_dimension_numbers<[1], [0], [0], [1], [0, 0, 1, 1], [], []>} : vector<16x32xbf16>, vector<32x32xbf16>, vector<16x32xf32> -> vector<16x32xf32>
    %c0_110 = arith.constant 0 : index
    %c0_111 = arith.constant 0 : index
    %c0_112 = arith.constant 0 : index
    %316 = vector.load %arg9[%c0_110, %c0_111, %c0_112] : memref<3x1x32xf32, #tpu.memory_space<vmem>>, vector<1x1x32xf32>
    %317 = vector.shape_cast %316 : vector<1x1x32xf32> to vector<1x32xf32>
    %318 = vector.broadcast %317 : vector<1x32xf32> to vector<16x32xf32>
    %319 = arith.addf %315, %318 : vector<16x32xf32>
    %320 = vector.shape_cast %319 : vector<16x32xf32> to vector<2x8x32xf32>
    %c1_113 = arith.constant 1 : index
    %c0_114 = arith.constant 0 : index
    %c0_115 = arith.constant 0 : index
    %321 = vector.load %arg7[%c1_113, %c0_114, %c0_115] : memref<3x32x32xbf16, #tpu.memory_space<vmem>>, vector<1x32x32xbf16>
    %322 = vector.shape_cast %321 : vector<1x32x32xbf16> to vector<32x32xbf16>
    %cst_116 = arith.constant dense<0.000000e+00> : vector<16x32xf32>
    %323 = tpu.matmul %312, %322, %cst_116 {dimension_numbers = #tpu.dot_dimension_numbers<[1], [0], [0], [1], [0, 0, 1, 1], [], []>} : vector<16x32xbf16>, vector<32x32xbf16>, vector<16x32xf32> -> vector<16x32xf32>
    %c1_117 = arith.constant 1 : index
    %c0_118 = arith.constant 0 : index
    %c0_119 = arith.constant 0 : index
    %324 = vector.load %arg9[%c1_117, %c0_118, %c0_119] : memref<3x1x32xf32, #tpu.memory_space<vmem>>, vector<1x1x32xf32>
    %325 = vector.shape_cast %324 : vector<1x1x32xf32> to vector<1x32xf32>
    %326 = vector.broadcast %325 : vector<1x32xf32> to vector<16x32xf32>
    %327 = arith.addf %323, %326 : vector<16x32xf32>
    %328 = vector.shape_cast %327 : vector<16x32xf32> to vector<2x8x32xf32>
    %c2_120 = arith.constant 2 : index
    %c0_121 = arith.constant 0 : index
    %c0_122 = arith.constant 0 : index
    %329 = vector.load %arg7[%c2_120, %c0_121, %c0_122] : memref<3x32x32xbf16, #tpu.memory_space<vmem>>, vector<1x32x32xbf16>
    %330 = vector.shape_cast %329 : vector<1x32x32xbf16> to vector<32x32xbf16>
    %cst_123 = arith.constant dense<0.000000e+00> : vector<16x32xf32>
    %331 = tpu.matmul %312, %330, %cst_123 {dimension_numbers = #tpu.dot_dimension_numbers<[1], [0], [0], [1], [0, 0, 1, 1], [], []>} : vector<16x32xbf16>, vector<32x32xbf16>, vector<16x32xf32> -> vector<16x32xf32>
    %c2_124 = arith.constant 2 : index
    %c0_125 = arith.constant 0 : index
    %c0_126 = arith.constant 0 : index
    %332 = vector.load %arg9[%c2_124, %c0_125, %c0_126] : memref<3x1x32xf32, #tpu.memory_space<vmem>>, vector<1x1x32xf32>
    %333 = vector.shape_cast %332 : vector<1x1x32xf32> to vector<1x32xf32>
    %334 = vector.broadcast %333 : vector<1x32xf32> to vector<16x32xf32>
    %335 = arith.addf %331, %334 : vector<16x32xf32>
    %336 = vector.shape_cast %335 : vector<16x32xf32> to vector<2x8x32xf32>
    %c0_127 = arith.constant 0 : index
    %c0_128 = arith.constant 0 : index
    %c0_129 = arith.constant 0 : index
    %337 = vector.load %arg8[%c0_127, %c0_128, %c0_129] : memref<3x32x32xbf16, #tpu.memory_space<vmem>>, vector<1x32x32xbf16>
    %338 = vector.shape_cast %337 : vector<1x32x32xbf16> to vector<32x32xbf16>
    %c1_130 = arith.constant 1 : index
    %c0_131 = arith.constant 0 : index
    %c0_132 = arith.constant 0 : index
    %339 = vector.load %arg8[%c1_130, %c0_131, %c0_132] : memref<3x32x32xbf16, #tpu.memory_space<vmem>>, vector<1x32x32xbf16>
    %340 = vector.shape_cast %339 : vector<1x32x32xbf16> to vector<32x32xbf16>
    %c2_133 = arith.constant 2 : index
    %c0_134 = arith.constant 0 : index
    %c0_135 = arith.constant 0 : index
    %341 = vector.load %arg8[%c2_133, %c0_134, %c0_135] : memref<3x32x32xbf16, #tpu.memory_space<vmem>>, vector<1x32x32xbf16>
    %342 = vector.shape_cast %341 : vector<1x32x32xbf16> to vector<32x32xbf16>
    %c0_136 = arith.constant 0 : index
    %c0_137 = arith.constant 0 : index
    %343 = vector.load %arg10[%c0_136, %c0_137] : memref<1x32xf32, #tpu.memory_space<vmem>>, vector<1x32xf32>
    %c1_138 = arith.constant 1 : index
    %c0_139 = arith.constant 0 : index
    %c0_140 = arith.constant 0 : index
    %344 = vector.load %arg2[%c1_138, %c0_139, %c0_140] : memref<2x2x32xf32, #tpu.memory_space<vmem>>, vector<1x2x32xf32>
    %345 = vector.shape_cast %344 : vector<1x2x32xf32> to vector<2x32xf32>
    %346 = arith.truncf %345 : vector<2x32xf32> to vector<2x32xbf16>
    %347 = vector.extract_strided_slice %320 {offsets = [0, 0, 0], sizes = [2, 1, 32], strides = [1, 1, 1]} : vector<2x8x32xf32> to vector<2x1x32xf32>
    %348 = vector.shape_cast %347 : vector<2x1x32xf32> to vector<2x32xf32>
    %cst_141 = arith.constant dense<0.000000e+00> : vector<2x32xf32>
    %349 = tpu.matmul %346, %338, %cst_141 {dimension_numbers = #tpu.dot_dimension_numbers<[1], [0], [0], [1], [0, 0, 1, 1], [], []>} : vector<2x32xbf16>, vector<32x32xbf16>, vector<2x32xf32> -> vector<2x32xf32>
    %350 = arith.addf %348, %349 : vector<2x32xf32>
    %351 = vector.extract_strided_slice %328 {offsets = [0, 0, 0], sizes = [2, 1, 32], strides = [1, 1, 1]} : vector<2x8x32xf32> to vector<2x1x32xf32>
    %352 = vector.shape_cast %351 : vector<2x1x32xf32> to vector<2x32xf32>
    %cst_142 = arith.constant dense<0.000000e+00> : vector<2x32xf32>
    %353 = tpu.matmul %346, %340, %cst_142 {dimension_numbers = #tpu.dot_dimension_numbers<[1], [0], [0], [1], [0, 0, 1, 1], [], []>} : vector<2x32xbf16>, vector<32x32xbf16>, vector<2x32xf32> -> vector<2x32xf32>
    %354 = arith.addf %352, %353 : vector<2x32xf32>
    %cst_143 = arith.constant dense<0.000000e+00> : vector<2x32xf32>
    %355 = tpu.matmul %346, %342, %cst_143 {dimension_numbers = #tpu.dot_dimension_numbers<[1], [0], [0], [1], [0, 0, 1, 1], [], []>} : vector<2x32xbf16>, vector<32x32xbf16>, vector<2x32xf32> -> vector<2x32xf32>
    %356 = vector.broadcast %343 : vector<1x32xf32> to vector<2x32xf32>
    %357 = arith.addf %355, %356 : vector<2x32xf32>
    %358 = arith.negf %350 : vector<2x32xf32>
    %359 = math.exp %358 : vector<2x32xf32>
    %cst_144 = arith.constant 1.000000e+00 : f32
    %360 = vector.broadcast %cst_144 : f32 to vector<2x32xf32>
    %361 = arith.addf %360, %359 : vector<2x32xf32>
    %362 = arith.divf %360, %361 : vector<2x32xf32>
    %363 = arith.negf %354 : vector<2x32xf32>
    %364 = math.exp %363 : vector<2x32xf32>
    %cst_145 = arith.constant 1.000000e+00 : f32
    %365 = vector.broadcast %cst_145 : f32 to vector<2x32xf32>
    %366 = arith.addf %365, %364 : vector<2x32xf32>
    %367 = arith.divf %365, %366 : vector<2x32xf32>
    %368 = vector.extract_strided_slice %336 {offsets = [0, 0, 0], sizes = [2, 1, 32], strides = [1, 1, 1]} : vector<2x8x32xf32> to vector<2x1x32xf32>
    %369 = vector.shape_cast %368 : vector<2x1x32xf32> to vector<2x32xf32>
    %370 = arith.mulf %362, %357 : vector<2x32xf32>
    %371 = arith.addf %369, %370 : vector<2x32xf32>
    %372 = math.tanh %371 : vector<2x32xf32>
    %cst_146 = arith.constant 1.000000e+00 : f32
    %373 = vector.broadcast %cst_146 : f32 to vector<2x32xf32>
    %374 = arith.subf %373, %367 : vector<2x32xf32>
    %375 = arith.mulf %374, %372 : vector<2x32xf32>
    %376 = arith.mulf %367, %345 : vector<2x32xf32>
    %377 = arith.addf %375, %376 : vector<2x32xf32>
    %378 = vector.shape_cast %377 : vector<2x32xf32> to vector<2x1x32xf32>
    %c0_147 = arith.constant 0 : index
    %c0_148 = arith.constant 0 : index
    %c0_149 = arith.constant 0 : index
    %379 = vector.load %arg16[%c0_147, %c0_148, %c0_149] : memref<2x8x32xf32, #tpu.memory_space<vmem>>, vector<2x1x32xf32>
    tpu.vector_store %arg16[%c0_147, %c0_148, %c0_149], %378 {strides = array<i32>} : memref<2x8x32xf32, #tpu.memory_space<vmem>>, vector<2x1x32xf32>,
    %380 = arith.truncf %377 : vector<2x32xf32> to vector<2x32xbf16>
    %381 = vector.extract_strided_slice %320 {offsets = [0, 1, 0], sizes = [2, 1, 32], strides = [1, 1, 1]} : vector<2x8x32xf32> to vector<2x1x32xf32>
    %382 = vector.shape_cast %381 : vector<2x1x32xf32> to vector<2x32xf32>
    %cst_150 = arith.constant dense<0.000000e+00> : vector<2x32xf32>
    %383 = tpu.matmul %380, %338, %cst_150 {dimension_numbers = #tpu.dot_dimension_numbers<[1], [0], [0], [1], [0, 0, 1, 1], [], []>} : vector<2x32xbf16>, vector<32x32xbf16>, vector<2x32xf32> -> vector<2x32xf32>
    %384 = arith.addf %382, %383 : vector<2x32xf32>
    %385 = vector.extract_strided_slice %328 {offsets = [0, 1, 0], sizes = [2, 1, 32], strides = [1, 1, 1]} : vector<2x8x32xf32> to vector<2x1x32xf32>
    %386 = vector.shape_cast %385 : vector<2x1x32xf32> to vector<2x32xf32>
    %cst_151 = arith.constant dense<0.000000e+00> : vector<2x32xf32>
    %387 = tpu.matmul %380, %340, %cst_151 {dimension_numbers = #tpu.dot_dimension_numbers<[1], [0], [0], [1], [0, 0, 1, 1], [], []>} : vector<2x32xbf16>, vector<32x32xbf16>, vector<2x32xf32> -> vector<2x32xf32>
    %388 = arith.addf %386, %387 : vector<2x32xf32>
    %cst_152 = arith.constant dense<0.000000e+00> : vector<2x32xf32>
    %389 = tpu.matmul %380, %342, %cst_152 {dimension_numbers = #tpu.dot_dimension_numbers<[1], [0], [0], [1], [0, 0, 1, 1], [], []>} : vector<2x32xbf16>, vector<32x32xbf16>, vector<2x32xf32> -> vector<2x32xf32>
    %390 = vector.broadcast %343 : vector<1x32xf32> to vector<2x32xf32>
    %391 = arith.addf %389, %390 : vector<2x32xf32>
    %392 = arith.negf %384 : vector<2x32xf32>
    %393 = math.exp %392 : vector<2x32xf32>
    %cst_153 = arith.constant 1.000000e+00 : f32
    %394 = vector.broadcast %cst_153 : f32 to vector<2x32xf32>
    %395 = arith.addf %394, %393 : vector<2x32xf32>
    %396 = arith.divf %394, %395 : vector<2x32xf32>
    %397 = arith.negf %388 : vector<2x32xf32>
    %398 = math.exp %397 : vector<2x32xf32>
    %cst_154 = arith.constant 1.000000e+00 : f32
    %399 = vector.broadcast %cst_154 : f32 to vector<2x32xf32>
    %400 = arith.addf %399, %398 : vector<2x32xf32>
    %401 = arith.divf %399, %400 : vector<2x32xf32>
    %402 = vector.extract_strided_slice %336 {offsets = [0, 1, 0], sizes = [2, 1, 32], strides = [1, 1, 1]} : vector<2x8x32xf32> to vector<2x1x32xf32>
    %403 = vector.shape_cast %402 : vector<2x1x32xf32> to vector<2x32xf32>
    %404 = arith.mulf %396, %391 : vector<2x32xf32>
    %405 = arith.addf %403, %404 : vector<2x32xf32>
    %406 = math.tanh %405 : vector<2x32xf32>
    %cst_155 = arith.constant 1.000000e+00 : f32
    %407 = vector.broadcast %cst_155 : f32 to vector<2x32xf32>
    %408 = arith.subf %407, %401 : vector<2x32xf32>
    %409 = arith.mulf %408, %406 : vector<2x32xf32>
    %410 = arith.mulf %401, %377 : vector<2x32xf32>
    %411 = arith.addf %409, %410 : vector<2x32xf32>
    %412 = vector.shape_cast %411 : vector<2x32xf32> to vector<2x1x32xf32>
    %c0_156 = arith.constant 0 : index
    %c1_157 = arith.constant 1 : index
    %c0_158 = arith.constant 0 : index
    %413 = vector.load %arg16[%c0_156, %c1_157, %c0_158] : memref<2x8x32xf32, #tpu.memory_space<vmem>>, vector<2x1x32xf32>
    tpu.vector_store %arg16[%c0_156, %c1_157, %c0_158], %412 {strides = array<i32>} : memref<2x8x32xf32, #tpu.memory_space<vmem>>, vector<2x1x32xf32>,
    %414 = arith.truncf %411 : vector<2x32xf32> to vector<2x32xbf16>
    %415 = vector.extract_strided_slice %320 {offsets = [0, 2, 0], sizes = [2, 1, 32], strides = [1, 1, 1]} : vector<2x8x32xf32> to vector<2x1x32xf32>
    %416 = vector.shape_cast %415 : vector<2x1x32xf32> to vector<2x32xf32>
    %cst_159 = arith.constant dense<0.000000e+00> : vector<2x32xf32>
    %417 = tpu.matmul %414, %338, %cst_159 {dimension_numbers = #tpu.dot_dimension_numbers<[1], [0], [0], [1], [0, 0, 1, 1], [], []>} : vector<2x32xbf16>, vector<32x32xbf16>, vector<2x32xf32> -> vector<2x32xf32>
    %418 = arith.addf %416, %417 : vector<2x32xf32>
    %419 = vector.extract_strided_slice %328 {offsets = [0, 2, 0], sizes = [2, 1, 32], strides = [1, 1, 1]} : vector<2x8x32xf32> to vector<2x1x32xf32>
    %420 = vector.shape_cast %419 : vector<2x1x32xf32> to vector<2x32xf32>
    %cst_160 = arith.constant dense<0.000000e+00> : vector<2x32xf32>
    %421 = tpu.matmul %414, %340, %cst_160 {dimension_numbers = #tpu.dot_dimension_numbers<[1], [0], [0], [1], [0, 0, 1, 1], [], []>} : vector<2x32xbf16>, vector<32x32xbf16>, vector<2x32xf32> -> vector<2x32xf32>
    %422 = arith.addf %420, %421 : vector<2x32xf32>
    %cst_161 = arith.constant dense<0.000000e+00> : vector<2x32xf32>
    %423 = tpu.matmul %414, %342, %cst_161 {dimension_numbers = #tpu.dot_dimension_numbers<[1], [0], [0], [1], [0, 0, 1, 1], [], []>} : vector<2x32xbf16>, vector<32x32xbf16>, vector<2x32xf32> -> vector<2x32xf32>
    %424 = vector.broadcast %343 : vector<1x32xf32> to vector<2x32xf32>
    %425 = arith.addf %423, %424 : vector<2x32xf32>
    %426 = arith.negf %418 : vector<2x32xf32>
    %427 = math.exp %426 : vector<2x32xf32>
    %cst_162 = arith.constant 1.000000e+00 : f32
    %428 = vector.broadcast %cst_162 : f32 to vector<2x32xf32>
    %429 = arith.addf %428, %427 : vector<2x32xf32>
    %430 = arith.divf %428, %429 : vector<2x32xf32>
    %431 = arith.negf %422 : vector<2x32xf32>
    %432 = math.exp %431 : vector<2x32xf32>
    %cst_163 = arith.constant 1.000000e+00 : f32
    %433 = vector.broadcast %cst_163 : f32 to vector<2x32xf32>
    %434 = arith.addf %433, %432 : vector<2x32xf32>
    %435 = arith.divf %433, %434 : vector<2x32xf32>
    %436 = vector.extract_strided_slice %336 {offsets = [0, 2, 0], sizes = [2, 1, 32], strides = [1, 1, 1]} : vector<2x8x32xf32> to vector<2x1x32xf32>
    %437 = vector.shape_cast %436 : vector<2x1x32xf32> to vector<2x32xf32>
    %438 = arith.mulf %430, %425 : vector<2x32xf32>
    %439 = arith.addf %437, %438 : vector<2x32xf32>
    %440 = math.tanh %439 : vector<2x32xf32>
    %cst_164 = arith.constant 1.000000e+00 : f32
    %441 = vector.broadcast %cst_164 : f32 to vector<2x32xf32>
    %442 = arith.subf %441, %435 : vector<2x32xf32>
    %443 = arith.mulf %442, %440 : vector<2x32xf32>
    %444 = arith.mulf %435, %411 : vector<2x32xf32>
    %445 = arith.addf %443, %444 : vector<2x32xf32>
    %446 = vector.shape_cast %445 : vector<2x32xf32> to vector<2x1x32xf32>
    %c0_165 = arith.constant 0 : index
    %c2_166 = arith.constant 2 : index
    %c0_167 = arith.constant 0 : index
    %447 = vector.load %arg16[%c0_165, %c2_166, %c0_167] : memref<2x8x32xf32, #tpu.memory_space<vmem>>, vector<2x1x32xf32>
    tpu.vector_store %arg16[%c0_165, %c2_166, %c0_167], %446 {strides = array<i32>} : memref<2x8x32xf32, #tpu.memory_space<vmem>>, vector<2x1x32xf32>,
    %448 = arith.truncf %445 : vector<2x32xf32> to vector<2x32xbf16>
    %449 = vector.extract_strided_slice %320 {offsets = [0, 3, 0], sizes = [2, 1, 32], strides = [1, 1, 1]} : vector<2x8x32xf32> to vector<2x1x32xf32>
    %450 = vector.shape_cast %449 : vector<2x1x32xf32> to vector<2x32xf32>
    %cst_168 = arith.constant dense<0.000000e+00> : vector<2x32xf32>
    %451 = tpu.matmul %448, %338, %cst_168 {dimension_numbers = #tpu.dot_dimension_numbers<[1], [0], [0], [1], [0, 0, 1, 1], [], []>} : vector<2x32xbf16>, vector<32x32xbf16>, vector<2x32xf32> -> vector<2x32xf32>
    %452 = arith.addf %450, %451 : vector<2x32xf32>
    %453 = vector.extract_strided_slice %328 {offsets = [0, 3, 0], sizes = [2, 1, 32], strides = [1, 1, 1]} : vector<2x8x32xf32> to vector<2x1x32xf32>
    %454 = vector.shape_cast %453 : vector<2x1x32xf32> to vector<2x32xf32>
    %cst_169 = arith.constant dense<0.000000e+00> : vector<2x32xf32>
    %455 = tpu.matmul %448, %340, %cst_169 {dimension_numbers = #tpu.dot_dimension_numbers<[1], [0], [0], [1], [0, 0, 1, 1], [], []>} : vector<2x32xbf16>, vector<32x32xbf16>, vector<2x32xf32> -> vector<2x32xf32>
    %456 = arith.addf %454, %455 : vector<2x32xf32>
    %cst_170 = arith.constant dense<0.000000e+00> : vector<2x32xf32>
    %457 = tpu.matmul %448, %342, %cst_170 {dimension_numbers = #tpu.dot_dimension_numbers<[1], [0], [0], [1], [0, 0, 1, 1], [], []>} : vector<2x32xbf16>, vector<32x32xbf16>, vector<2x32xf32> -> vector<2x32xf32>
    %458 = vector.broadcast %343 : vector<1x32xf32> to vector<2x32xf32>
    %459 = arith.addf %457, %458 : vector<2x32xf32>
    %460 = arith.negf %452 : vector<2x32xf32>
    %461 = math.exp %460 : vector<2x32xf32>
    %cst_171 = arith.constant 1.000000e+00 : f32
    %462 = vector.broadcast %cst_171 : f32 to vector<2x32xf32>
    %463 = arith.addf %462, %461 : vector<2x32xf32>
    %464 = arith.divf %462, %463 : vector<2x32xf32>
    %465 = arith.negf %456 : vector<2x32xf32>
    %466 = math.exp %465 : vector<2x32xf32>
    %cst_172 = arith.constant 1.000000e+00 : f32
    %467 = vector.broadcast %cst_172 : f32 to vector<2x32xf32>
    %468 = arith.addf %467, %466 : vector<2x32xf32>
    %469 = arith.divf %467, %468 : vector<2x32xf32>
    %470 = vector.extract_strided_slice %336 {offsets = [0, 3, 0], sizes = [2, 1, 32], strides = [1, 1, 1]} : vector<2x8x32xf32> to vector<2x1x32xf32>
    %471 = vector.shape_cast %470 : vector<2x1x32xf32> to vector<2x32xf32>
    %472 = arith.mulf %464, %459 : vector<2x32xf32>
    %473 = arith.addf %471, %472 : vector<2x32xf32>
    %474 = math.tanh %473 : vector<2x32xf32>
    %cst_173 = arith.constant 1.000000e+00 : f32
    %475 = vector.broadcast %cst_173 : f32 to vector<2x32xf32>
    %476 = arith.subf %475, %469 : vector<2x32xf32>
    %477 = arith.mulf %476, %474 : vector<2x32xf32>
    %478 = arith.mulf %469, %445 : vector<2x32xf32>
    %479 = arith.addf %477, %478 : vector<2x32xf32>
    %480 = vector.shape_cast %479 : vector<2x32xf32> to vector<2x1x32xf32>
    %c0_174 = arith.constant 0 : index
    %c3_175 = arith.constant 3 : index
    %c0_176 = arith.constant 0 : index
    %481 = vector.load %arg16[%c0_174, %c3_175, %c0_176] : memref<2x8x32xf32, #tpu.memory_space<vmem>>, vector<2x1x32xf32>
    tpu.vector_store %arg16[%c0_174, %c3_175, %c0_176], %480 {strides = array<i32>} : memref<2x8x32xf32, #tpu.memory_space<vmem>>, vector<2x1x32xf32>,
    %482 = arith.truncf %479 : vector<2x32xf32> to vector<2x32xbf16>
    %483 = vector.extract_strided_slice %320 {offsets = [0, 4, 0], sizes = [2, 1, 32], strides = [1, 1, 1]} : vector<2x8x32xf32> to vector<2x1x32xf32>
    %484 = vector.shape_cast %483 : vector<2x1x32xf32> to vector<2x32xf32>
    %cst_177 = arith.constant dense<0.000000e+00> : vector<2x32xf32>
    %485 = tpu.matmul %482, %338, %cst_177 {dimension_numbers = #tpu.dot_dimension_numbers<[1], [0], [0], [1], [0, 0, 1, 1], [], []>} : vector<2x32xbf16>, vector<32x32xbf16>, vector<2x32xf32> -> vector<2x32xf32>
    %486 = arith.addf %484, %485 : vector<2x32xf32>
    %487 = vector.extract_strided_slice %328 {offsets = [0, 4, 0], sizes = [2, 1, 32], strides = [1, 1, 1]} : vector<2x8x32xf32> to vector<2x1x32xf32>
    %488 = vector.shape_cast %487 : vector<2x1x32xf32> to vector<2x32xf32>
    %cst_178 = arith.constant dense<0.000000e+00> : vector<2x32xf32>
    %489 = tpu.matmul %482, %340, %cst_178 {dimension_numbers = #tpu.dot_dimension_numbers<[1], [0], [0], [1], [0, 0, 1, 1], [], []>} : vector<2x32xbf16>, vector<32x32xbf16>, vector<2x32xf32> -> vector<2x32xf32>
    %490 = arith.addf %488, %489 : vector<2x32xf32>
    %cst_179 = arith.constant dense<0.000000e+00> : vector<2x32xf32>
    %491 = tpu.matmul %482, %342, %cst_179 {dimension_numbers = #tpu.dot_dimension_numbers<[1], [0], [0], [1], [0, 0, 1, 1], [], []>} : vector<2x32xbf16>, vector<32x32xbf16>, vector<2x32xf32> -> vector<2x32xf32>
    %492 = vector.broadcast %343 : vector<1x32xf32> to vector<2x32xf32>
    %493 = arith.addf %491, %492 : vector<2x32xf32>
    %494 = arith.negf %486 : vector<2x32xf32>
    %495 = math.exp %494 : vector<2x32xf32>
    %cst_180 = arith.constant 1.000000e+00 : f32
    %496 = vector.broadcast %cst_180 : f32 to vector<2x32xf32>
    %497 = arith.addf %496, %495 : vector<2x32xf32>
    %498 = arith.divf %496, %497 : vector<2x32xf32>
    %499 = arith.negf %490 : vector<2x32xf32>
    %500 = math.exp %499 : vector<2x32xf32>
    %cst_181 = arith.constant 1.000000e+00 : f32
    %501 = vector.broadcast %cst_181 : f32 to vector<2x32xf32>
    %502 = arith.addf %501, %500 : vector<2x32xf32>
    %503 = arith.divf %501, %502 : vector<2x32xf32>
    %504 = vector.extract_strided_slice %336 {offsets = [0, 4, 0], sizes = [2, 1, 32], strides = [1, 1, 1]} : vector<2x8x32xf32> to vector<2x1x32xf32>
    %505 = vector.shape_cast %504 : vector<2x1x32xf32> to vector<2x32xf32>
    %506 = arith.mulf %498, %493 : vector<2x32xf32>
    %507 = arith.addf %505, %506 : vector<2x32xf32>
    %508 = math.tanh %507 : vector<2x32xf32>
    %cst_182 = arith.constant 1.000000e+00 : f32
    %509 = vector.broadcast %cst_182 : f32 to vector<2x32xf32>
    %510 = arith.subf %509, %503 : vector<2x32xf32>
    %511 = arith.mulf %510, %508 : vector<2x32xf32>
    %512 = arith.mulf %503, %479 : vector<2x32xf32>
    %513 = arith.addf %511, %512 : vector<2x32xf32>
    %514 = vector.shape_cast %513 : vector<2x32xf32> to vector<2x1x32xf32>
    %c0_183 = arith.constant 0 : index
    %c4_184 = arith.constant 4 : index
    %c0_185 = arith.constant 0 : index
    %515 = vector.load %arg16[%c0_183, %c4_184, %c0_185] : memref<2x8x32xf32, #tpu.memory_space<vmem>>, vector<2x1x32xf32>
    tpu.vector_store %arg16[%c0_183, %c4_184, %c0_185], %514 {strides = array<i32>} : memref<2x8x32xf32, #tpu.memory_space<vmem>>, vector<2x1x32xf32>,
    %516 = arith.truncf %513 : vector<2x32xf32> to vector<2x32xbf16>
    %517 = vector.extract_strided_slice %320 {offsets = [0, 5, 0], sizes = [2, 1, 32], strides = [1, 1, 1]} : vector<2x8x32xf32> to vector<2x1x32xf32>
    %518 = vector.shape_cast %517 : vector<2x1x32xf32> to vector<2x32xf32>
    %cst_186 = arith.constant dense<0.000000e+00> : vector<2x32xf32>
    %519 = tpu.matmul %516, %338, %cst_186 {dimension_numbers = #tpu.dot_dimension_numbers<[1], [0], [0], [1], [0, 0, 1, 1], [], []>} : vector<2x32xbf16>, vector<32x32xbf16>, vector<2x32xf32> -> vector<2x32xf32>
    %520 = arith.addf %518, %519 : vector<2x32xf32>
    %521 = vector.extract_strided_slice %328 {offsets = [0, 5, 0], sizes = [2, 1, 32], strides = [1, 1, 1]} : vector<2x8x32xf32> to vector<2x1x32xf32>
    %522 = vector.shape_cast %521 : vector<2x1x32xf32> to vector<2x32xf32>
    %cst_187 = arith.constant dense<0.000000e+00> : vector<2x32xf32>
    %523 = tpu.matmul %516, %340, %cst_187 {dimension_numbers = #tpu.dot_dimension_numbers<[1], [0], [0], [1], [0, 0, 1, 1], [], []>} : vector<2x32xbf16>, vector<32x32xbf16>, vector<2x32xf32> -> vector<2x32xf32>
    %524 = arith.addf %522, %523 : vector<2x32xf32>
    %cst_188 = arith.constant dense<0.000000e+00> : vector<2x32xf32>
    %525 = tpu.matmul %516, %342, %cst_188 {dimension_numbers = #tpu.dot_dimension_numbers<[1], [0], [0], [1], [0, 0, 1, 1], [], []>} : vector<2x32xbf16>, vector<32x32xbf16>, vector<2x32xf32> -> vector<2x32xf32>
    %526 = vector.broadcast %343 : vector<1x32xf32> to vector<2x32xf32>
    %527 = arith.addf %525, %526 : vector<2x32xf32>
    %528 = arith.negf %520 : vector<2x32xf32>
    %529 = math.exp %528 : vector<2x32xf32>
    %cst_189 = arith.constant 1.000000e+00 : f32
    %530 = vector.broadcast %cst_189 : f32 to vector<2x32xf32>
    %531 = arith.addf %530, %529 : vector<2x32xf32>
    %532 = arith.divf %530, %531 : vector<2x32xf32>
    %533 = arith.negf %524 : vector<2x32xf32>
    %534 = math.exp %533 : vector<2x32xf32>
    %cst_190 = arith.constant 1.000000e+00 : f32
    %535 = vector.broadcast %cst_190 : f32 to vector<2x32xf32>
    %536 = arith.addf %535, %534 : vector<2x32xf32>
    %537 = arith.divf %535, %536 : vector<2x32xf32>
    %538 = vector.extract_strided_slice %336 {offsets = [0, 5, 0], sizes = [2, 1, 32], strides = [1, 1, 1]} : vector<2x8x32xf32> to vector<2x1x32xf32>
    %539 = vector.shape_cast %538 : vector<2x1x32xf32> to vector<2x32xf32>
    %540 = arith.mulf %532, %527 : vector<2x32xf32>
    %541 = arith.addf %539, %540 : vector<2x32xf32>
    %542 = math.tanh %541 : vector<2x32xf32>
    %cst_191 = arith.constant 1.000000e+00 : f32
    %543 = vector.broadcast %cst_191 : f32 to vector<2x32xf32>
    %544 = arith.subf %543, %537 : vector<2x32xf32>
    %545 = arith.mulf %544, %542 : vector<2x32xf32>
    %546 = arith.mulf %537, %513 : vector<2x32xf32>
    %547 = arith.addf %545, %546 : vector<2x32xf32>
    %548 = vector.shape_cast %547 : vector<2x32xf32> to vector<2x1x32xf32>
    %c0_192 = arith.constant 0 : index
    %c5_193 = arith.constant 5 : index
    %c0_194 = arith.constant 0 : index
    %549 = vector.load %arg16[%c0_192, %c5_193, %c0_194] : memref<2x8x32xf32, #tpu.memory_space<vmem>>, vector<2x1x32xf32>
    tpu.vector_store %arg16[%c0_192, %c5_193, %c0_194], %548 {strides = array<i32>} : memref<2x8x32xf32, #tpu.memory_space<vmem>>, vector<2x1x32xf32>,
    %550 = arith.truncf %547 : vector<2x32xf32> to vector<2x32xbf16>
    %551 = vector.extract_strided_slice %320 {offsets = [0, 6, 0], sizes = [2, 1, 32], strides = [1, 1, 1]} : vector<2x8x32xf32> to vector<2x1x32xf32>
    %552 = vector.shape_cast %551 : vector<2x1x32xf32> to vector<2x32xf32>
    %cst_195 = arith.constant dense<0.000000e+00> : vector<2x32xf32>
    %553 = tpu.matmul %550, %338, %cst_195 {dimension_numbers = #tpu.dot_dimension_numbers<[1], [0], [0], [1], [0, 0, 1, 1], [], []>} : vector<2x32xbf16>, vector<32x32xbf16>, vector<2x32xf32> -> vector<2x32xf32>
    %554 = arith.addf %552, %553 : vector<2x32xf32>
    %555 = vector.extract_strided_slice %328 {offsets = [0, 6, 0], sizes = [2, 1, 32], strides = [1, 1, 1]} : vector<2x8x32xf32> to vector<2x1x32xf32>
    %556 = vector.shape_cast %555 : vector<2x1x32xf32> to vector<2x32xf32>
    %cst_196 = arith.constant dense<0.000000e+00> : vector<2x32xf32>
    %557 = tpu.matmul %550, %340, %cst_196 {dimension_numbers = #tpu.dot_dimension_numbers<[1], [0], [0], [1], [0, 0, 1, 1], [], []>} : vector<2x32xbf16>, vector<32x32xbf16>, vector<2x32xf32> -> vector<2x32xf32>
    %558 = arith.addf %556, %557 : vector<2x32xf32>
    %cst_197 = arith.constant dense<0.000000e+00> : vector<2x32xf32>
    %559 = tpu.matmul %550, %342, %cst_197 {dimension_numbers = #tpu.dot_dimension_numbers<[1], [0], [0], [1], [0, 0, 1, 1], [], []>} : vector<2x32xbf16>, vector<32x32xbf16>, vector<2x32xf32> -> vector<2x32xf32>
    %560 = vector.broadcast %343 : vector<1x32xf32> to vector<2x32xf32>
    %561 = arith.addf %559, %560 : vector<2x32xf32>
    %562 = arith.negf %554 : vector<2x32xf32>
    %563 = math.exp %562 : vector<2x32xf32>
    %cst_198 = arith.constant 1.000000e+00 : f32
    %564 = vector.broadcast %cst_198 : f32 to vector<2x32xf32>
    %565 = arith.addf %564, %563 : vector<2x32xf32>
    %566 = arith.divf %564, %565 : vector<2x32xf32>
    %567 = arith.negf %558 : vector<2x32xf32>
    %568 = math.exp %567 : vector<2x32xf32>
    %cst_199 = arith.constant 1.000000e+00 : f32
    %569 = vector.broadcast %cst_199 : f32 to vector<2x32xf32>
    %570 = arith.addf %569, %568 : vector<2x32xf32>
    %571 = arith.divf %569, %570 : vector<2x32xf32>
    %572 = vector.extract_strided_slice %336 {offsets = [0, 6, 0], sizes = [2, 1, 32], strides = [1, 1, 1]} : vector<2x8x32xf32> to vector<2x1x32xf32>
    %573 = vector.shape_cast %572 : vector<2x1x32xf32> to vector<2x32xf32>
    %574 = arith.mulf %566, %561 : vector<2x32xf32>
    %575 = arith.addf %573, %574 : vector<2x32xf32>
    %576 = math.tanh %575 : vector<2x32xf32>
    %cst_200 = arith.constant 1.000000e+00 : f32
    %577 = vector.broadcast %cst_200 : f32 to vector<2x32xf32>
    %578 = arith.subf %577, %571 : vector<2x32xf32>
    %579 = arith.mulf %578, %576 : vector<2x32xf32>
    %580 = arith.mulf %571, %547 : vector<2x32xf32>
    %581 = arith.addf %579, %580 : vector<2x32xf32>
    %582 = vector.shape_cast %581 : vector<2x32xf32> to vector<2x1x32xf32>
    %c0_201 = arith.constant 0 : index
    %c6_202 = arith.constant 6 : index
    %c0_203 = arith.constant 0 : index
    %583 = vector.load %arg16[%c0_201, %c6_202, %c0_203] : memref<2x8x32xf32, #tpu.memory_space<vmem>>, vector<2x1x32xf32>
    tpu.vector_store %arg16[%c0_201, %c6_202, %c0_203], %582 {strides = array<i32>} : memref<2x8x32xf32, #tpu.memory_space<vmem>>, vector<2x1x32xf32>,
    %584 = arith.truncf %581 : vector<2x32xf32> to vector<2x32xbf16>
    %585 = vector.extract_strided_slice %320 {offsets = [0, 7, 0], sizes = [2, 1, 32], strides = [1, 1, 1]} : vector<2x8x32xf32> to vector<2x1x32xf32>
    %586 = vector.shape_cast %585 : vector<2x1x32xf32> to vector<2x32xf32>
    %cst_204 = arith.constant dense<0.000000e+00> : vector<2x32xf32>
    %587 = tpu.matmul %584, %338, %cst_204 {dimension_numbers = #tpu.dot_dimension_numbers<[1], [0], [0], [1], [0, 0, 1, 1], [], []>} : vector<2x32xbf16>, vector<32x32xbf16>, vector<2x32xf32> -> vector<2x32xf32>
    %588 = arith.addf %586, %587 : vector<2x32xf32>
    %589 = vector.extract_strided_slice %328 {offsets = [0, 7, 0], sizes = [2, 1, 32], strides = [1, 1, 1]} : vector<2x8x32xf32> to vector<2x1x32xf32>
    %590 = vector.shape_cast %589 : vector<2x1x32xf32> to vector<2x32xf32>
    %cst_205 = arith.constant dense<0.000000e+00> : vector<2x32xf32>
    %591 = tpu.matmul %584, %340, %cst_205 {dimension_numbers = #tpu.dot_dimension_numbers<[1], [0], [0], [1], [0, 0, 1, 1], [], []>} : vector<2x32xbf16>, vector<32x32xbf16>, vector<2x32xf32> -> vector<2x32xf32>
    %592 = arith.addf %590, %591 : vector<2x32xf32>
    %cst_206 = arith.constant dense<0.000000e+00> : vector<2x32xf32>
    %593 = tpu.matmul %584, %342, %cst_206 {dimension_numbers = #tpu.dot_dimension_numbers<[1], [0], [0], [1], [0, 0, 1, 1], [], []>} : vector<2x32xbf16>, vector<32x32xbf16>, vector<2x32xf32> -> vector<2x32xf32>
    %594 = vector.broadcast %343 : vector<1x32xf32> to vector<2x32xf32>
    %595 = arith.addf %593, %594 : vector<2x32xf32>
    %596 = arith.negf %588 : vector<2x32xf32>
    %597 = math.exp %596 : vector<2x32xf32>
    %cst_207 = arith.constant 1.000000e+00 : f32
    %598 = vector.broadcast %cst_207 : f32 to vector<2x32xf32>
    %599 = arith.addf %598, %597 : vector<2x32xf32>
    %600 = arith.divf %598, %599 : vector<2x32xf32>
    %601 = arith.negf %592 : vector<2x32xf32>
    %602 = math.exp %601 : vector<2x32xf32>
    %cst_208 = arith.constant 1.000000e+00 : f32
    %603 = vector.broadcast %cst_208 : f32 to vector<2x32xf32>
    %604 = arith.addf %603, %602 : vector<2x32xf32>
    %605 = arith.divf %603, %604 : vector<2x32xf32>
    %606 = vector.extract_strided_slice %336 {offsets = [0, 7, 0], sizes = [2, 1, 32], strides = [1, 1, 1]} : vector<2x8x32xf32> to vector<2x1x32xf32>
    %607 = vector.shape_cast %606 : vector<2x1x32xf32> to vector<2x32xf32>
    %608 = arith.mulf %600, %595 : vector<2x32xf32>
    %609 = arith.addf %607, %608 : vector<2x32xf32>
    %610 = math.tanh %609 : vector<2x32xf32>
    %cst_209 = arith.constant 1.000000e+00 : f32
    %611 = vector.broadcast %cst_209 : f32 to vector<2x32xf32>
    %612 = arith.subf %611, %605 : vector<2x32xf32>
    %613 = arith.mulf %612, %610 : vector<2x32xf32>
    %614 = arith.mulf %605, %581 : vector<2x32xf32>
    %615 = arith.addf %613, %614 : vector<2x32xf32>
    %616 = vector.shape_cast %615 : vector<2x32xf32> to vector<2x1x32xf32>
    %c0_210 = arith.constant 0 : index
    %c7_211 = arith.constant 7 : index
    %c0_212 = arith.constant 0 : index
    %617 = vector.load %arg16[%c0_210, %c7_211, %c0_212] : memref<2x8x32xf32, #tpu.memory_space<vmem>>, vector<2x1x32xf32>
    tpu.vector_store %arg16[%c0_210, %c7_211, %c0_212], %616 {strides = array<i32>} : memref<2x8x32xf32, #tpu.memory_space<vmem>>, vector<2x1x32xf32>,
    %c1_213 = arith.constant 1 : index
    %c0_214 = arith.constant 0 : index
    %c0_215 = arith.constant 0 : index
    %618 = vector.load %arg14[%c1_213, %c0_214, %c0_215] : memref<2x2x32xf32, #tpu.memory_space<vmem>>, vector<1x2x32xf32>
    %619 = vector.shape_cast %618 : vector<1x2x32xf32> to vector<2x32xf32>
    %620 = vector.shape_cast %615 : vector<2x32xf32> to vector<1x2x32xf32>
    tpu.vector_store %arg14[%c1_213, %c0_214, %c0_215], %620 {strides = array<i32>} : memref<2x2x32xf32, #tpu.memory_space<vmem>>, vector<1x2x32xf32>,
    %c0_216 = arith.constant 0 : index
    %c0_217 = arith.constant 0 : index
    %c0_218 = arith.constant 0 : index
    %621 = vector.load %arg16[%c0_216, %c0_217, %c0_218] : memref<2x8x32xf32, #tpu.memory_space<vmem>>, vector<2x8x32xf32>
    %622 = vector.shape_cast %621 : vector<2x8x32xf32> to vector<16x32xf32>
    %623 = arith.truncf %622 : vector<16x32xf32> to vector<16x32xbf16>
    %c0_219 = arith.constant 0 : index
    %c0_220 = arith.constant 0 : index
    %624 = vector.load %arg11[%c0_219, %c0_220] : memref<32x16xbf16, #tpu.memory_space<vmem>>, vector<32x16xbf16>
    %cst_221 = arith.constant dense<0.000000e+00> : vector<16x16xf32>
    %625 = tpu.matmul %623, %624, %cst_221 {dimension_numbers = #tpu.dot_dimension_numbers<[1], [0], [0], [1], [0, 0, 1, 1], [], []>} : vector<16x32xbf16>, vector<32x16xbf16>, vector<16x16xf32> -> vector<16x16xf32>
    %c0_222 = arith.constant 0 : index
    %c0_223 = arith.constant 0 : index
    %626 = vector.load %arg12[%c0_222, %c0_223] : memref<1x16xf32, #tpu.memory_space<vmem>>, vector<1x16xf32>
    %627 = vector.broadcast %626 : vector<1x16xf32> to vector<16x16xf32>
    %628 = arith.addf %625, %627 : vector<16x16xf32>
    %c0_224 = arith.constant 0 : index
    %c0_225 = arith.constant 0 : index
    %629 = vector.load %arg13[%c0_224, %c0_225] : memref<16x16xf32, #tpu.memory_space<vmem>>, vector<16x16xf32>
    tpu.vector_store %arg13[%c0_224, %c0_225], %628 {strides = array<i32>} : memref<16x16xf32, #tpu.memory_space<vmem>>, vector<16x16xf32>,
    return
  }
  func.func @transform_0(%arg0: i32) -> (i32, i32) {
    %c0_i32 = arith.constant 0 : i32
    %c0_i32_0 = arith.constant 0 : i32
    %c0_i32_1 = arith.constant 0 : i32
    return %c0_i32, %c0_i32_0 : i32, i32
  }
  func.func @transform_1(%arg0: i32) -> (i32, i32, i32) {
    %c0_i32 = arith.constant 0 : i32
    %c0_i32_0 = arith.constant 0 : i32
    %c0_i32_1 = arith.constant 0 : i32
    %c0_i32_2 = arith.constant 0 : i32
    return %c0_i32, %c0_i32_0, %c0_i32_1 : i32, i32, i32
  }
  func.func @transform_2(%arg0: i32) -> (i32, i32, i32) {
    %c0_i32 = arith.constant 0 : i32
    %c0_i32_0 = arith.constant 0 : i32
    %c0_i32_1 = arith.constant 0 : i32
    %c0_i32_2 = arith.constant 0 : i32
    return %c0_i32, %c0_i32_0, %c0_i32_1 : i32, i32, i32
  }
  func.func @transform_3(%arg0: i32) -> (i32, i32, i32) {
    %c0_i32 = arith.constant 0 : i32
    %c0_i32_0 = arith.constant 0 : i32
    %c0_i32_1 = arith.constant 0 : i32
    %c0_i32_2 = arith.constant 0 : i32
    return %c0_i32, %c0_i32_0, %c0_i32_1 : i32, i32, i32
  }
  func.func @transform_4(%arg0: i32) -> (i32, i32, i32) {
    %c0_i32 = arith.constant 0 : i32
    %c0_i32_0 = arith.constant 0 : i32
    %c0_i32_1 = arith.constant 0 : i32
    %c0_i32_2 = arith.constant 0 : i32
    return %c0_i32, %c0_i32_0, %c0_i32_1 : i32, i32, i32
  }
  func.func @transform_5(%arg0: i32) -> (i32, i32) {
    %c0_i32 = arith.constant 0 : i32
    %c0_i32_0 = arith.constant 0 : i32
    %c0_i32_1 = arith.constant 0 : i32
    return %c0_i32, %c0_i32_0 : i32, i32
  }
  func.func @transform_6(%arg0: i32) -> (i32, i32, i32) {
    %c0_i32 = arith.constant 0 : i32
    %c0_i32_0 = arith.constant 0 : i32
    %c0_i32_1 = arith.constant 0 : i32
    %c0_i32_2 = arith.constant 0 : i32
    return %c0_i32, %c0_i32_0, %c0_i32_1 : i32, i32, i32
  }
  func.func @transform_7(%arg0: i32) -> (i32, i32, i32) {
    %c0_i32 = arith.constant 0 : i32
    %c0_i32_0 = arith.constant 0 : i32
    %c0_i32_1 = arith.constant 0 : i32
    %c0_i32_2 = arith.constant 0 : i32
    return %c0_i32, %c0_i32_0, %c0_i32_1 : i32, i32, i32
  }
  func.func @transform_8(%arg0: i32) -> (i32, i32, i32) {
    %c0_i32 = arith.constant 0 : i32
    %c0_i32_0 = arith.constant 0 : i32
    %c0_i32_1 = arith.constant 0 : i32
    %c0_i32_2 = arith.constant 0 : i32
    return %c0_i32, %c0_i32_0, %c0_i32_1 : i32, i32, i32
  }
  func.func @transform_9(%arg0: i32) -> (i32, i32) {
    %c0_i32 = arith.constant 0 : i32
    %c0_i32_0 = arith.constant 0 : i32
    %c0_i32_1 = arith.constant 0 : i32
    return %c0_i32, %c0_i32_0 : i32, i32
  }
  func.func @transform_10(%arg0: i32) -> (i32, i32) {
    %c0_i32 = arith.constant 0 : i32
    %c0_i32_0 = arith.constant 0 : i32
    %c0_i32_1 = arith.constant 0 : i32
    return %c0_i32, %c0_i32_0 : i32, i32
  }
  func.func @transform_11(%arg0: i32) -> (i32, i32) {
    %c0_i32 = arith.constant 0 : i32
    %c0_i32_0 = arith.constant 0 : i32
    %c0_i32_1 = arith.constant 0 : i32
    return %c0_i32, %c0_i32_0 : i32, i32
  }
  func.func @transform_12(%arg0: i32) -> (i32, i32) {
    %c0_i32 = arith.constant 0 : i32
    %c0_i32_0 = arith.constant 0 : i32
    %c0_i32_1 = arith.constant 0 : i32
    return %c0_i32, %c0_i32_0 : i32, i32
  }
  func.func @transform_13(%arg0: i32) -> (i32, i32, i32) {
    %c0_i32 = arith.constant 0 : i32
    %c0_i32_0 = arith.constant 0 : i32
    %c0_i32_1 = arith.constant 0 : i32
    %c0_i32_2 = arith.constant 0 : i32
    return %c0_i32, %c0_i32_0, %c0_i32_1 : i32, i32, i32
  }
}

</mosaic_0001>

<bundles_post_ra>
// kernel: char_gru_forward.1
= control target key start
LH: loop header
LB: loop body
LE: loop exit
PB: predicated region body
PF: predicated region fallthrough
CT: control target
= control target key end

     0   :  { %19 = vsyncpa [#allocation5], 0  ;;  %s5136_s0 = inlined_call_operand.hbm [shape: f32[16,16], index: 0, kind: input, shape index: {}]   ;;  %s5137_s1 = inlined_call_operand.vmem [shape: f32[2,2,32], index: 1, kind: input, shape index: {}]   ;;  %s5138_s2 = inlined_call_operand.vmem [shape: bf16[3,16,32], index: 2, kind: input, shape index: {}]   ;;  %s5139_s3 = inlined_call_operand.hbm [shape: bf16[3,32,32], index: 3, kind: input, shape index: {}]   ;;  %s5140_s4 = inlined_call_operand.vmem [shape: f32[3,1,32], index: 4, kind: input, shape index: {}]   ;;  %s5141_s5 = inlined_call_operand.hbm [shape: f32[1,32], index: 5, kind: input, shape index: {}]   ;;  %s5142_s6 = inlined_call_operand.hbm [shape: bf16[3,32,32], index: 6, kind: input, shape index: {}]   ;;  %s5143_s7 = inlined_call_operand.hbm [shape: bf16[3,32,32], index: 7, kind: input, shape index: {}]   ;;  %s5144_s8 = inlined_call_operand.hbm [shape: f32[3,1,32], index: 8, kind: input, shape index: {}]   ;;  %s5145_s9 = inlined_call_operand.vmem [shape: f32[1,32], index: 9, kind: input, shape index: {}]   ;;  %s5146_s10 = inlined_call_operand.vmem [shape: bf16[32,16], index: 10, kind: input, shape index: {}]   ;;  %s5147_s11 = inlined_call_operand.hbm [shape: f32[1,16], index: 11, kind: input, shape index: {}]   ;;  %s5148_s12 = inlined_call_operand.hbm [shape: f32[16,16], index: 12, kind: output, shape index: {0}]   ;;  %s5149_s13 = inlined_call_operand.hbm [shape: f32[2,2,32], index: 13, kind: output, shape index: {1}]  }
   0x1   :  { %20 = vsyncpa [#allocation8], 0 }
   0x2   :  { %21 = vsyncpa [#allocation11], 0 }
   0x3   :  { %22 = vsyncpa [#allocation14], 0 }
   0x4   :  { %23 = vsyncpa [#allocation6], 0  ;;  %s46_s27 = sshll.u32 %s5139_s3, 4  ;;  %s47_s27 = int_to_ptr.hbm [resolvable:$true] %s46_s27 }
   0x5   :  { %24 = vsyncpa [#allocation18], 0  ;;  %s4065_s28 = smov [#allocation7]   ;;  %s72_s15 = sshll.u32 %s5142_s6, 4  ;;  %s73_s15 = int_to_ptr.hbm [resolvable:$true] %s72_s15 }
   0x6   :  { %s48_s29 = sshll.u32 %s4065_s28, 4  ;;  %s4066_s16 = smov 64   ;;  %s49_s29 = int_to_ptr.vmem [resolvable:$true] %s48_s29 }
   0x7   :  { %s4067_s17 = smov 4   ;;  %s4068_s18 = smov [#allocation10]  }
   0x8   :  { %54 = dma.hbm_to_vmem [thread:$0]  %s47_s27, 768, %s49_s29, [#allocation8], %s4066_s16, %s4066_s16, %s4067_s17  }
   0x9   :  { %s74_s19 = sshll.u32 %s4068_s18, 4  ;;  %s98_s21 = sshll.u32 %s5144_s8, 4  ;;  %s75_s19 = int_to_ptr.vmem [resolvable:$true] %s74_s19  ;;  %s99_s21 = int_to_ptr.hbm [resolvable:$true] %s98_s21 }
   0xa   :  { %80 = dma.hbm_to_vmem [thread:$0]  %s73_s15, 768, %s75_s19, [#allocation11], %s4066_s16, %s4066_s16, %s4067_s17  }
   0xb   :  { %s4069_s6 = smov [#allocation13]   ;;  %s29_s25 = sshll.u32 %s5136_s0, 4  ;;  %s30_s25 = int_to_ptr.hbm [resolvable:$true] %s29_s25 }
   0xc   :  { %s100_s22 = sshll.u32 %s4069_s6, 4  ;;  %s4070_s26 = smov 16   ;;  %s101_s22 = int_to_ptr.vmem [resolvable:$true] %s100_s22 }
   0xd   :  { %s4071_s27 = smov 1   ;;  %s4072_s28 = smov [#allocation4]  }
   0xe   :  { %106 = dma.hbm_to_vmem [thread:$0]  %s99_s21, 48, %s101_s22, [#allocation14], %s4070_s26, %s4070_s26, %s4071_s27  }
   0xf   :  { %s31_s29 = sshll.u32 %s4072_s28, 4  ;;  %s4073_s8 = smov 128   ;;  %s32_s29 = int_to_ptr.vmem [resolvable:$true] %s31_s29 }
  0x10   :  { %s4074_s30 = smov 8   ;;  %s62_s18 = sshll.u32 %s5141_s5, 4  ;;  %s63_s18 = int_to_ptr.hbm [resolvable:$true] %s62_s18 }
  0x11   :  { %37 = dma.hbm_to_vmem [thread:$0]  %s30_s25, 256, %s32_s29, [#allocation5], %s4073_s8, %s4073_s8, %s4074_s30  }
  0x12   :  { %s4075_s19 = smov [#allocation9]   ;;  %s85_s21 = sshll.u32 %s5143_s7, 4  ;;  %s86_s21 = int_to_ptr.hbm [resolvable:$true] %s85_s21 }
  0x13   :  { %s64_s0 = sshll.u32 %s4075_s19, 4  ;;  %s4076_s6 = smov [#allocation12]   ;;  %s65_s0 = int_to_ptr.vmem [resolvable:$true] %s64_s0 }
  0x14   :  { %67 = dma.hbm_to_vmem [thread:$0]  %s63_s18, 16, %s65_s0, [#allocation8]  }
  0x15   :  { %s87_s22 = sshll.u32 %s4076_s6, 4  ;;  %s116_s25 = sshll.u32 %s5147_s11, 4  ;;  %s88_s22 = int_to_ptr.vmem [resolvable:$true] %s87_s22  ;;  %s117_s25 = int_to_ptr.hbm [resolvable:$true] %s116_s25 }
  0x16   :  { %93 = dma.hbm_to_vmem [thread:$0]  %s86_s21, 768, %s88_s22, [#allocation11], %s4066_s16, %s4066_s16, %s4067_s17  }
  0x17   :  { %s4077_s5 = smov [#allocation15]  }
  0x18   :  { %s118_s26 = sshll.u32 %s4077_s5, 4  ;;  %s119_s26 = int_to_ptr.vmem [resolvable:$true] %s118_s26 }
  0x19   :  { %121 = dma.hbm_to_vmem [thread:$0]  %s117_s25, 16, %s119_s26, [#allocation14]  }
  0x1a   :  { %4053 = dma.done.wait [#allocation5], 256  }
  0x1b   :  { %4054 = vsyncadd [#allocation5], 4294967040 }
  0x1c   :  { %4055 = dma.done.wait [#allocation8], 784  }
  0x1d   :  { %4056 = vsyncadd [#allocation8], 4294966512 }
  0x1e   :  { %4057 = dma.done.wait [#allocation11], 1536  }
  0x1f   :  { %4058 = vsyncadd [#allocation11], 4294965760 }
  0x20   :  { %4059 = dma.done.wait [#allocation14], 64  }
  0x21   :  { %4060 = vsyncadd [#allocation14], 4294967232  ;;  %v3454_v0 = vld [vmem:[%s5138_s2] sm:$0xff]  ;;  %v4188_v1 = vld [vmem:[#allocation7 + $0x8] sm:$0xff]  ;;  %vm5150_vm0 = vcmask 130048   ;;  %vm269_vm1 = vcmask 261120  }
  0x22   :  { %v151_v2 = vld [vmem:[#allocation4] sm:$0xff]  ;;  %v152_v3 = vld [vmem:[#allocation4 + $0x8] sm:$0xff]  ;;  %177 = vmatpush.bf16.msra.mxu0 %v3454_v0  ;;  %279 = vmatpush.bf16.msra.mxu3 %v4188_v1  ;;  %v4194_v6 = vld [vmem:[#allocation7] sm:$0xff]  ;;  %s3215_s11 = sshll.u32 %s5149_s13, 4  ;;  %s4079_s16 = smov 32   ;;  %s3216_s11 = int_to_ptr.hbm [resolvable:$true] %s3215_s11 }
  0x23   :  { %v3455_v4 = vld [vmem:[%s5138_s2 + $0x8] sm:$0xff]  ;;  %v153_v5 = vpack.c.bf16 %v152_v3, %v151_v2  ;;  %v4201_v8 = vld [vmem:[%s5137_s1] sm:$0x3]  ;;  %v3456_v9 = vld [vmem:[%s5138_s2 + $0x10] sm:$0xff]  ;;  %s4080_s17 = smov 2   ;;  %s4081_s27 = smov [#allocation16]  }
  0x24   :  { %v4196_v7 = vld [vmem:[#allocation7 + $0x18] sm:$0xff]  ;;  %205 = vmatpush.bf16.msra.mxu1 %v3455_v4  ;;  %v4206_v10 = vld [vmem:[#allocation7 + $0x28] sm:$0xff]  ;;  %v4209_v11 = vld [vmem:[#allocation7 + $0x10] sm:$0xff]  ;;  %v256_v12 = vpack.c.bf16 %v4201_v8, %v4201_v8  ;;  %233 = vmatpush.bf16.msra.mxu2 %v3456_v9  ;;  %s3200_s28 = sshll.u32 %s4081_s27, 4  ;;  %s3202_s2 = sshll.u32 %s5148_s12, 4  ;;  %s3201_s28 = int_to_ptr.vmem [resolvable:$true] %s3200_s28  ;;  %s3203_s2 = int_to_ptr.hbm [resolvable:$true] %s3202_s2 }
  0x25   :  { %3240 = vmatmul.msk.bf16.vlgmr.msra.gmra.mxu0 %vm5150_vm0, %v153_v5  ;;  %v4217_v13 = vld [vmem:[#allocation7 + $0x20] sm:$0xff]  ;;  %v3494_v16 = vld [vmem:[%s5140_s4] ss:$0 sm:$0xff]  ;;  %v3495_v21 = vld [vmem:[%s5140_s4 + $0x1] ss:$0 sm:$0xff] }
  0x26   :  { %310 = vmatpush.bf16.msrb.mxu0 %v4196_v7  ;;  %280 = vmatpush.bf16.msra.mxu3 %v4194_v6  ;;  %v4261_v47 = vld [vmem:[#allocation9] ss:$0 sm:$0xff]  ;;  %v3496_v53 = vld [vmem:[%s5140_s4 + $0x2] ss:$0 sm:$0xff] }
  0x27   :  { %3248 = vmatmul.msk.bf16.vlgmr.msra.gmra.mxu1 %vm5150_vm0, %v153_v5  ;;  %3256 = vmatmul.msk.bf16.vlgmr.msra.gmra.mxu2 %vm5150_vm0, %v153_v5 }
  0x28   :  { %344 = vmatpush.bf16.msrb.mxu1 %v4206_v10  ;;  %471 = vmatpush.bf16.msrb.mxu2 %v4188_v1 }
  0x29   :  { %3265 = vmatmul.msk.bf16.vlgmr.msra.gmra.mxu3 %vm269_vm1, %v256_v12 }
  0x2a   :  { %311 = vmatpush.bf16.msrb.mxu0 %v4209_v11  ;;  %490 = vmatpush.bf16.msrb.mxu3 %v4196_v7 }
  0x2c   :  { %345 = vmatpush.bf16.msrb.mxu1 %v4217_v13  ;;  %472 = vmatpush.bf16.msrb.mxu2 %v4194_v6 }
  0x2e   :  { %509 = vmatpush.bf16.msra.mxu0 %v4206_v10  ;;  %491 = vmatpush.bf16.msrb.mxu3 %v4209_v11 }
  0x30   :  { %637 = vmatpush.bf16.msra.mxu1 %v4188_v1  ;;  %657 = vmatpush.bf16.msra.mxu2 %v4196_v7 }
  0x32   :  { %510 = vmatpush.bf16.msra.mxu0 %v4217_v13  ;;  %677 = vmatpush.bf16.msra.mxu3 %v4206_v10 }
  0x34   :  { %638 = vmatpush.bf16.msra.mxu1 %v4194_v6  ;;  %658 = vmatpush.bf16.msra.mxu2 %v4209_v11 }
  0x35   :  { %3274 = vmatmul.msk.bf16.vlgmr.msrb.gmra.mxu0 %vm269_vm1, %v256_v12 }
  0x36   :  { %678 = vmatpush.bf16.msra.mxu3 %v4217_v13  ;;  %807 = vmatpush.bf16.msrb.mxu0 %v4188_v1 }
  0x37   :  { %3283 = vmatmul.msk.bf16.vlgmr.msrb.gmra.mxu1 %vm269_vm1, %v256_v12 }
  0x38   :  { %827 = vmatpush.bf16.msrb.mxu1 %v4196_v7 }
  0x3a   :  { %808 = vmatpush.bf16.msrb.mxu0 %v4194_v6 }
  0x3c   :  { %828 = vmatpush.bf16.msrb.mxu1 %v4209_v11 }
  0xa2   :  { %v179_v14 = vpop.f32.mrf.mxu0 }
  0xa3   :  { %v4244_v18 = vadd.f32 %v3494_v16, %v179_v14 }
  0xa4   :  { %v207_v15 = vpop.f32.mrf.mxu1 }
  0xa5   :  { %v4253_v27 = vadd.f32 %v3495_v21, %v207_v15 }
  0xaa   :  { %v181_v17 = vpop.f32.mrf.mxu0  ;;  %v235_v41 = vpop.f32.mrf.mxu2 }
  0xab   :  { %v4249_v22 = vadd.f32 %v3494_v16, %v181_v17  ;;  %v4271_v0 = vadd.f32 %v3496_v53, %v235_v41 }
  0xac   :  { %v209_v19 = vpop.f32.mrf.mxu1  ;;  %v282_v20 = vpop.f32.mrf.mxu3 }
  0xad   :  { %v287_v23 = vrot.slane %v282_v20, 1  ;;  %v290_v24 = vadd.f32 %v282_v20, %v4244_v18  ;;  %v4255_v30 = vadd.f32 %v3495_v21, %v209_v19 }
  0xaf   :  { %v291_v25 = vadd.f32 %v287_v23, %v4249_v22  ;;  %v3284_v26 = vmul.f32 -1.442695, %v290_v24 }
  0xb1   :  { %3503 = vpow2.f32 %v3284_v26  ;;  %v3285_v28 = vmul.f32 -1.442695, %v291_v25 }
  0xb2   :  { %v313_v29 = vpop.f32.mrf.mxu0  ;;  %v237_v57 = vpop.f32.mrf.mxu2 }
  0xb3   :  { %3505 = vpow2.f32 %v3285_v28  ;;  %v318_v31 = vrot.slane %v313_v29, 1  ;;  %v321_v32 = vadd.f32 %v313_v29, %v4253_v27  ;;  %v4273_v4 = vadd.f32 %v3496_v53, %v237_v57 }
  0xb4   :  { %v347_v33 = vpop.f32.mrf.mxu1  ;;  %v284_v34 = vpop.f32.mrf.mxu3 }
  0xb5   :  { %v322_v35 = vadd.f32 %v318_v31, %v4255_v30  ;;  %v3286_v36 = vmul.f32 -1.442695, %v321_v32  ;;  %v348_v54 = vadd.f32 %v4261_v47, %v347_v33 }
  0xb7   :  { %v3504_v37 = vpop.eup %3503  ;;  %3507 = vpow2.f32 %v3286_v36  ;;  %v3287_v38 = vmul.f32 -1.442695, %v322_v35  ;;  %v428_v3 = vrot.slane %v348_v54, 1 }
  0xb8   :  { %v357_v39 = vadd.f32 1.0, %v3504_v37 }
  0xb9   :  { %v3506_v40 = vpop.eup %3505  ;;  %3509 = vpow2.f32 %v3287_v38 }
  0xba   :  { %v358_v42 = vadd.f32 1.0, %v3506_v40  ;;  %3511 = vrcp.f32 %v357_v39  ;;  %v315_v43 = vpop.f32.mrf.mxu0  ;;  %v368_v58 = vand.u32 2147483647, %v357_v39  ;;  %v370_v59 = vand.u32 2147483648, %v357_v39 }
  0xbb   :  { %vm364_vm3 = vweird.f32 %v357_v39 }
  0xbc   :  { %v349_v44 = vpop.f32.mrf.mxu1  ;;  %3513 = vrcp.f32 %v358_v42  ;;  %v383_v62 = vand.u32 2147483647, %v358_v42  ;;  %v385_v2 = vand.u32 2147483648, %v358_v42  ;;  %vm369_vm5 = vcmp.eq.f32.partialorder %v368_v58, 8.507059e+37 }
  0xbd   :  { %v3508_v45 = vpop.eup %3507  ;;  %v371_v15 = vor.u32 1.1754944e-38, %v370_v59  ;;  %vm379_vm6 = vweird.f32 %v358_v42 }
  0xbe   :  { %v4259_v46 = vadd.f32 1.0, %v3508_v45  ;;  %vm4277_vm8 = vcmp.eq.f32.partialorder %v383_v62, 8.507059e+37  ;;  %v386_v25 = vor.u32 1.1754944e-38, %v385_v2 }
  0xbf   :  { %v3510_v48 = vpop.eup %3509 }
  0xc0   :  { %v3512_v49 = vpop.eup %3511  ;;  %v4263_v50 = vadd.f32 1.0, %v3510_v48  ;;  %3515 = vrcp.f32 %v4259_v46  ;;  %v408_v21 = vand.u32 2147483648, %v4259_v46  ;;  %vm402_vm11 = vweird.f32 %v4259_v46 }
  0xc1   :  { %v360_v51 = vmul.f32 %v3512_v49, %v357_v39  ;;  %vm365_vm2 = vweird.f32 %v3512_v49  ;;  %v406_v31 = vand.u32 2147483647, %v4259_v46 }
  0xc2   :  { %v3514_v52 = vpop.eup %3513  ;;  %3517 = vrcp.f32 %v4263_v50  ;;  %vm366_vm4 = vmor %vm364_vm3, %vm365_vm2  ;;  %vm417_vm14 = vweird.f32 %v4263_v50  ;;  %v421_v37 = vand.u32 2147483647, %v4263_v50  ;;  %v423_v38 = vand.u32 2147483648, %v4263_v50 }
  0xc3   :  { %v361_v55 = vsub.f32 1.0, %v360_v51  ;;  %v375_v56 = vmul.f32 %v3514_v52, %v358_v42  ;;  %vm380_vm7 = vweird.f32 %v3514_v52  ;;  %v409_v40 = vor.u32 1.1754944e-38, %v408_v21 }
  0xc4   :  { %vm381_vm10 = vmor %vm379_vm6, %vm380_vm7  ;;  %vm407_vm2 = vcmp.eq.f32.partialorder %v406_v31, 8.507059e+37  ;;  %vm422_vm3 = vcmp.eq.f32.partialorder %v421_v37, 8.507059e+37 }
  0xc5   :  { %v362_v60 = vmul.f32 %v3512_v49, %v361_v55  ;;  %v376_v61 = vsub.f32 1.0, %v375_v56 }
  0xc6   :  { %v3516_v63 = vpop.eup %3515 }
  0xc7   :  { %v398_v5 = vmul.f32 %v3516_v63, %v4259_v46  ;;  %v363_v9 = vadd.f32 %v3512_v49, %v362_v60  ;;  %v377_v12 = vmul.f32 %v3514_v52, %v376_v61  ;;  %vm403_vm9 = vweird.f32 %v3516_v63 }
  0xc8   :  { %v3518_v14 = vpop.eup %3517  ;;  %vm404_vm13 = vmor %vm402_vm11, %vm403_vm9  ;;  %v424_v46 = vor.u32 1.1754944e-38, %v423_v38 }
  0xc9   :  { %v399_v16 = vsub.f32 1.0, %v398_v5  ;;  %v413_v17 = vmul.f32 %v3518_v14, %v4263_v50  ;;  %v367_v19 = vsel %vm366_vm4, %v3512_v49, %v363_v9  ;;  %v378_v24 = vadd.f32 %v3514_v52, %v377_v12 }
  0xca   :  { %v372_v23 = vsel %vm369_vm5, %v371_v15, %v367_v19  ;;  %vm418_vm12 = vweird.f32 %v3518_v14  ;;  %v442_v50 = vrot.slane %v4201_v8, 1  ;;  %vm5153_vm4 = vcmask 253952  }
  0xcb   :  { %v400_v26 = vmul.f32 %v3516_v63, %v399_v16  ;;  %v414_v28 = vsub.f32 1.0, %v413_v17  ;;  %v431_v29 = vmul.f32 %v372_v23, %v348_v54  ;;  %v382_v32 = vsel %vm381_vm10, %v3514_v52, %v378_v24  ;;  %vm419_vm15 = vmor %vm417_vm14, %vm418_vm12 }
  0xcc   :  { %v387_v35 = vsel %vm4277_vm8, %v386_v25, %v382_v32  ;;  %vm459_vm5 = vcmask 1041409  }
  0xcd   :  { %v401_v33 = vadd.f32 %v3516_v63, %v400_v26  ;;  %v415_v34 = vmul.f32 %v3518_v14, %v414_v28  ;;  %v433_v36 = vadd.f32 %v431_v29, %v4271_v0  ;;  %v432_v39 = vmul.f32 %v428_v3, %v387_v35 }
  0xcf   :  { %v416_v41 = vadd.f32 %v3518_v14, %v415_v34  ;;  %v405_v42 = vsel %vm404_vm13, %v3516_v63, %v401_v33  ;;  %3519 = vtanh.f32 %v433_v36  ;;  %v434_v43 = vadd.f32 %v432_v39, %v4273_v4 }
  0xd0   :  { %v410_v45 = vsel %vm407_vm2, %v409_v40, %v405_v42 }
  0xd1   :  { %v420_v44 = vsel %vm419_vm15, %v3518_v14, %v416_v41  ;;  %3521 = vtanh.f32 %v434_v43  ;;  %v437_v48 = vsub.f32 1.0, %v410_v45  ;;  %v445_v53 = vmul.f32 %v410_v45, %v4201_v8 }
  0xd2   :  { %v425_v49 = vsel %vm422_vm3, %v424_v46, %v420_v44 }
  0xd3   :  { %v438_v54 = vsub.f32 1.0, %v425_v49  ;;  %v446_v58 = vmul.f32 %v442_v50, %v425_v49 }
  0xd5   :  { %v3520_v51 = vpop.eup %3519 }
  0xd6   :  { %v439_v52 = vmul.f32 %v3520_v51, %v437_v48 }
  0xd7   :  { %v3522_v55 = vpop.eup %3521 }
  0xd8   :  { %v4294_v56 = vadd.f32 %v445_v53, %v439_v52  ;;  %v440_v57 = vmul.f32 %v3522_v55, %v438_v54 }
  0xda   :  { %450 = vst.msk [vmem:[#allocation2] sm:$0x1] %vm5153_vm4, %v4294_v56  ;;  %v4298_v59 = vadd.f32 %v446_v58, %v440_v57  ;;  %v452_v60 = vpack.c.bf16 %v4294_v56, %v4294_v56 }
  0xdc   :  { %451 = vst.msk [vmem:[#allocation2 + $0x8] sm:$0x1] %vm5153_vm4, %v4298_v59  ;;  %v453_v8 = vpack.c.bf16 %v4298_v59, %v4298_v59  ;;  %v456_v62 = vunpack.c.l.b16 %v452_v60 }
  0xde   :  { %v457_v61 = vunpack.c.l.b16 %v453_v8 }
  0xe0   :  { %v458_v63 = vrot.slane %v457_v61, 7 }
  0xe2   :  { %v460_v2 = vsel %vm459_vm5, %v458_v63, %v456_v62 }
  0xe3   :  { %v461_v3 = vpack.c.b16 %v460_v2, %v460_v2 }
  0xe5   :  { %3288 = vmatmul.msk.bf16.vlgmr.msrb.gmra.mxu2 %vm269_vm1, %v461_v3  ;;  %3289 = vmatmul.msk.bf16.vlgmr.msrb.gmra.mxu3 %vm269_vm1, %v461_v3 }
  0xe6   :  { %3290 = vmatmul.msk.bf16.vlgmr.msra.gmra.mxu0 %vm269_vm1, %v461_v3  ;;  %847 = vmatpush.bf16.msrb.mxu2 %v4206_v10 }
  0xe7   :  { %977 = vmatpush.bf16.msrb.mxu3 %v4188_v1  ;;  %997 = vmatpush.bf16.msra.mxu0 %v4196_v7 }
  0xea   :  { %848 = vmatpush.bf16.msrb.mxu2 %v4217_v13 }
  0xeb   :  { %978 = vmatpush.bf16.msrb.mxu3 %v4194_v6  ;;  %998 = vmatpush.bf16.msra.mxu0 %v4209_v11 }
 0x163   :  { %v512_v5 = vpop.f32.mrf.mxu0 }
 0x164   :  { %v513_v48 = vadd.f32 %v4261_v47, %v512_v5 }
 0x166   :  { %v593_v62 = vrot.slane %v513_v48, 7 }
 0x168   :  { %v474_v9 = vpop.f32.mrf.mxu2  ;;  %v493_v12 = vpop.f32.mrf.mxu3 }
 0x169   :  { %v479_v14 = vrot.slane %v474_v9, 7  ;;  %v483_v15 = vadd.f32 %v474_v9, %v4249_v22  ;;  %v498_v16 = vrot.slane %v493_v12, 7  ;;  %v502_v17 = vadd.f32 %v493_v12, %v4255_v30 }
 0x16b   :  { %v482_v19 = vadd.f32 %v479_v14, %v4244_v18  ;;  %v3292_v20 = vmul.f32 -1.442695, %v483_v15  ;;  %v501_v21 = vadd.f32 %v498_v16, %v4253_v27  ;;  %v3294_v23 = vmul.f32 -1.442695, %v502_v17  ;;  %v514_v24 = vpop.f32.mrf.mxu0 }
 0x16d   :  { %v3291_v25 = vmul.f32 -1.442695, %v482_v19  ;;  %3523 = vpow2.f32 %v3292_v20  ;;  %v3293_v26 = vmul.f32 -1.442695, %v501_v21 }
 0x16e   :  { %3525 = vpow2.f32 %v3294_v23 }
 0x16f   :  { %3527 = vpow2.f32 %v3291_v25 }
 0x170   :  { %3529 = vpow2.f32 %v3293_v26  ;;  %v476_v28 = vpop.f32.mrf.mxu2  ;;  %v495_v29 = vpop.f32.mrf.mxu3 }
 0x173   :  { %v3524_v31 = vpop.eup %3523 }
 0x174   :  { %v3526_v32 = vpop.eup %3525  ;;  %v523_v33 = vadd.f32 1.0, %v3524_v31 }
 0x175   :  { %v3528_v34 = vpop.eup %3527  ;;  %v4320_v35 = vadd.f32 1.0, %v3526_v32 }
 0x176   :  { %v3530_v36 = vpop.eup %3529  ;;  %v522_v37 = vadd.f32 1.0, %v3528_v34  ;;  %3531 = vrcp.f32 %v523_v33  ;;  %v550_v49 = vand.u32 2147483648, %v523_v33  ;;  %v548_v54 = vand.u32 2147483647, %v523_v33 }
 0x177   :  { %v4322_v38 = vadd.f32 1.0, %v3530_v36  ;;  %3533 = vrcp.f32 %v4320_v35  ;;  %vm544_vm7 = vweird.f32 %v523_v33  ;;  %vm582_vm10 = vweird.f32 %v4320_v35 }
 0x178   :  { %3535 = vrcp.f32 %v522_v37  ;;  %v535_v55 = vand.u32 2147483648, %v522_v37  ;;  %v533_v8 = vand.u32 2147483647, %v522_v37  ;;  %v551_v63 = vor.u32 1.1754944e-38, %v550_v49 }
 0x179   :  { %3537 = vrcp.f32 %v4322_v38  ;;  %vm529_vm11 = vweird.f32 %v522_v37  ;;  %vm549_vm12 = vcmp.eq.f32.partialorder %v548_v54, 8.507059e+37  ;;  %v588_v17 = vand.u32 2147483648, %v4320_v35 }
 0x17a   :  { %v536_v9 = vor.u32 1.1754944e-38, %v535_v55  ;;  %vm534_vm15 = vcmp.eq.f32.partialorder %v533_v8, 8.507059e+37  ;;  %v586_v21 = vand.u32 2147483647, %v4320_v35  ;;  %v573_v25 = vand.u32 2147483648, %v4322_v38 }
 0x17b   :  { %v571_v26 = vand.u32 2147483647, %v4322_v38  ;;  %v589_v31 = vor.u32 1.1754944e-38, %v588_v17 }
 0x17c   :  { %v3532_v39 = vpop.eup %3531 }
 0x17d   :  { %v3534_v40 = vpop.eup %3533  ;;  %v540_v41 = vmul.f32 %v3532_v39, %v523_v33  ;;  %vm545_vm6 = vweird.f32 %v3532_v39  ;;  %v574_v33 = vor.u32 1.1754944e-38, %v573_v25 }
 0x17e   :  { %v3536_v42 = vpop.eup %3535  ;;  %v578_v43 = vmul.f32 %v3534_v40, %v4320_v35  ;;  %vm546_vm9 = vmor %vm544_vm7, %vm545_vm6  ;;  %vm583_vm14 = vweird.f32 %v3534_v40  ;;  %vm567_vm6 = vweird.f32 %v4322_v38  ;;  %v609_v35 = vrot.slane %v4298_v59, 7 }
 0x17f   :  { %v3538_v44 = vpop.eup %3537  ;;  %v525_v45 = vmul.f32 %v3536_v42, %v522_v37  ;;  %v541_v46 = vsub.f32 1.0, %v540_v41  ;;  %vm530_vm8 = vweird.f32 %v3536_v42  ;;  %vm584_vm3 = vmor %vm582_vm10, %vm583_vm14  ;;  %v608_v41 = vrot.slane %v4294_v56, 7 }
 0x180   :  { %v563_v51 = vmul.f32 %v3538_v44, %v4322_v38  ;;  %v579_v50 = vsub.f32 1.0, %v578_v43  ;;  %vm531_vm13 = vmor %vm529_vm11, %vm530_vm8  ;;  %vm568_vm2 = vweird.f32 %v3538_v44  ;;  %vm587_vm8 = vcmp.eq.f32.partialorder %v586_v21, 8.507059e+37 }
 0x181   :  { %v526_v52 = vsub.f32 1.0, %v525_v45  ;;  %v542_v53 = vmul.f32 %v3532_v39, %v541_v46  ;;  %vm569_vm7 = vmor %vm567_vm6, %vm568_vm2  ;;  %vm616_vm10 = vcmask 254977  }
 0x182   :  { %v564_v57 = vsub.f32 1.0, %v563_v51  ;;  %v580_v58 = vmul.f32 %v3534_v40, %v579_v50 }
 0x183   :  { %v527_v60 = vmul.f32 %v3536_v42, %v526_v52  ;;  %v543_v61 = vadd.f32 %v3532_v39, %v542_v53 }
 0x184   :  { %v565_v2 = vmul.f32 %v3538_v44, %v564_v57  ;;  %v581_v14 = vadd.f32 %v3534_v40, %v580_v58 }
 0x185   :  { %v528_v3 = vadd.f32 %v3536_v42, %v527_v60  ;;  %v547_v5 = vsel %vm546_vm9, %v3532_v39, %v543_v61  ;;  %vm572_vm9 = vcmp.eq.f32.partialorder %v571_v26, 8.507059e+37 }
 0x186   :  { %v552_v12 = vsel %vm549_vm12, %v551_v63, %v547_v5  ;;  %v566_v20 = vadd.f32 %v3538_v44, %v565_v2  ;;  %v585_v28 = vsel %vm584_vm3, %v3534_v40, %v581_v14 }
 0x187   :  { %v532_v15 = vsel %vm531_vm13, %v3536_v42, %v528_v3  ;;  %v597_v16 = vmul.f32 %v552_v12, %v513_v48  ;;  %v590_v34 = vsel %vm587_vm8, %v589_v31, %v585_v28 }
 0x188   :  { %v537_v19 = vsel %vm534_vm15, %v536_v9, %v532_v15  ;;  %v570_v32 = vsel %vm569_vm7, %v3538_v44, %v566_v20  ;;  %v603_v37 = vsub.f32 1.0, %v590_v34  ;;  %v613_v42 = vmul.f32 %v609_v35, %v590_v34 }
 0x189   :  { %v596_v23 = vmul.f32 %v593_v62, %v537_v19  ;;  %v599_v24 = vadd.f32 %v597_v16, %v4273_v4  ;;  %v575_v36 = vsel %vm572_vm9, %v574_v33, %v570_v32 }
 0x18a   :  { %v602_v38 = vsub.f32 1.0, %v575_v36  ;;  %v612_v45 = vmul.f32 %v608_v41, %v575_v36 }
 0x18b   :  { %v598_v29 = vadd.f32 %v596_v23, %v4271_v0  ;;  %3539 = vtanh.f32 %v599_v24 }
 0x18d   :  { %3541 = vtanh.f32 %v598_v29 }
 0x191   :  { %v3540_v39 = vpop.eup %3539 }
 0x192   :  { %v605_v40 = vmul.f32 %v3540_v39, %v603_v37 }
 0x193   :  { %v3542_v43 = vpop.eup %3541 }
 0x194   :  { %v604_v46 = vmul.f32 %v3542_v43, %v602_v38  ;;  %v4341_v44 = vadd.f32 %v613_v42, %v605_v40 }
 0x196   :  { %v4343_v48 = vadd.f32 %v612_v45, %v604_v46  ;;  %618 = vst.msk [vmem:[#allocation2 + $0x8] sm:$0x2] %vm616_vm10, %v4341_v44  ;;  %v620_v59 = vpack.c.bf16 %v4341_v44, %v4341_v44 }
 0x198   :  { %617 = vst.msk [vmem:[#allocation2] sm:$0x2] %vm616_vm10, %v4343_v48  ;;  %v619_v56 = vpack.c.bf16 %v4343_v48, %v4343_v48  ;;  %v624_v51 = vunpack.c.l.b16 %v620_v59 }
 0x19a   :  { %v623_v49 = vunpack.c.l.b16 %v619_v56 }
 0x19c   :  { %v625_v50 = vrot.slane %v623_v49, 1 }
 0x19e   :  { %v626_v52 = vsel %vm459_vm5, %v624_v51, %v625_v50 }
 0x19f   :  { %v627_v53 = vpack.c.b16 %v626_v52, %v626_v52 }
 0x1a1   :  { %3295 = vmatmul.msk.bf16.vlgmr.msra.gmra.mxu1 %vm269_vm1, %v627_v53  ;;  %3296 = vmatmul.msk.bf16.vlgmr.msra.gmra.mxu2 %vm269_vm1, %v627_v53 }
 0x1a2   :  { %3297 = vmatmul.msk.bf16.vlgmr.msra.gmra.mxu3 %vm269_vm1, %v627_v53  ;;  %1017 = vmatpush.bf16.msra.mxu1 %v4206_v10 }
 0x1a3   :  { %1147 = vmatpush.bf16.msra.mxu2 %v4188_v1  ;;  %1167 = vmatpush.bf16.msra.mxu3 %v4196_v7 }
 0x1a6   :  { %1018 = vmatpush.bf16.msra.mxu1 %v4217_v13 }
 0x1a7   :  { %1148 = vmatpush.bf16.msra.mxu2 %v4194_v6  ;;  %1168 = vmatpush.bf16.msra.mxu3 %v4209_v11 }
 0x21e   :  { %v640_v54 = vpop.f32.mrf.mxu1 }
 0x21f   :  { %v645_v55 = vrot.slane %v640_v54, 6  ;;  %v646_v57 = vrot.slane %v640_v54, 7 }
 0x221   :  { %v649_v58 = vadd.f32 %v645_v55, %v4244_v18  ;;  %v650_v60 = vadd.f32 %v646_v57, %v4249_v22 }
 0x223   :  { %v3298_v8 = vmul.f32 -1.442695, %v649_v58  ;;  %v3299_v61 = vmul.f32 -1.442695, %v650_v60 }
 0x224   :  { %v660_v62 = vpop.f32.mrf.mxu2 }
 0x225   :  { %3543 = vpow2.f32 %v3298_v8  ;;  %v665_v63 = vrot.slane %v660_v62, 6  ;;  %v666_v2 = vrot.slane %v660_v62, 7  ;;  %v680_v3 = vpop.f32.mrf.mxu3 }
 0x226   :  { %3545 = vpow2.f32 %v3299_v61  ;;  %v642_v5 = vpop.f32.mrf.mxu1  ;;  %v681_v32 = vadd.f32 %v4261_v47, %v680_v3 }
 0x227   :  { %v669_v9 = vadd.f32 %v665_v63, %v4253_v27  ;;  %v670_v12 = vadd.f32 %v666_v2, %v4255_v30 }
 0x228   :  { %v761_v40 = vrot.slane %v681_v32, 6  ;;  %v762_v46 = vrot.slane %v681_v32, 7 }
 0x229   :  { %v3300_v14 = vmul.f32 -1.442695, %v669_v9  ;;  %v3301_v15 = vmul.f32 -1.442695, %v670_v12 }
 0x22b   :  { %v3544_v16 = vpop.eup %3543  ;;  %3547 = vpow2.f32 %v3300_v14 }
 0x22c   :  { %v3546_v17 = vpop.eup %3545  ;;  %v690_v19 = vadd.f32 1.0, %v3544_v16  ;;  %3549 = vpow2.f32 %v3301_v15  ;;  %v662_v20 = vpop.f32.mrf.mxu2 }
 0x22d   :  { %v691_v21 = vadd.f32 1.0, %v3546_v17  ;;  %v682_v23 = vpop.f32.mrf.mxu3 }
 0x22e   :  { %3551 = vrcp.f32 %v690_v19  ;;  %v701_v36 = vand.u32 2147483647, %v690_v19  ;;  %v703_v37 = vand.u32 2147483648, %v690_v19  ;;  %vm697_vm13 = vweird.f32 %v690_v19 }
 0x22f   :  { %3553 = vrcp.f32 %v691_v21  ;;  %v716_v41 = vand.u32 2147483647, %v691_v21  ;;  %v718_v38 = vand.u32 2147483648, %v691_v21  ;;  %vm712_vm15 = vweird.f32 %v691_v21 }
 0x230   :  { %vm4375_vm14 = vcmp.eq.f32.partialorder %v701_v36, 8.507059e+37  ;;  %v704_v52 = vor.u32 1.1754944e-38, %v703_v37 }
 0x231   :  { %v3548_v24 = vpop.eup %3547  ;;  %vm717_vm7 = vcmp.eq.f32.partialorder %v716_v41, 8.507059e+37  ;;  %v719_v55 = vor.u32 1.1754944e-38, %v718_v38 }
 0x232   :  { %v3550_v25 = vpop.eup %3549  ;;  %v4367_v26 = vadd.f32 1.0, %v3548_v24 }
 0x233   :  { %v4369_v28 = vadd.f32 1.0, %v3550_v25 }
 0x234   :  { %v3552_v29 = vpop.eup %3551  ;;  %3555 = vrcp.f32 %v4367_v26  ;;  %vm735_vm3 = vweird.f32 %v4367_v26  ;;  %v741_v57 = vand.u32 2147483648, %v4367_v26  ;;  %v739_v12 = vand.u32 2147483647, %v4367_v26 }
 0x235   :  { %v3554_v31 = vpop.eup %3553  ;;  %3557 = vrcp.f32 %v4369_v28  ;;  %v693_v33 = vmul.f32 %v3552_v29, %v690_v19  ;;  %vm698_vm11 = vweird.f32 %v3552_v29  ;;  %v756_v14 = vand.u32 2147483648, %v4369_v28 }
 0x236   :  { %v708_v34 = vmul.f32 %v3554_v31, %v691_v21  ;;  %vm713_vm12 = vweird.f32 %v3554_v31  ;;  %vm699_vm2 = vmor %vm697_vm13, %vm698_vm11  ;;  %vm750_vm11 = vweird.f32 %v4369_v28  ;;  %v754_v16 = vand.u32 2147483647, %v4369_v28 }
 0x237   :  { %v694_v35 = vsub.f32 1.0, %v693_v33  ;;  %vm714_vm6 = vmor %vm712_vm15, %vm713_vm12  ;;  %v742_v21 = vor.u32 1.1754944e-38, %v741_v57  ;;  %v757_v24 = vor.u32 1.1754944e-38, %v756_v14  ;;  %v778_v33 = vrot.slane %v4341_v44, 7 }
 0x238   :  { %v709_v39 = vsub.f32 1.0, %v708_v34  ;;  %vm755_vm15 = vcmp.eq.f32.partialorder %v754_v16, 8.507059e+37 }
 0x239   :  { %v695_v43 = vmul.f32 %v3552_v29, %v694_v35 }
 0x23a   :  { %v3556_v42 = vpop.eup %3555  ;;  %v710_v45 = vmul.f32 %v3554_v31, %v709_v39 }
 0x23b   :  { %v3558_v56 = vpop.eup %3557  ;;  %v731_v59 = vmul.f32 %v3556_v42, %v4367_v26  ;;  %v696_v50 = vadd.f32 %v3552_v29, %v695_v43  ;;  %vm736_vm8 = vweird.f32 %v3556_v42 }
 0x23c   :  { %v746_v51 = vmul.f32 %v3558_v56, %v4369_v28  ;;  %v711_v53 = vadd.f32 %v3554_v31, %v710_v45  ;;  %vm751_vm9 = vweird.f32 %v3558_v56  ;;  %vm737_vm12 = vmor %vm735_vm3, %vm736_vm8 }
 0x23d   :  { %v732_v54 = vsub.f32 1.0, %v731_v59  ;;  %v700_v60 = vsel %vm699_vm2, %v3552_v29, %v696_v50  ;;  %vm752_vm13 = vmor %vm750_vm11, %vm751_vm9  ;;  %vm785_vm2 = vcmask 256002  }
 0x23e   :  { %v747_v58 = vsub.f32 1.0, %v746_v51  ;;  %v715_v8 = vsel %vm714_vm6, %v3554_v31, %v711_v53  ;;  %v705_v62 = vsel %vm4375_vm14, %v704_v52, %v700_v60  ;;  %vm740_vm14 = vcmp.eq.f32.partialorder %v739_v12, 8.507059e+37 }
 0x23f   :  { %v733_v61 = vmul.f32 %v3556_v42, %v732_v54  ;;  %v720_v63 = vsel %vm717_vm7, %v719_v55, %v715_v8  ;;  %v765_v3 = vmul.f32 %v761_v40, %v705_v62  ;;  %v777_v31 = vrot.slane %v4343_v48, 7 }
 0x240   :  { %v748_v2 = vmul.f32 %v3558_v56, %v747_v58  ;;  %v766_v5 = vmul.f32 %v762_v46, %v720_v63 }
 0x241   :  { %v734_v9 = vadd.f32 %v3556_v42, %v733_v61  ;;  %v767_v17 = vadd.f32 %v765_v3, %v4271_v0 }
 0x242   :  { %v749_v15 = vadd.f32 %v3558_v56, %v748_v2  ;;  %v768_v19 = vadd.f32 %v766_v5, %v4273_v4 }
 0x243   :  { %v738_v20 = vsel %vm737_vm12, %v3556_v42, %v734_v9  ;;  %3559 = vtanh.f32 %v767_v17 }
 0x244   :  { %v753_v23 = vsel %vm752_vm13, %v3558_v56, %v749_v15  ;;  %3561 = vtanh.f32 %v768_v19  ;;  %v743_v25 = vsel %vm740_vm14, %v742_v21, %v738_v20 }
 0x245   :  { %v758_v29 = vsel %vm755_vm15, %v757_v24, %v753_v23  ;;  %v771_v26 = vsub.f32 1.0, %v743_v25  ;;  %v781_v35 = vmul.f32 %v777_v31, %v743_v25 }
 0x246   :  { %v772_v28 = vsub.f32 1.0, %v758_v29  ;;  %v782_v39 = vmul.f32 %v778_v33, %v758_v29 }
 0x249   :  { %v3560_v32 = vpop.eup %3559 }
 0x24a   :  { %v3562_v34 = vpop.eup %3561  ;;  %v773_v36 = vmul.f32 %v3560_v32, %v771_v26 }
 0x24b   :  { %v774_v37 = vmul.f32 %v3562_v34, %v772_v28 }
 0x24c   :  { %v4395_v41 = vadd.f32 %v781_v35, %v773_v36 }
 0x24d   :  { %v4397_v38 = vadd.f32 %v782_v39, %v774_v37 }
 0x24e   :  { %786 = vst.msk [vmem:[#allocation2] sm:$0x4] %vm785_vm2, %v4395_v41  ;;  %v788_v48 = vpack.c.bf16 %v4395_v41, %v4395_v41 }
 0x24f   :  { %787 = vst.msk [vmem:[#allocation2 + $0x8] sm:$0x4] %vm785_vm2, %v4397_v38  ;;  %v789_v44 = vpack.c.bf16 %v4397_v38, %v4397_v38 }
 0x250   :  { %v792_v40 = vunpack.c.l.b16 %v788_v48 }
 0x251   :  { %v793_v42 = vunpack.c.l.b16 %v789_v44 }
 0x252   :  { %v794_v43 = vrot.slane %v792_v40, 2 }
 0x253   :  { %v795_v45 = vrot.slane %v793_v42, 1 }
 0x255   :  { %v796_v46 = vsel %vm459_vm5, %v795_v45, %v794_v43 }
 0x256   :  { %v797_v56 = vpack.c.b16 %v796_v46, %v796_v46 }
 0x258   :  { %3302 = vmatmul.msk.bf16.vlgmr.msrb.gmra.mxu0 %vm269_vm1, %v797_v56  ;;  %3303 = vmatmul.msk.bf16.vlgmr.msrb.gmra.mxu1 %vm269_vm1, %v797_v56 }
 0x259   :  { %3304 = vmatmul.msk.bf16.vlgmr.msrb.gmra.mxu2 %vm269_vm1, %v797_v56  ;;  %1187 = vmatpush.bf16.msrb.mxu0 %v4206_v10 }
 0x25a   :  { %1317 = vmatpush.bf16.msrb.mxu1 %v4188_v1  ;;  %1337 = vmatpush.bf16.msrb.mxu2 %v4196_v7 }
 0x25d   :  { %1188 = vmatpush.bf16.msrb.mxu0 %v4217_v13 }
 0x25e   :  { %1318 = vmatpush.bf16.msrb.mxu1 %v4194_v6  ;;  %1338 = vmatpush.bf16.msrb.mxu2 %v4209_v11 }
 0x2d5   :  { %v810_v59 = vpop.f32.mrf.mxu0  ;;  %v830_v49 = vpop.f32.mrf.mxu1 }
 0x2d6   :  { %v815_v51 = vrot.slane %v810_v59, 5  ;;  %v816_v50 = vrot.slane %v810_v59, 6  ;;  %v835_v52 = vrot.slane %v830_v49, 5  ;;  %v836_v53 = vrot.slane %v830_v49, 6 }
 0x2d8   :  { %v819_v54 = vadd.f32 %v815_v51, %v4244_v18  ;;  %v820_v10 = vadd.f32 %v816_v50, %v4249_v22  ;;  %v839_v1 = vadd.f32 %v835_v52, %v4253_v27  ;;  %v840_v7 = vadd.f32 %v836_v53, %v4255_v30 }
 0x2da   :  { %v3305_v55 = vmul.f32 -1.442695, %v819_v54  ;;  %v3306_v13 = vmul.f32 -1.442695, %v820_v10  ;;  %v3307_v57 = vmul.f32 -1.442695, %v839_v1 }
 0x2db   :  { %v3308_v6 = vmul.f32 -1.442695, %v840_v7 }
 0x2dc   :  { %3563 = vpow2.f32 %v3305_v55  ;;  %v850_v11 = vpop.f32.mrf.mxu2 }
 0x2dd   :  { %3565 = vpow2.f32 %v3306_v13  ;;  %v812_v58 = vpop.f32.mrf.mxu0  ;;  %v832_v60 = vpop.f32.mrf.mxu1  ;;  %v851_v14 = vadd.f32 %v4261_v47, %v850_v11 }
 0x2de   :  { %3567 = vpow2.f32 %v3307_v57 }
 0x2df   :  { %3569 = vpow2.f32 %v3308_v6  ;;  %v931_v29 = vrot.slane %v851_v14, 5  ;;  %v932_v37 = vrot.slane %v851_v14, 6 }
 0x2e2   :  { %v3564_v8 = vpop.eup %3563 }
 0x2e3   :  { %v3566_v61 = vpop.eup %3565  ;;  %v860_v62 = vadd.f32 1.0, %v3564_v8 }
 0x2e4   :  { %v3568_v63 = vpop.eup %3567  ;;  %v861_v2 = vadd.f32 1.0, %v3566_v61  ;;  %v852_v3 = vpop.f32.mrf.mxu2  ;;  %v947_v61 = vrot.slane %v4395_v41, 7 }
 0x2e5   :  { %v3570_v5 = vpop.eup %3569  ;;  %3571 = vrcp.f32 %v860_v62  ;;  %v4421_v9 = vadd.f32 1.0, %v3568_v63  ;;  %v871_v25 = vand.u32 2147483647, %v860_v62  ;;  %v873_v31 = vand.u32 2147483648, %v860_v62 }
 0x2e6   :  { %3573 = vrcp.f32 %v861_v2  ;;  %v4423_v12 = vadd.f32 1.0, %v3570_v5  ;;  %v886_v28 = vand.u32 2147483647, %v861_v2  ;;  %v888_v47 = vand.u32 2147483648, %v861_v2 }
 0x2e7   :  { %3575 = vrcp.f32 %v4421_v9  ;;  %vm867_vm7 = vweird.f32 %v860_v62  ;;  %vm882_vm8 = vweird.f32 %v861_v2  ;;  %v911_v44 = vand.u32 2147483648, %v4421_v9 }
 0x2e8   :  { %3577 = vrcp.f32 %v4423_v12  ;;  %v874_v42 = vor.u32 1.1754944e-38, %v873_v31  ;;  %vm872_vm11 = vcmp.eq.f32.partialorder %v871_v25, 8.507059e+37  ;;  %vm887_vm13 = vcmp.eq.f32.partialorder %v886_v28, 8.507059e+37  ;;  %v4456_v25 = vld [vmem:[#allocation7 + $0x28] sm:$0xff]  ;;  %v4459_v31 = vld [vmem:[#allocation7 + $0x20] sm:$0xff]  ;;  %v3828_v28 = vld [vmem:[#allocation7 + $0x10] sm:$0xff] }
 0x2e9   :  { %v889_v46 = vor.u32 1.1754944e-38, %v888_v47  ;;  %vm905_vm0 = vweird.f32 %v4421_v9  ;;  %v909_v53 = vand.u32 2147483647, %v4421_v9  ;;  %v926_v54 = vand.u32 2147483648, %v4423_v12 }
 0x2ea   :  { %v924_v1 = vand.u32 2147483647, %v4423_v12  ;;  %v912_v57 = vor.u32 1.1754944e-38, %v911_v44 }
 0x2eb   :  { %v3572_v15 = vpop.eup %3571  ;;  %v927_v11 = vor.u32 1.1754944e-38, %v926_v54 }
 0x2ec   :  { %v3574_v16 = vpop.eup %3573  ;;  %v863_v17 = vmul.f32 %v3572_v15, %v860_v62  ;;  %vm868_vm3 = vweird.f32 %v3572_v15 }
 0x2ed   :  { %v3576_v19 = vpop.eup %3575  ;;  %v878_v20 = vmul.f32 %v3574_v16, %v861_v2  ;;  %vm883_vm6 = vweird.f32 %v3574_v16  ;;  %vm869_vm9 = vmor %vm867_vm7, %vm868_vm3  ;;  %v948_v2 = vrot.slane %v4397_v38, 7 }
 0x2ee   :  { %v3578_v21 = vpop.eup %3577  ;;  %v901_v23 = vmul.f32 %v3576_v19, %v4421_v9  ;;  %v864_v24 = vsub.f32 1.0, %v863_v17  ;;  %vm884_vm12 = vmor %vm882_vm8, %vm883_vm6  ;;  %vm906_vm14 = vweird.f32 %v3576_v19  ;;  %vm920_vm6 = vweird.f32 %v4423_v12 }
 0x2ef   :  { %v916_v26 = vmul.f32 %v3578_v21, %v4423_v12  ;;  %v879_v32 = vsub.f32 1.0, %v878_v20  ;;  %vm921_vm15 = vweird.f32 %v3578_v21  ;;  %vm907_vm3 = vmor %vm905_vm0, %vm906_vm14  ;;  %vm910_vm8 = vcmp.eq.f32.partialorder %v909_v53, 8.507059e+37 }
 0x2f0   :  { %v902_v33 = vsub.f32 1.0, %v901_v23  ;;  %v865_v34 = vmul.f32 %v3572_v15, %v864_v24  ;;  %vm922_vm7 = vmor %vm920_vm6, %vm921_vm15  ;;  %vm5152_vm0 = vcmask 257027  }
 0x2f1   :  { %v917_v36 = vsub.f32 1.0, %v916_v26  ;;  %v880_v35 = vmul.f32 %v3574_v16, %v879_v32  ;;  %v3825_v26 = vld [vmem:[#allocation7 + $0x18] sm:$0xff]  ;;  %v3827_v32 = vld [vmem:[#allocation7] sm:$0xff] }
 0x2f2   :  { %v903_v39 = vmul.f32 %v3576_v19, %v902_v33  ;;  %v866_v48 = vadd.f32 %v3572_v15, %v865_v34 }
 0x2f3   :  { %v918_v40 = vmul.f32 %v3578_v21, %v917_v36  ;;  %v881_v43 = vadd.f32 %v3574_v16, %v880_v35 }
 0x2f4   :  { %v870_v45 = vsel %vm869_vm9, %v3572_v15, %v866_v48  ;;  %v904_v56 = vadd.f32 %v3576_v19, %v903_v39  ;;  %vm925_vm9 = vcmp.eq.f32.partialorder %v924_v1, 8.507059e+37 }
 0x2f5   :  { %v875_v59 = vsel %vm872_vm11, %v874_v42, %v870_v45  ;;  %v885_v49 = vsel %vm884_vm12, %v3574_v16, %v881_v43  ;;  %v919_v51 = vadd.f32 %v3578_v21, %v918_v40 }
 0x2f6   :  { %v890_v50 = vsel %vm887_vm13, %v889_v46, %v885_v49  ;;  %v935_v52 = vmul.f32 %v931_v29, %v875_v59  ;;  %v908_v55 = vsel %vm907_vm3, %v3576_v19, %v904_v56  ;;  %v3824_v29 = vld [vmem:[#allocation7 + $0x8] sm:$0xff] }
 0x2f7   :  { %v936_v10 = vmul.f32 %v932_v37, %v890_v50  ;;  %v923_v6 = vsel %vm922_vm7, %v3578_v21, %v919_v51  ;;  %v913_v58 = vsel %vm910_vm8, %v912_v57, %v908_v55 }
 0x2f8   :  { %v937_v7 = vadd.f32 %v935_v52, %v4271_v0  ;;  %v928_v60 = vsel %vm925_vm9, %v927_v11, %v923_v6  ;;  %v941_v8 = vsub.f32 1.0, %v913_v58  ;;  %v951_v9 = vmul.f32 %v947_v61, %v913_v58 }
 0x2f9   :  { %v938_v13 = vadd.f32 %v936_v10, %v4273_v4  ;;  %v942_v63 = vsub.f32 1.0, %v928_v60  ;;  %v952_v14 = vmul.f32 %v948_v2, %v928_v60  ;;  %v4480_v60 = vld [vmem:[#allocation9] ss:$0 sm:$0xff] }
 0x2fa   :  { %3579 = vtanh.f32 %v937_v7 }
 0x2fb   :  { %3581 = vtanh.f32 %v938_v13 }
 0x300   :  { %v3580_v62 = vpop.eup %3579 }
 0x301   :  { %v3582_v3 = vpop.eup %3581  ;;  %v943_v5 = vmul.f32 %v3580_v62, %v941_v8 }
 0x302   :  { %v944_v12 = vmul.f32 %v3582_v3, %v942_v63 }
 0x303   :  { %v4440_v15 = vadd.f32 %v951_v9, %v943_v5 }
 0x304   :  { %v4442_v16 = vadd.f32 %v952_v14, %v944_v12 }
 0x305   :  { %956 = vst.msk [vmem:[#allocation2] sm:$0x8] %vm5152_vm0, %v4440_v15  ;;  %v958_v41 = vpack.c.bf16 %v4440_v15, %v4440_v15 }
 0x306   :  { %957 = vst.msk [vmem:[#allocation2 + $0x8] sm:$0x8] %vm5152_vm0, %v4442_v16  ;;  %v959_v38 = vpack.c.bf16 %v4442_v16, %v4442_v16 }
 0x307   :  { %v962_v17 = vunpack.c.l.b16 %v958_v41 }
 0x308   :  { %v963_v19 = vunpack.c.l.b16 %v959_v38 }
 0x309   :  { %v964_v20 = vrot.slane %v962_v17, 3 }
 0x30a   :  { %v965_v21 = vrot.slane %v963_v19, 2 }
 0x30c   :  { %v966_v23 = vsel %vm459_vm5, %v965_v21, %v964_v20 }
 0x30d   :  { %v967_v24 = vpack.c.b16 %v966_v23, %v966_v23 }
 0x30f   :  { %3309 = vmatmul.msk.bf16.vlgmr.msrb.gmra.mxu3 %vm269_vm1, %v967_v24  ;;  %3310 = vmatmul.msk.bf16.vlgmr.msra.gmra.mxu0 %vm269_vm1, %v967_v24 }
 0x310   :  { %3311 = vmatmul.msk.bf16.vlgmr.msra.gmra.mxu1 %vm269_vm1, %v967_v24  ;;  %1357 = vmatpush.bf16.msrb.mxu3 %v4456_v25 }
 0x311   :  { %1487 = vmatpush.bf16.msra.mxu0 %v3824_v29  ;;  %1507 = vmatpush.bf16.msra.mxu1 %v3825_v26 }
 0x314   :  { %1358 = vmatpush.bf16.msrb.mxu3 %v4459_v31 }
 0x315   :  { %1488 = vmatpush.bf16.msra.mxu0 %v3827_v32  ;;  %1508 = vmatpush.bf16.msra.mxu1 %v3828_v28 }
 0x38c   :  { %v1000_v33 = vpop.f32.mrf.mxu0 }
 0x38d   :  { %v1005_v34 = vrot.slane %v1000_v33, 4  ;;  %v1006_v47 = vrot.slane %v1000_v33, 5  ;;  %v1020_v36 = vpop.f32.mrf.mxu1 }
 0x38e   :  { %v1021_v8 = vadd.f32 %v4480_v60, %v1020_v36 }
 0x38f   :  { %v1009_v35 = vadd.f32 %v1005_v34, %v4253_v27  ;;  %v1010_v37 = vadd.f32 %v1006_v47, %v4255_v30 }
 0x390   :  { %v1101_v9 = vrot.slane %v1021_v8, 4  ;;  %v1102_v24 = vrot.slane %v1021_v8, 5 }
 0x391   :  { %v3314_v39 = vmul.f32 -1.442695, %v1009_v35  ;;  %v3315_v48 = vmul.f32 -1.442695, %v1010_v37 }
 0x392   :  { %v980_v44 = vpop.f32.mrf.mxu3 }
 0x393   :  { %3583 = vpow2.f32 %v3314_v39  ;;  %v985_v40 = vrot.slane %v980_v44, 4  ;;  %v986_v42 = vrot.slane %v980_v44, 5 }
 0x394   :  { %3585 = vpow2.f32 %v3315_v48  ;;  %v1002_v43 = vpop.f32.mrf.mxu0 }
 0x395   :  { %v989_v45 = vadd.f32 %v985_v40, %v4244_v18  ;;  %v990_v46 = vadd.f32 %v986_v42, %v4249_v22  ;;  %v1022_v56 = vpop.f32.mrf.mxu1 }
 0x397   :  { %v3312_v59 = vmul.f32 -1.442695, %v989_v45  ;;  %v3313_v49 = vmul.f32 -1.442695, %v990_v46 }
 0x399   :  { %v3584_v51 = vpop.eup %3583  ;;  %3587 = vpow2.f32 %v3312_v59 }
 0x39a   :  { %v3586_v50 = vpop.eup %3585  ;;  %v4466_v52 = vadd.f32 1.0, %v3584_v51  ;;  %3589 = vpow2.f32 %v3313_v49  ;;  %v982_v53 = vpop.f32.mrf.mxu3 }
 0x39b   :  { %v4468_v54 = vadd.f32 1.0, %v3586_v50  ;;  %v1117_v53 = vrot.slane %v4440_v15, 7 }
 0x39c   :  { %3591 = vrcp.f32 %v4466_v52  ;;  %v1081_v26 = vand.u32 2147483648, %v4466_v52  ;;  %v1079_v44 = vand.u32 2147483647, %v4466_v52 }
 0x39d   :  { %3593 = vrcp.f32 %v4468_v54  ;;  %v1096_v40 = vand.u32 2147483648, %v4468_v54  ;;  %v1094_v43 = vand.u32 2147483647, %v4468_v54 }
 0x39e   :  { %v1082_v59 = vor.u32 1.1754944e-38, %v1081_v26 }
 0x39f   :  { %v3588_v10 = vpop.eup %3587  ;;  %v1097_v51 = vor.u32 1.1754944e-38, %v1096_v40 }
 0x3a0   :  { %v3590_v1 = vpop.eup %3589  ;;  %v1030_v7 = vadd.f32 1.0, %v3588_v10 }
 0x3a1   :  { %v1031_v55 = vadd.f32 1.0, %v3590_v1  ;;  %v1118_v1 = vrot.slane %v4442_v16, 7 }
 0x3a2   :  { %3595 = vrcp.f32 %v1030_v7  ;;  %v4472_v13 = vpop.eup %3591  ;;  %v1043_v12 = vand.u32 2147483648, %v1030_v7  ;;  %v1041_v38 = vand.u32 2147483647, %v1030_v7  ;;  %vm1037_vm13 = vweird.f32 %v1030_v7 }
 0x3a3   :  { %3597 = vrcp.f32 %v1031_v55  ;;  %v4474_v57 = vpop.eup %3593  ;;  %v1071_v6 = vmul.f32 %v4472_v13, %v4466_v52  ;;  %v1058_v17 = vand.u32 2147483648, %v1031_v55  ;;  %v1056_v21 = vand.u32 2147483647, %v1031_v55 }
 0x3a4   :  { %v1086_v11 = vmul.f32 %v4474_v57, %v4468_v54  ;;  %v1044_v32 = vor.u32 1.1754944e-38, %v1043_v12  ;;  %vm1052_vm15 = vweird.f32 %v1031_v55  ;;  %vm1076_vm3 = vweird.f32 %v4472_v13 }
 0x3a5   :  { %v1072_v63 = vsub.f32 1.0, %v1071_v6  ;;  %vm1042_vm6 = vcmp.eq.f32.partialorder %v1041_v38, 8.507059e+37  ;;  %v1059_v34 = vor.u32 1.1754944e-38, %v1058_v17  ;;  %vm1057_vm8 = vcmp.eq.f32.partialorder %v1056_v21, 8.507059e+37 }
 0x3a6   :  { %v1087_v3 = vsub.f32 1.0, %v1086_v11  ;;  %vm1091_vm9 = vweird.f32 %v4474_v57 }
 0x3a7   :  { %v1073_v19 = vmul.f32 %v4472_v13, %v1072_v63 }
 0x3a8   :  { %v3596_v58 = vpop.eup %3595  ;;  %v1088_v23 = vmul.f32 %v4474_v57, %v1087_v3 }
 0x3a9   :  { %v3598_v61 = vpop.eup %3597  ;;  %v1033_v62 = vmul.f32 %v3596_v58, %v1030_v7  ;;  %vm1038_vm11 = vweird.f32 %v3596_v58  ;;  %v1074_v47 = vadd.f32 %v4472_v13, %v1073_v19 }
 0x3aa   :  { %v1048_v2 = vmul.f32 %v3598_v61, %v1031_v55  ;;  %vm1053_vm12 = vweird.f32 %v3598_v61  ;;  %vm1039_vm14 = vmor %vm1037_vm13, %vm1038_vm11  ;;  %v1089_v37 = vadd.f32 %v4474_v57, %v1088_v23  ;;  %vm1075_vm11 = vweird.f32 %v4466_v52 }
 0x3ab   :  { %v1034_v5 = vsub.f32 1.0, %v1033_v62  ;;  %vm1054_vm7 = vmor %vm1052_vm15, %vm1053_vm12  ;;  %vm1090_vm13 = vweird.f32 %v4468_v54  ;;  %vm1080_vm15 = vcmp.eq.f32.partialorder %v1079_v44, 8.507059e+37 }
 0x3ac   :  { %v1049_v14 = vsub.f32 1.0, %v1048_v2  ;;  %vm1077_vm12 = vmor %vm1075_vm11, %vm1076_vm3  ;;  %vm1095_vm3 = vcmp.eq.f32.partialorder %v1094_v43, 8.507059e+37 }
 0x3ad   :  { %v1035_v41 = vmul.f32 %v3596_v58, %v1034_v5  ;;  %v1078_v46 = vsel %vm1077_vm12, %v4472_v13, %v1074_v47 }
 0x3ae   :  { %v1050_v20 = vmul.f32 %v3598_v61, %v1049_v14  ;;  %v1083_v50 = vsel %vm1080_vm15, %v1082_v59, %v1078_v46 }
 0x3af   :  { %v1036_v29 = vadd.f32 %v3596_v58, %v1035_v41  ;;  %v1111_v54 = vsub.f32 1.0, %v1083_v50  ;;  %v1121_v13 = vmul.f32 %v1117_v53, %v1083_v50 }
 0x3b0   :  { %v1051_v28 = vadd.f32 %v3598_v61, %v1050_v20 }
 0x3b1   :  { %v1040_v33 = vsel %vm1039_vm14, %v3596_v58, %v1036_v29  ;;  %vm1092_vm14 = vmor %vm1090_vm13, %vm1091_vm9 }
 0x3b2   :  { %v1045_v36 = vsel %vm1042_vm6, %v1044_v32, %v1040_v33  ;;  %v1055_v35 = vsel %vm1054_vm7, %v3598_v61, %v1051_v28  ;;  %v1093_v49 = vsel %vm1092_vm14, %v4474_v57, %v1089_v37  ;;  %vm5151_vm6 = vcmask 258052  }
 0x3b3   :  { %v1060_v39 = vsel %vm1057_vm8, %v1059_v34, %v1055_v35  ;;  %v1105_v48 = vmul.f32 %v1101_v9, %v1045_v36  ;;  %v1098_v52 = vsel %vm1095_vm3, %v1097_v51, %v1093_v49 }
 0x3b4   :  { %v1106_v42 = vmul.f32 %v1102_v24, %v1060_v39  ;;  %v1112_v7 = vsub.f32 1.0, %v1098_v52  ;;  %v1122_v11 = vmul.f32 %v1118_v1, %v1098_v52 }
 0x3b5   :  { %v1107_v45 = vadd.f32 %v1105_v48, %v4271_v0 }
 0x3b6   :  { %v1108_v56 = vadd.f32 %v1106_v42, %v4273_v4 }
 0x3b7   :  { %3599 = vtanh.f32 %v1107_v45 }
 0x3b8   :  { %3601 = vtanh.f32 %v1108_v56 }
 0x3bd   :  { %v3600_v10 = vpop.eup %3599 }
 0x3be   :  { %v3602_v55 = vpop.eup %3601  ;;  %v1113_v6 = vmul.f32 %v3600_v10, %v1111_v54 }
 0x3bf   :  { %v1114_v58 = vmul.f32 %v3602_v55, %v1112_v7 }
 0x3c0   :  { %v4503_v57 = vadd.f32 %v1121_v13, %v1113_v6 }
 0x3c1   :  { %v4505_v8 = vadd.f32 %v1122_v11, %v1114_v58 }
 0x3c2   :  { %1126 = vst.msk [vmem:[#allocation2] sm:$0x10] %vm5151_vm6, %v4503_v57  ;;  %v1128_v15 = vpack.c.bf16 %v4503_v57, %v4503_v57 }
 0x3c3   :  { %1127 = vst.msk [vmem:[#allocation2 + $0x8] sm:$0x10] %vm5151_vm6, %v4505_v8  ;;  %v1129_v16 = vpack.c.bf16 %v4505_v8, %v4505_v8 }
 0x3c4   :  { %v1132_v61 = vunpack.c.l.b16 %v1128_v15 }
 0x3c5   :  { %v1133_v62 = vunpack.c.l.b16 %v1129_v16 }
 0x3c6   :  { %v1134_v63 = vrot.slane %v1132_v61, 4 }
 0x3c7   :  { %v1135_v2 = vrot.slane %v1133_v62, 3 }
 0x3c9   :  { %v1136_v3 = vsel %vm459_vm5, %v1135_v2, %v1134_v63 }
 0x3ca   :  { %v1137_v5 = vpack.c.b16 %v1136_v3, %v1136_v3 }
 0x3cc   :  { %3316 = vmatmul.msk.bf16.vlgmr.msra.gmra.mxu2 %vm269_vm1, %v1137_v5  ;;  %3317 = vmatmul.msk.bf16.vlgmr.msra.gmra.mxu3 %vm269_vm1, %v1137_v5 }
 0x3cd   :  { %3318 = vmatmul.msk.bf16.vlgmr.msrb.gmra.mxu0 %vm269_vm1, %v1137_v5  ;;  %1527 = vmatpush.bf16.msra.mxu2 %v4456_v25 }
 0x3d1   :  { %1528 = vmatpush.bf16.msra.mxu2 %v4459_v31 }
 0x44a   :  { %v1190_v9 = vpop.f32.mrf.mxu0 }
 0x44b   :  { %v1191_v40 = vadd.f32 %v4480_v60, %v1190_v9 }
 0x44d   :  { %v1271_v56 = vrot.slane %v1191_v40, 3  ;;  %v1272_v52 = vrot.slane %v1191_v40, 4 }
 0x44f   :  { %v1150_v12 = vpop.f32.mrf.mxu2  ;;  %v1170_v14 = vpop.f32.mrf.mxu3 }
 0x450   :  { %v1155_v41 = vrot.slane %v1150_v12, 3  ;;  %v1156_v38 = vrot.slane %v1150_v12, 4  ;;  %v1175_v17 = vrot.slane %v1170_v14, 3  ;;  %v1176_v19 = vrot.slane %v1170_v14, 4 }
 0x452   :  { %v1159_v20 = vadd.f32 %v1155_v41, %v4244_v18  ;;  %v1160_v21 = vadd.f32 %v1156_v38, %v4249_v22  ;;  %v1179_v23 = vadd.f32 %v1175_v17, %v4253_v27  ;;  %v1180_v24 = vadd.f32 %v1176_v19, %v4255_v30  ;;  %v1192_v29 = vpop.f32.mrf.mxu0 }
 0x454   :  { %v3319_v26 = vmul.f32 -1.442695, %v1159_v20  ;;  %v3320_v25 = vmul.f32 -1.442695, %v1160_v21  ;;  %v3321_v32 = vmul.f32 -1.442695, %v1179_v23 }
 0x455   :  { %v3322_v31 = vmul.f32 -1.442695, %v1180_v24 }
 0x456   :  { %3603 = vpow2.f32 %v3319_v26 }
 0x457   :  { %3605 = vpow2.f32 %v3320_v25  ;;  %v1152_v28 = vpop.f32.mrf.mxu2  ;;  %v1172_v33 = vpop.f32.mrf.mxu3 }
 0x458   :  { %3607 = vpow2.f32 %v3321_v32 }
 0x459   :  { %3609 = vpow2.f32 %v3322_v31 }
 0x45c   :  { %v3604_v34 = vpop.eup %3603 }
 0x45d   :  { %v3606_v47 = vpop.eup %3605  ;;  %v1200_v36 = vadd.f32 1.0, %v3604_v34 }
 0x45e   :  { %v3608_v35 = vpop.eup %3607  ;;  %v1201_v37 = vadd.f32 1.0, %v3606_v47  ;;  %v1287_v47 = vrot.slane %v4503_v57, 7 }
 0x45f   :  { %v3610_v39 = vpop.eup %3609  ;;  %3611 = vrcp.f32 %v1200_v36  ;;  %v4525_v48 = vadd.f32 1.0, %v3608_v35  ;;  %v1211_v49 = vand.u32 2147483647, %v1200_v36  ;;  %v1213_v51 = vand.u32 2147483648, %v1200_v36 }
 0x460   :  { %3613 = vrcp.f32 %v1201_v37  ;;  %v4527_v44 = vadd.f32 1.0, %v3610_v39  ;;  %v1226_v54 = vand.u32 2147483647, %v1201_v37  ;;  %v1228_v10 = vand.u32 2147483648, %v1201_v37 }
 0x461   :  { %3615 = vrcp.f32 %v4525_v48  ;;  %vm1207_vm7 = vweird.f32 %v1200_v36  ;;  %vm1222_vm9 = vweird.f32 %v1201_v37  ;;  %vm1212_vm12 = vcmp.eq.f32.partialorder %v1211_v49, 8.507059e+37 }
 0x462   :  { %3617 = vrcp.f32 %v4527_v44  ;;  %v1214_v58 = vor.u32 1.1754944e-38, %v1213_v51  ;;  %vm1227_vm14 = vcmp.eq.f32.partialorder %v1226_v54, 8.507059e+37  ;;  %v1229_v61 = vor.u32 1.1754944e-38, %v1228_v10 }
 0x463   :  { %vm1245_vm3 = vweird.f32 %v4525_v48  ;;  %v1251_v3 = vand.u32 2147483648, %v4525_v48  ;;  %v1249_v19 = vand.u32 2147483647, %v4525_v48  ;;  %v1266_v21 = vand.u32 2147483648, %v4527_v44 }
 0x464   :  { %v1264_v24 = vand.u32 2147483647, %v4527_v44 }
 0x465   :  { %v3612_v42 = vpop.eup %3611  ;;  %v1252_v25 = vor.u32 1.1754944e-38, %v1251_v3  ;;  %v1267_v31 = vor.u32 1.1754944e-38, %v1266_v21 }
 0x466   :  { %v3614_v43 = vpop.eup %3613  ;;  %v1203_v45 = vmul.f32 %v3612_v42, %v1200_v36  ;;  %vm1208_vm8 = vweird.f32 %v3612_v42 }
 0x467   :  { %v1218_v46 = vmul.f32 %v3614_v43, %v1201_v37  ;;  %v3616_v50 = vpop.eup %3615  ;;  %vm1223_vm11 = vweird.f32 %v3614_v43  ;;  %vm1209_vm13 = vmor %vm1207_vm7, %vm1208_vm8  ;;  %vm1260_vm8 = vweird.f32 %v4527_v44  ;;  %v1288_v37 = vrot.slane %v4505_v8, 7 }
 0x468   :  { %v1204_v59 = vsub.f32 1.0, %v1203_v45  ;;  %v3618_v1 = vpop.eup %3617  ;;  %v1241_v55 = vmul.f32 %v3616_v50, %v4525_v48  ;;  %vm1224_vm15 = vmor %vm1222_vm9, %vm1223_vm11  ;;  %vm1246_vm6 = vweird.f32 %v3616_v50  ;;  %vm1250_vm11 = vcmp.eq.f32.partialorder %v1249_v19, 8.507059e+37 }
 0x469   :  { %v1219_v53 = vsub.f32 1.0, %v1218_v46  ;;  %v1256_v6 = vmul.f32 %v3618_v1, %v4527_v44  ;;  %vm1261_vm0 = vweird.f32 %v3618_v1  ;;  %vm1247_vm7 = vmor %vm1245_vm3, %vm1246_vm6 }
 0x46a   :  { %v1205_v7 = vmul.f32 %v3612_v42, %v1204_v59  ;;  %v1242_v15 = vsub.f32 1.0, %v1241_v55  ;;  %vm1262_vm9 = vmor %vm1260_vm8, %vm1261_vm0  ;;  %vm1295_vm0 = vcmask 259077  }
 0x46b   :  { %v1220_v13 = vmul.f32 %v3614_v43, %v1219_v53  ;;  %v1257_v62 = vsub.f32 1.0, %v1256_v6 }
 0x46c   :  { %v1206_v11 = vadd.f32 %v3612_v42, %v1205_v7  ;;  %v1243_v2 = vmul.f32 %v3616_v50, %v1242_v15 }
 0x46d   :  { %v1221_v16 = vadd.f32 %v3614_v43, %v1220_v13  ;;  %v1258_v12 = vmul.f32 %v3618_v1, %v1257_v62 }
 0x46e   :  { %v1210_v63 = vsel %vm1209_vm13, %v3612_v42, %v1206_v11  ;;  %v1244_v38 = vadd.f32 %v3616_v50, %v1243_v2 }
 0x46f   :  { %v1215_v5 = vsel %vm1212_vm12, %v1214_v58, %v1210_v63  ;;  %v1225_v9 = vsel %vm1224_vm15, %v3614_v43, %v1221_v16  ;;  %v1259_v20 = vadd.f32 %v3618_v1, %v1258_v12  ;;  %vm1265_vm12 = vcmp.eq.f32.partialorder %v1264_v24, 8.507059e+37 }
 0x470   :  { %v1230_v14 = vsel %vm1227_vm14, %v1229_v61, %v1225_v9  ;;  %v1275_v41 = vmul.f32 %v1271_v56, %v1215_v5  ;;  %v1248_v26 = vsel %vm1247_vm7, %v3616_v50, %v1244_v38 }
 0x471   :  { %v1276_v17 = vmul.f32 %v1272_v52, %v1230_v14  ;;  %v1263_v32 = vsel %vm1262_vm9, %v3618_v1, %v1259_v20  ;;  %v1253_v28 = vsel %vm1250_vm11, %v1252_v25, %v1248_v26 }
 0x472   :  { %v1277_v23 = vadd.f32 %v1275_v41, %v4271_v0  ;;  %v1268_v33 = vsel %vm1265_vm12, %v1267_v31, %v1263_v32  ;;  %v1281_v34 = vsub.f32 1.0, %v1253_v28  ;;  %v1291_v48 = vmul.f32 %v1287_v47, %v1253_v28 }
 0x473   :  { %v1278_v29 = vadd.f32 %v1276_v17, %v4273_v4  ;;  %v1282_v35 = vsub.f32 1.0, %v1268_v33  ;;  %v1292_v40 = vmul.f32 %v1288_v37, %v1268_v33 }
 0x474   :  { %3619 = vtanh.f32 %v1277_v23 }
 0x475   :  { %3621 = vtanh.f32 %v1278_v29 }
 0x47a   :  { %v3620_v36 = vpop.eup %3619 }
 0x47b   :  { %v3622_v39 = vpop.eup %3621  ;;  %v1283_v44 = vmul.f32 %v3620_v36, %v1281_v34 }
 0x47c   :  { %v1284_v42 = vmul.f32 %v3622_v39, %v1282_v35 }
 0x47d   :  { %v4546_v43 = vadd.f32 %v1291_v48, %v1283_v44 }
 0x47e   :  { %v4548_v45 = vadd.f32 %v1292_v40, %v1284_v42 }
 0x47f   :  { %1296 = vst.msk [vmem:[#allocation2] sm:$0x20] %vm1295_vm0, %v4546_v43  ;;  %v1298_v57 = vpack.c.bf16 %v4546_v43, %v4546_v43 }
 0x480   :  { %1297 = vst.msk [vmem:[#allocation2 + $0x8] sm:$0x20] %vm1295_vm0, %v4548_v45  ;;  %v1299_v8 = vpack.c.bf16 %v4548_v45, %v4548_v45 }
 0x481   :  { %v1302_v46 = vunpack.c.l.b16 %v1298_v57 }
 0x482   :  { %v1303_v56 = vunpack.c.l.b16 %v1299_v8 }
 0x483   :  { %v1304_v59 = vrot.slane %v1302_v46, 5 }
 0x484   :  { %v1305_v49 = vrot.slane %v1303_v56, 4 }
 0x486   :  { %v1306_v51 = vsel %vm459_vm5, %v1305_v49, %v1304_v59 }
 0x487   :  { %v1307_v50 = vpack.c.b16 %v1306_v51, %v1306_v51 }
 0x489   :  { %3323 = vmatmul.msk.bf16.vlgmr.msrb.gmra.mxu1 %vm269_vm1, %v1307_v50  ;;  %3324 = vmatmul.msk.bf16.vlgmr.msrb.gmra.mxu2 %vm269_vm1, %v1307_v50 }
 0x48a   :  { %3325 = vmatmul.msk.bf16.vlgmr.msrb.gmra.mxu3 %vm269_vm1, %v1307_v50 }
 0x506   :  { %v1320_v52 = vpop.f32.mrf.mxu1 }
 0x507   :  { %v1325_v53 = vrot.slane %v1320_v52, 2  ;;  %v1326_v54 = vrot.slane %v1320_v52, 3 }
 0x509   :  { %v1329_v10 = vadd.f32 %v1325_v53, %v4244_v18  ;;  %v1330_v1 = vadd.f32 %v1326_v54, %v4249_v22 }
 0x50b   :  { %v3326_v7 = vmul.f32 -1.442695, %v1329_v10  ;;  %v3327_v55 = vmul.f32 -1.442695, %v1330_v1 }
 0x50c   :  { %v1340_v13 = vpop.f32.mrf.mxu2 }
 0x50d   :  { %3623 = vpow2.f32 %v3326_v7  ;;  %v1345_v6 = vrot.slane %v1340_v13, 2  ;;  %v1346_v11 = vrot.slane %v1340_v13, 3  ;;  %v1360_v58 = vpop.f32.mrf.mxu3 }
 0x50e   :  { %3625 = vpow2.f32 %v3327_v55  ;;  %v1322_v15 = vpop.f32.mrf.mxu1  ;;  %v1361_v23 = vadd.f32 %v4480_v60, %v1360_v58 }
 0x50f   :  { %v1349_v16 = vadd.f32 %v1345_v6, %v4253_v27  ;;  %v1350_v61 = vadd.f32 %v1346_v11, %v4255_v30 }
 0x510   :  { %v1441_v34 = vrot.slane %v1361_v23, 2  ;;  %v1442_v37 = vrot.slane %v1361_v23, 3 }
 0x511   :  { %v3328_v62 = vmul.f32 -1.442695, %v1349_v16  ;;  %v3329_v63 = vmul.f32 -1.442695, %v1350_v61 }
 0x513   :  { %v3624_v2 = vpop.eup %3623  ;;  %3627 = vpow2.f32 %v3328_v62 }
 0x514   :  { %v3626_v3 = vpop.eup %3625  ;;  %v1370_v5 = vadd.f32 1.0, %v3624_v2  ;;  %3629 = vpow2.f32 %v3329_v63  ;;  %v1342_v9 = vpop.f32.mrf.mxu2 }
 0x515   :  { %v1371_v12 = vadd.f32 1.0, %v3626_v3  ;;  %v1362_v14 = vpop.f32.mrf.mxu3 }
 0x516   :  { %3631 = vrcp.f32 %v1370_v5  ;;  %v1381_v26 = vand.u32 2147483647, %v1370_v5  ;;  %v1383_v32 = vand.u32 2147483648, %v1370_v5  ;;  %vm1377_vm14 = vweird.f32 %v1370_v5 }
 0x517   :  { %3633 = vrcp.f32 %v1371_v12  ;;  %v1396_v28 = vand.u32 2147483647, %v1371_v12  ;;  %v1398_v33 = vand.u32 2147483648, %v1371_v12  ;;  %vm1392_vm3 = vweird.f32 %v1371_v12 }
 0x518   :  { %vm4574_vm15 = vcmp.eq.f32.partialorder %v1381_v26, 8.507059e+37  ;;  %v1384_v57 = vor.u32 1.1754944e-38, %v1383_v32 }
 0x519   :  { %v3628_v41 = vpop.eup %3627  ;;  %vm1397_vm11 = vcmp.eq.f32.partialorder %v1396_v28, 8.507059e+37  ;;  %v1399_v56 = vor.u32 1.1754944e-38, %v1398_v33 }
 0x51a   :  { %v3630_v38 = vpop.eup %3629  ;;  %v4566_v17 = vadd.f32 1.0, %v3628_v41 }
 0x51b   :  { %v4568_v19 = vadd.f32 1.0, %v3630_v38  ;;  %v1458_v38 = vrot.slane %v4548_v45, 7 }
 0x51c   :  { %v3632_v20 = vpop.eup %3631  ;;  %3635 = vrcp.f32 %v4566_v17  ;;  %vm1415_vm8 = vweird.f32 %v4566_v17  ;;  %v1421_v59 = vand.u32 2147483648, %v4566_v17  ;;  %v1419_v13 = vand.u32 2147483647, %v4566_v17 }
 0x51d   :  { %v3634_v21 = vpop.eup %3633  ;;  %3637 = vrcp.f32 %v4568_v19  ;;  %v1373_v24 = vmul.f32 %v3632_v20, %v1370_v5  ;;  %vm1378_vm6 = vweird.f32 %v3632_v20  ;;  %v1436_v6 = vand.u32 2147483648, %v4568_v19 }
 0x51e   :  { %v1388_v29 = vmul.f32 %v3634_v21, %v1371_v12  ;;  %vm1393_vm13 = vweird.f32 %v3634_v21  ;;  %vm1379_vm7 = vmor %vm1377_vm14, %vm1378_vm6  ;;  %v1434_v58 = vand.u32 2147483647, %v4568_v19  ;;  %v1422_v62 = vor.u32 1.1754944e-38, %v1421_v59 }
 0x51f   :  { %v1374_v25 = vsub.f32 1.0, %v1373_v24  ;;  %vm1394_vm9 = vmor %vm1392_vm3, %vm1393_vm13  ;;  %vm1430_vm13 = vweird.f32 %v4568_v19  ;;  %v1437_v2 = vor.u32 1.1754944e-38, %v1436_v6  ;;  %vm1420_vm3 = vcmp.eq.f32.partialorder %v1419_v13, 8.507059e+37  ;;  %v3466_v13 = vld [vmem:[#allocation10 + $0x18] sm:$0xff]  ;;  %v3463_v6 = vld [vmem:[#allocation10] sm:$0xff] }
 0x520   :  { %v1389_v31 = vsub.f32 1.0, %v1388_v29  ;;  %v1457_v12 = vrot.slane %v4546_v43, 7  ;;  %1713 = vmatpush.bf16.msrb.mxu0 %v3466_v13 }
 0x521   :  { %v1375_v36 = vmul.f32 %v3632_v20, %v1374_v25 }
 0x522   :  { %v3636_v47 = vpop.eup %3635  ;;  %v1390_v35 = vmul.f32 %v3634_v21, %v1389_v31 }
 0x523   :  { %v3638_v39 = vpop.eup %3637  ;;  %v1411_v48 = vmul.f32 %v3636_v47, %v4566_v17  ;;  %v1376_v42 = vadd.f32 %v3632_v20, %v1375_v36  ;;  %vm1416_vm12 = vweird.f32 %v3636_v47 }
 0x524   :  { %v1426_v40 = vmul.f32 %v3638_v39, %v4568_v19  ;;  %v1391_v8 = vadd.f32 %v3634_v21, %v1390_v35  ;;  %vm1431_vm6 = vweird.f32 %v3638_v39  ;;  %vm1417_vm14 = vmor %vm1415_vm8, %vm1416_vm12  ;;  %vm1465_vm8 = vcmask 260102  }
 0x525   :  { %v1412_v46 = vsub.f32 1.0, %v1411_v48  ;;  %v1380_v51 = vsel %vm1379_vm7, %v3632_v20, %v1376_v42  ;;  %vm1435_vm7 = vcmp.eq.f32.partialorder %v1434_v58, 8.507059e+37 }
 0x526   :  { %v1427_v49 = vsub.f32 1.0, %v1426_v40  ;;  %v1395_v50 = vsel %vm1394_vm9, %v3634_v21, %v1391_v8  ;;  %v1385_v53 = vsel %vm4574_vm15, %v1384_v57, %v1380_v51  ;;  %vm1432_vm15 = vmor %vm1430_vm13, %vm1431_vm6 }
 0x527   :  { %v1413_v52 = vmul.f32 %v3636_v47, %v1412_v46  ;;  %v1400_v54 = vsel %vm1397_vm11, %v1399_v56, %v1395_v50  ;;  %v1445_v1 = vmul.f32 %v1441_v34, %v1385_v53 }
 0x528   :  { %v1428_v10 = vmul.f32 %v3638_v39, %v1427_v49  ;;  %v1446_v7 = vmul.f32 %v1442_v37, %v1400_v54 }
 0x529   :  { %v1414_v55 = vadd.f32 %v3636_v47, %v1413_v52  ;;  %v1447_v15 = vadd.f32 %v1445_v1, %v4271_v0  ;;  %v3464_v1 = vld [vmem:[#allocation10 + $0x8] sm:$0xff] }
 0x52a   :  { %v1429_v11 = vadd.f32 %v3638_v39, %v1428_v10  ;;  %v1448_v16 = vadd.f32 %v1446_v7, %v4273_v4  ;;  %v4626_v7 = vld [vmem:[#allocation12 + $0x8] sm:$0xff]  ;;  %1677 = vmatpush.bf16.msra.mxu3 %v3464_v1 }
 0x52b   :  { %v1418_v61 = vsel %vm1417_vm14, %v3636_v47, %v1414_v55  ;;  %3639 = vtanh.f32 %v1447_v15  ;;  %1796 = vmatpush.bf16.msrb.mxu2 %v4626_v7  ;;  %v3465_v15 = vld [vmem:[#allocation10 + $0x10] sm:$0xff] }
 0x52c   :  { %v1433_v63 = vsel %vm1432_vm15, %v3638_v39, %v1429_v11  ;;  %3641 = vtanh.f32 %v1448_v16  ;;  %v1423_v3 = vsel %vm1420_vm3, %v1422_v62, %v1418_v61  ;;  %v3468_v11 = vld [vmem:[#allocation10 + $0x28] sm:$0xff]  ;;  %v4632_v16 = vld [vmem:[#allocation12] sm:$0xff]  ;;  %1714 = vmatpush.bf16.msrb.mxu0 %v3465_v15 }
 0x52d   :  { %v1438_v5 = vsel %vm1435_vm7, %v1437_v2, %v1433_v63  ;;  %v1451_v9 = vsub.f32 1.0, %v1423_v3  ;;  %v1461_v20 = vmul.f32 %v1457_v12, %v1423_v3  ;;  %1749 = vmatpush.bf16.msrb.mxu1 %v3468_v11  ;;  %v3467_v63 = vld [vmem:[#allocation10 + $0x20] sm:$0xff] }
 0x52e   :  { %v1452_v41 = vsub.f32 1.0, %v1438_v5  ;;  %v1462_v23 = vmul.f32 %v1458_v38, %v1438_v5  ;;  %1678 = vmatpush.bf16.msra.mxu3 %v3463_v6  ;;  %v4694_v6 = vld [vmem:[#allocation12 + $0x28] sm:$0xff] }
 0x52f   :  { %1797 = vmatpush.bf16.msrb.mxu2 %v4632_v16 }
 0x531   :  { %v3640_v14 = vpop.eup %3639  ;;  %1750 = vmatpush.bf16.msrb.mxu1 %v3467_v63 }
 0x532   :  { %v3642_v17 = vpop.eup %3641  ;;  %v1453_v19 = vmul.f32 %v3640_v14, %v1451_v9 }
 0x533   :  { %v1454_v21 = vmul.f32 %v3642_v17, %v1452_v41 }
 0x534   :  { %v4594_v24 = vadd.f32 %v1461_v20, %v1453_v19 }
 0x535   :  { %v4596_v29 = vadd.f32 %v1462_v23, %v1454_v21 }
 0x536   :  { %1466 = vst.msk [vmem:[#allocation2] sm:$0x40] %vm1465_vm8, %v4594_v24  ;;  %v1468_v43 = vpack.c.bf16 %v4594_v24, %v4594_v24 }
 0x537   :  { %1467 = vst.msk [vmem:[#allocation2 + $0x8] sm:$0x40] %vm1465_vm8, %v4596_v29  ;;  %v1469_v45 = vpack.c.bf16 %v4596_v29, %v4596_v29  ;;  %v1628_v13 = vrot.slane %v4596_v29, 7 }
 0x538   :  { %v1472_v26 = vunpack.c.l.b16 %v1468_v43 }
 0x539   :  { %v1473_v25 = vunpack.c.l.b16 %v1469_v45 }
 0x53a   :  { %v1474_v32 = vrot.slane %v1472_v26, 6 }
 0x53b   :  { %v1475_v31 = vrot.slane %v1473_v25, 5  ;;  %v4655_v25 = vld [vmem:[%s5137_s1 + $0x2] sm:$0x3] }
 0x53d   :  { %v1476_v28 = vsel %vm459_vm5, %v1475_v31, %v1474_v32  ;;  %v4657_v32 = vld [vmem:[#allocation12 + $0x18] sm:$0xff] }
 0x53e   :  { %v1477_v33 = vpack.c.b16 %v1476_v28, %v1476_v28  ;;  %1827 = vmatpush.bf16.msrb.mxu3 %v4657_v32 }
 0x540   :  { %3330 = vmatmul.msk.bf16.vlgmr.msra.gmra.mxu0 %vm269_vm1, %v1477_v33  ;;  %3331 = vmatmul.msk.bf16.vlgmr.msra.gmra.mxu1 %vm269_vm1, %v1477_v33 }
 0x541   :  { %3332 = vmatmul.msk.bf16.vlgmr.msra.gmra.mxu2 %vm269_vm1, %v1477_v33  ;;  %1986 = vmatpush.bf16.msra.mxu1 %v4626_v7  ;;  %v4664_v33 = vpack.c.bf16 %v4655_v25, %v4655_v25 }
 0x542   :  { %2005 = vmatpush.bf16.msra.mxu2 %v4657_v32  ;;  %1861 = vmatpush.bf16.msra.mxu0 %v4694_v6 }
 0x545   :  { %1987 = vmatpush.bf16.msra.mxu1 %v4632_v16 }
 0x551   :  { %3373 = vmatmul.msk.bf16.vlgmr.msrb.gmra.mxu2 %vm269_vm1, %v4664_v33 }
 0x5bd   :  { %v1490_v34 = vpop.f32.mrf.mxu0  ;;  %v1510_v47 = vpop.f32.mrf.mxu1 }
 0x5be   :  { %v1495_v36 = vrot.slane %v1490_v34, 1  ;;  %v1496_v35 = vrot.slane %v1490_v34, 2  ;;  %v1515_v37 = vrot.slane %v1510_v47, 1  ;;  %v1516_v39 = vrot.slane %v1510_v47, 2 }
 0x5c0   :  { %v1499_v48 = vadd.f32 %v1495_v36, %v4244_v18  ;;  %v1500_v44 = vadd.f32 %v1496_v35, %v4249_v22  ;;  %v1519_v40 = vadd.f32 %v1515_v37, %v4253_v27  ;;  %v1520_v42 = vadd.f32 %v1516_v39, %v4255_v30  ;;  %v4670_v37 = vld [vmem:[#allocation12 + $0x10] sm:$0xff] }
 0x5c1   :  { %1828 = vmatpush.bf16.msrb.mxu3 %v4670_v37  ;;  %2006 = vmatpush.bf16.msra.mxu2 %v4670_v37 }
 0x5c2   :  { %v3333_v57 = vmul.f32 -1.442695, %v1499_v48  ;;  %v3334_v8 = vmul.f32 -1.442695, %v1500_v44  ;;  %v3335_v46 = vmul.f32 -1.442695, %v1519_v40 }
 0x5c3   :  { %v3336_v56 = vmul.f32 -1.442695, %v1520_v42 }
 0x5c4   :  { %3643 = vpow2.f32 %v3333_v57  ;;  %v1530_v59 = vpop.f32.mrf.mxu2 }
 0x5c5   :  { %3645 = vpow2.f32 %v3334_v8  ;;  %v1492_v49 = vpop.f32.mrf.mxu0  ;;  %v1512_v51 = vpop.f32.mrf.mxu1  ;;  %v4629_v55 = vadd.f32 %v4480_v60, %v1530_v59  ;;  %2191 = vmatpush.bf16.msrb.mxu2 %v4694_v6 }
 0x5c6   :  { %3647 = vpow2.f32 %v3335_v46 }
 0x5c7   :  { %3649 = vpow2.f32 %v3336_v56  ;;  %v1611_v3 = vrot.slane %v4629_v55, 1  ;;  %v1612_v41 = vrot.slane %v4629_v55, 2 }
 0x5ca   :  { %v3644_v50 = vpop.eup %3643 }
 0x5cb   :  { %v3646_v52 = vpop.eup %3645  ;;  %v4614_v18 = vadd.f32 1.0, %v3644_v50 }
 0x5cc   :  { %v3648_v22 = vpop.eup %3647  ;;  %v4616_v53 = vadd.f32 1.0, %v3646_v52  ;;  %v1532_v27 = vpop.f32.mrf.mxu2 }
 0x5cd   :  { %v3650_v30 = vpop.eup %3649  ;;  %3651 = vrcp.f32 %v4614_v18  ;;  %v4619_v54 = vadd.f32 1.0, %v3648_v22  ;;  %v1551_v14 = vand.u32 2147483647, %v4614_v18  ;;  %v1553_v17 = vand.u32 2147483648, %v4614_v18 }
 0x5ce   :  { %3653 = vrcp.f32 %v4616_v53  ;;  %v4622_v10 = vadd.f32 1.0, %v3650_v30  ;;  %v1566_v20 = vand.u32 2147483647, %v4616_v53  ;;  %v1568_v43 = vand.u32 2147483648, %v4616_v53 }
 0x5cf   :  { %3655 = vrcp.f32 %v4619_v54  ;;  %vm1547_vm11 = vweird.f32 %v4614_v18  ;;  %vm1562_vm6 = vweird.f32 %v4616_v53  ;;  %v1591_v34 = vand.u32 2147483648, %v4619_v54 }
 0x5d0   :  { %3657 = vrcp.f32 %v4622_v10  ;;  %v1554_v36 = vor.u32 1.1754944e-38, %v1553_v17  ;;  %vm1552_vm14 = vcmp.eq.f32.partialorder %v1551_v14, 8.507059e+37  ;;  %vm1567_vm3 = vcmp.eq.f32.partialorder %v1566_v20, 8.507059e+37  ;;  %v3500_v14 = vld [vmem:[#allocation13] ss:$0 sm:$0xff] }
 0x5d1   :  { %v1569_v48 = vor.u32 1.1754944e-38, %v1568_v43  ;;  %v1589_v56 = vand.u32 2147483647, %v4619_v54  ;;  %v1606_v59 = vand.u32 2147483648, %v4622_v10  ;;  %v1604_v51 = vand.u32 2147483647, %v4622_v10 }
 0x5d2   :  { %v1592_v22 = vor.u32 1.1754944e-38, %v1591_v34 }
 0x5d3   :  { %v3652_v58 = vpop.eup %3651  ;;  %v1607_v27 = vor.u32 1.1754944e-38, %v1606_v59 }
 0x5d4   :  { %v3654_v61 = vpop.eup %3653  ;;  %v1543_v62 = vmul.f32 %v3652_v58, %v4614_v18  ;;  %vm1548_vm9 = vweird.f32 %v3652_v58 }
 0x5d5   :  { %v4635_v2 = vpop.eup %3655  ;;  %v1558_v60 = vmul.f32 %v3654_v61, %v4616_v53  ;;  %vm1563_vm12 = vweird.f32 %v3654_v61  ;;  %vm1549_vm13 = vmor %vm1547_vm11, %vm1548_vm9  ;;  %vm1585_vm11 = vweird.f32 %v4619_v54 }
 0x5d6   :  { %v4639_v5 = vpop.eup %3657  ;;  %v1581_v9 = vmul.f32 %v4635_v2, %v4619_v54  ;;  %v1544_v12 = vsub.f32 1.0, %v1543_v62  ;;  %vm1564_vm15 = vmor %vm1562_vm6, %vm1563_vm12  ;;  %vm1586_vm7 = vweird.f32 %v4635_v2  ;;  %vm1600_vm6 = vweird.f32 %v4622_v10  ;;  %v4697_v62 = vld [vmem:[#allocation12 + $0x20] sm:$0xff] }
 0x5d7   :  { %v1596_v38 = vmul.f32 %v4639_v5, %v4622_v10  ;;  %v1559_v19 = vsub.f32 1.0, %v1558_v60  ;;  %vm1601_vm9 = vweird.f32 %v4639_v5  ;;  %vm1587_vm12 = vmor %vm1585_vm11, %vm1586_vm7  ;;  %v1627_v10 = vrot.slane %v4594_v24, 7  ;;  %1862 = vmatpush.bf16.msra.mxu0 %v4697_v62  ;;  %2192 = vmatpush.bf16.msrb.mxu2 %v4697_v62 }
 0x5d8   :  { %v1582_v21 = vsub.f32 1.0, %v1581_v9  ;;  %v1545_v23 = vmul.f32 %v3652_v58, %v1544_v12 }
 0x5d9   :  { %v1597_v45 = vsub.f32 1.0, %v1596_v38  ;;  %v1560_v26 = vmul.f32 %v3654_v61, %v1559_v19 }
 0x5da   :  { %v1583_v31 = vmul.f32 %v4635_v2, %v1582_v21  ;;  %v1546_v28 = vadd.f32 %v3652_v58, %v1545_v23 }
 0x5db   :  { %v1598_v47 = vmul.f32 %v4639_v5, %v1597_v45  ;;  %v1561_v35 = vadd.f32 %v3654_v61, %v1560_v26  ;;  %v3498_v26 = vld [vmem:[#allocation13 + $0x1] ss:$0 sm:$0xff] }
 0x5dc   :  { %v1550_v39 = vsel %vm1549_vm13, %v3652_v58, %v1546_v28  ;;  %v1584_v44 = vadd.f32 %v4635_v2, %v1583_v31  ;;  %vm1602_vm13 = vmor %vm1600_vm6, %vm1601_vm9 }
 0x5dd   :  { %v1555_v40 = vsel %vm1552_vm14, %v1554_v36, %v1550_v39  ;;  %v1565_v42 = vsel %vm1564_vm15, %v3654_v61, %v1561_v35  ;;  %v1599_v57 = vadd.f32 %v4639_v5, %v1598_v47  ;;  %vm1590_vm14 = vcmp.eq.f32.partialorder %v1589_v56, 8.507059e+37 }
 0x5de   :  { %v1570_v8 = vsel %vm1567_vm3, %v1569_v48, %v1565_v42  ;;  %v1615_v46 = vmul.f32 %v1611_v3, %v1555_v40  ;;  %v1588_v52 = vsel %vm1587_vm12, %v4635_v2, %v1584_v44  ;;  %vm1605_vm15 = vcmp.eq.f32.partialorder %v1604_v51, 8.507059e+37 }
 0x5df   :  { %v1616_v49 = vmul.f32 %v1612_v41, %v1570_v8  ;;  %v1603_v53 = vsel %vm1602_vm13, %v4639_v5, %v1599_v57  ;;  %v1593_v30 = vsel %vm1590_vm14, %v1592_v22, %v1588_v52  ;;  %vm5154_vm3 = vcmask 261127   ;;  %v1799_v5 = vpop.f32.mrf.mxu2 }
 0x5e0   :  { %v1617_v50 = vadd.f32 %v1615_v46, %v4271_v0  ;;  %v1608_v54 = vsel %vm1605_vm15, %v1607_v27, %v1603_v53  ;;  %v1621_v1 = vsub.f32 1.0, %v1593_v30  ;;  %v1631_v58 = vmul.f32 %v1627_v10, %v1593_v30 }
 0x5e1   :  { %v1618_v18 = vadd.f32 %v1616_v49, %v4273_v4  ;;  %v1622_v0 = vsub.f32 1.0, %v1608_v54  ;;  %v1632_v61 = vmul.f32 %v1628_v13, %v1608_v54  ;;  %v1804_v21 = vrot.slane %v1799_v5, 1 }
 0x5e2   :  { %3659 = vtanh.f32 %v1617_v50  ;;  %v4738_v50 = vld [vmem:[%s5145_s9] ss:$0 sm:$0xff] }
 0x5e3   :  { %3661 = vtanh.f32 %v1618_v18 }
 0x5e7   :  { %v1801_v9 = vpop.f32.mrf.mxu2 }
 0x5e8   :  { %v3660_v55 = vpop.eup %3659 }
 0x5e9   :  { %v3662_v4 = vpop.eup %3661  ;;  %v1623_v11 = vmul.f32 %v3660_v55, %v1621_v1 }
 0x5ea   :  { %v1624_v15 = vmul.f32 %v3662_v4, %v1622_v0 }
 0x5eb   :  { %v1633_v63 = vadd.f32 %v1631_v58, %v1623_v11  ;;  %v3499_v58 = vld [vmem:[#allocation13 + $0x2] ss:$0 sm:$0xff] }
 0x5ec   :  { %v1634_v24 = vadd.f32 %v1632_v61, %v1624_v15 }
 0x5ed   :  { %1636 = vst.msk [vmem:[#allocation2] sm:$0x80] %vm5154_vm3, %v1633_v63 }
 0x5ee   :  { %1637 = vst.msk [vmem:[#allocation2 + $0x8] sm:$0x80] %vm5154_vm3, %v1634_v24  ;;  %v1640_v29 = vrot.slane %v1634_v24, 7 }
 0x5ef   :  { %1643 = vst.msk [vmem:[#allocation17 - $0x7] sm:$0x80] %vm5154_vm3, %v1633_v63 }
 0x5f0   :  { %1644 = vst.msk [vmem:[#allocation17 + $0x1] sm:$0x1] %vm5153_vm4, %v1640_v29 }
 0x5f4   :  { %v1645_v2 = vld [vmem:[#allocation2] sm:$0xff] }
 0x5f5   :  { %v1646_v60 = vld [vmem:[#allocation2 + $0x8] sm:$0xff] }
 0x5f6   :  { %v1647_v3 = vpack.c.bf16 %v1646_v60, %v1645_v2 }
 0x5f8   :  { %3345 = vmatmul.msk.bf16.vlgmr.msra.gmra.mxu3 %vm269_vm1, %v1647_v3  ;;  %3354 = vmatmul.msk.bf16.vlgmr.msrb.gmra.mxu0 %vm269_vm1, %v1647_v3 }
 0x5f9   :  { %3363 = vmatmul.msk.bf16.vlgmr.msrb.gmra.mxu1 %vm269_vm1, %v1647_v3  ;;  %2024 = vmatpush.bf16.msra.mxu3 %v4694_v6 }
 0x5fa   :  { %2151 = vmatpush.bf16.msrb.mxu0 %v4626_v7  ;;  %2171 = vmatpush.bf16.msrb.mxu1 %v4657_v32 }
 0x5fd   :  { %2025 = vmatpush.bf16.msra.mxu3 %v4697_v62 }
 0x5fe   :  { %2152 = vmatpush.bf16.msrb.mxu0 %v4632_v16  ;;  %2172 = vmatpush.bf16.msrb.mxu1 %v4670_v37 }
 0x608   :  { %3382 = vmatmul.msk.bf16.vlgmr.msrb.gmra.mxu3 %vm269_vm1, %v4664_v33  ;;  %3391 = vmatmul.msk.bf16.vlgmr.msra.gmra.mxu0 %vm269_vm1, %v4664_v33 }
 0x609   :  { %2320 = vmatpush.bf16.msrb.mxu3 %v4626_v7  ;;  %2340 = vmatpush.bf16.msra.mxu0 %v4657_v32 }
 0x60d   :  { %2321 = vmatpush.bf16.msrb.mxu3 %v4632_v16  ;;  %2341 = vmatpush.bf16.msra.mxu0 %v4670_v37 }
 0x675   :  { %v1716_v12 = vpop.f32.mrf.mxu0 }
 0x676   :  { %v4729_v47 = vadd.f32 %v3498_v26, %v1716_v12  ;;  %v1752_v18 = vpop.f32.mrf.mxu1 }
 0x677   :  { %v4741_v3 = vadd.f32 %v3499_v58, %v1752_v18  ;;  %v1959_v18 = vrot.slane %v4655_v25, 1 }
 0x67b   :  { %v1680_v41 = vpop.f32.mrf.mxu3 }
 0x67c   :  { %v4723_v38 = vadd.f32 %v3500_v14, %v1680_v41 }
 0x67d   :  { %v1718_v17 = vpop.f32.mrf.mxu0 }
 0x67e   :  { %v1807_v19 = vadd.f32 %v1799_v5, %v4723_v38  ;;  %v4731_v35 = vadd.f32 %v3498_v26, %v1718_v17  ;;  %v1754_v5 = vpop.f32.mrf.mxu1 }
 0x680   :  { %v3392_v20 = vmul.f32 -1.442695, %v1807_v19 }
 0x682   :  { %3663 = vpow2.f32 %v3392_v20 }
 0x683   :  { %v1682_v23 = vpop.f32.mrf.mxu3 }
 0x684   :  { %v4726_v43 = vadd.f32 %v3500_v14, %v1682_v23 }
 0x685   :  { %v1864_v45 = vpop.f32.mrf.mxu0 }
 0x686   :  { %v1808_v31 = vadd.f32 %v1804_v21, %v4726_v43  ;;  %v1865_v0 = vadd.f32 %v4738_v50, %v1864_v45  ;;  %v4744_v45 = vadd.f32 %v3499_v58, %v1754_v5 }
 0x688   :  { %v3664_v28 = vpop.eup %3663  ;;  %v3393_v33 = vmul.f32 -1.442695, %v1808_v31  ;;  %v1945_v14 = vrot.slane %v1865_v0, 1 }
 0x689   :  { %v1874_v34 = vadd.f32 1.0, %v3664_v28 }
 0x68a   :  { %3665 = vpow2.f32 %v3393_v33 }
 0x68b   :  { %3667 = vrcp.f32 %v1874_v34  ;;  %v1830_v36 = vpop.f32.mrf.mxu3  ;;  %v1887_v53 = vand.u32 2147483648, %v1874_v34  ;;  %v1885_v30 = vand.u32 2147483647, %v1874_v34  ;;  %vm1881_vm9 = vweird.f32 %v1874_v34 }
 0x68c   :  { %v1835_v39 = vrot.slane %v1830_v36, 1  ;;  %v1838_v48 = vadd.f32 %v1830_v36, %v4729_v47 }
 0x68d   :  { %v1866_v44 = vpop.f32.mrf.mxu0  ;;  %v1888_v4 = vor.u32 1.1754944e-38, %v1887_v53  ;;  %vm1886_vm12 = vcmp.eq.f32.partialorder %v1885_v30, 8.507059e+37 }
 0x68e   :  { %v1839_v40 = vadd.f32 %v1835_v39, %v4731_v35  ;;  %v3394_v42 = vmul.f32 -1.442695, %v1838_v48 }
 0x690   :  { %v3666_v57 = vpop.eup %3665  ;;  %3669 = vpow2.f32 %v3394_v42  ;;  %v3395_v8 = vmul.f32 -1.442695, %v1839_v40 }
 0x691   :  { %v3668_v46 = vpop.eup %3667  ;;  %v1875_v56 = vadd.f32 1.0, %v3666_v57 }
 0x692   :  { %3671 = vpow2.f32 %v3395_v8  ;;  %v1877_v59 = vmul.f32 %v3668_v46, %v1874_v34  ;;  %vm1882_vm7 = vweird.f32 %v3668_v46 }
 0x693   :  { %v1832_v49 = vpop.f32.mrf.mxu3  ;;  %3673 = vrcp.f32 %v1875_v56  ;;  %vm1883_vm11 = vmor %vm1881_vm9, %vm1882_vm7  ;;  %v1902_v63 = vand.u32 2147483648, %v1875_v56  ;;  %v1900_v2 = vand.u32 2147483647, %v1875_v56  ;;  %vm1896_vm13 = vweird.f32 %v1875_v56 }
 0x694   :  { %v1878_v51 = vsub.f32 1.0, %v1877_v59 }
 0x695   :  { %v1903_v17 = vor.u32 1.1754944e-38, %v1902_v63  ;;  %vm1901_vm15 = vcmp.eq.f32.partialorder %v1900_v2, 8.507059e+37 }
 0x696   :  { %v3670_v52 = vpop.eup %3669  ;;  %v1879_v22 = vmul.f32 %v3668_v46, %v1878_v51 }
 0x697   :  { %v1912_v27 = vadd.f32 1.0, %v3670_v52 }
 0x698   :  { %v3672_v54 = vpop.eup %3671  ;;  %v1880_v1 = vadd.f32 %v3668_v46, %v1879_v22 }
 0x699   :  { %v3674_v10 = vpop.eup %3673  ;;  %v1913_v55 = vadd.f32 1.0, %v3672_v54  ;;  %3675 = vrcp.f32 %v1912_v27  ;;  %v1923_v26 = vand.u32 2147483647, %v1912_v27  ;;  %v1925_v31 = vand.u32 2147483648, %v1912_v27 }
 0x69a   :  { %v1884_v13 = vsel %vm1883_vm11, %v3668_v46, %v1880_v1  ;;  %v1892_v11 = vmul.f32 %v3674_v10, %v1875_v56  ;;  %vm1897_vm6 = vweird.f32 %v3674_v10  ;;  %vm1919_vm9 = vweird.f32 %v1912_v27 }
 0x69b   :  { %3677 = vrcp.f32 %v1913_v55  ;;  %v1889_v15 = vsel %vm1886_vm12, %v1888_v4, %v1884_v13  ;;  %vm1898_vm14 = vmor %vm1896_vm13, %vm1897_vm6  ;;  %v1938_v39 = vand.u32 2147483647, %v1913_v55  ;;  %v1940_v48 = vand.u32 2147483648, %v1913_v55 }
 0x69c   :  { %v1893_v61 = vsub.f32 1.0, %v1892_v11  ;;  %v1948_v24 = vmul.f32 %v1889_v15, %v1865_v0  ;;  %v1926_v57 = vor.u32 1.1754944e-38, %v1925_v31  ;;  %vm1934_vm6 = vweird.f32 %v1913_v55 }
 0x69d   :  { %vm1924_vm13 = vcmp.eq.f32.partialorder %v1923_v26, 8.507059e+37  ;;  %v1941_v56 = vor.u32 1.1754944e-38, %v1940_v48 }
 0x69e   :  { %v1894_v29 = vmul.f32 %v3674_v10, %v1893_v61  ;;  %v1950_v19 = vadd.f32 %v1948_v24, %v4741_v3 }
 0x69f   :  { %v3676_v60 = vpop.eup %3675 }
 0x6a0   :  { %v1915_v9 = vmul.f32 %v3676_v60, %v1912_v27  ;;  %v1895_v12 = vadd.f32 %v3674_v10, %v1894_v29  ;;  %vm1920_vm7 = vweird.f32 %v3676_v60  ;;  %3679 = vtanh.f32 %v1950_v19 }
 0x6a1   :  { %v3678_v41 = vpop.eup %3677  ;;  %vm1921_vm12 = vmor %vm1919_vm9, %vm1920_vm7 }
 0x6a2   :  { %v1916_v20 = vsub.f32 1.0, %v1915_v9  ;;  %v1930_v21 = vmul.f32 %v3678_v41, %v1913_v55  ;;  %v1899_v23 = vsel %vm1898_vm14, %v3674_v10, %v1895_v12  ;;  %vm1935_vm11 = vweird.f32 %v3678_v41 }
 0x6a3   :  { %v1904_v28 = vsel %vm1901_vm15, %v1903_v17, %v1899_v23  ;;  %vm1936_vm14 = vmor %vm1934_vm6, %vm1935_vm11  ;;  %vm1939_vm15 = vcmp.eq.f32.partialorder %v1938_v39, 8.507059e+37 }
 0x6a4   :  { %v1917_v33 = vmul.f32 %v3676_v60, %v1916_v20  ;;  %v1931_v34 = vsub.f32 1.0, %v1930_v21  ;;  %v1949_v36 = vmul.f32 %v1945_v14, %v1904_v28 }
 0x6a6   :  { %v1918_v44 = vadd.f32 %v3676_v60, %v1917_v33  ;;  %v1932_v40 = vmul.f32 %v3678_v41, %v1931_v34  ;;  %v1951_v42 = vadd.f32 %v1949_v36, %v4744_v45  ;;  %v3680_v52 = vpop.eup %3679 }
 0x6a8   :  { %v1933_v8 = vadd.f32 %v3678_v41, %v1932_v40  ;;  %v1922_v46 = vsel %vm1921_vm12, %v3676_v60, %v1918_v44  ;;  %3681 = vtanh.f32 %v1951_v42 }
 0x6a9   :  { %v1927_v59 = vsel %vm1924_vm13, %v1926_v57, %v1922_v46 }
 0x6aa   :  { %v1937_v49 = vsel %vm1936_vm14, %v3678_v41, %v1933_v8  ;;  %v1954_v51 = vsub.f32 1.0, %v1927_v59  ;;  %v1962_v30 = vmul.f32 %v4655_v25, %v1927_v59 }
 0x6ab   :  { %v1942_v22 = vsel %vm1939_vm15, %v1941_v56, %v1937_v49 }
 0x6ac   :  { %v1955_v53 = vsub.f32 1.0, %v1942_v22  ;;  %v1956_v27 = vmul.f32 %v3680_v52, %v1954_v51  ;;  %v1963_v55 = vmul.f32 %v1959_v18, %v1942_v22 }
 0x6ae   :  { %v3682_v54 = vpop.eup %3681  ;;  %v4749_v1 = vadd.f32 %v1962_v30, %v1956_v27 }
 0x6af   :  { %v1957_v10 = vmul.f32 %v3682_v54, %v1955_v53 }
 0x6b0   :  { %1966 = vst.msk [vmem:[#allocation3] sm:$0x1] %vm5153_vm4, %v4749_v1  ;;  %v1968_v13 = vpack.c.bf16 %v4749_v1, %v4749_v1 }
 0x6b1   :  { %v4753_v0 = vadd.f32 %v1963_v55, %v1957_v10 }
 0x6b2   :  { %v1972_v11 = vunpack.c.l.b16 %v1968_v13 }
 0x6b3   :  { %1967 = vst.msk [vmem:[#allocation3 + $0x8] sm:$0x1] %vm5153_vm4, %v4753_v0  ;;  %v1969_v4 = vpack.c.bf16 %v4753_v0, %v4753_v0 }
 0x6b5   :  { %v1973_v25 = vunpack.c.l.b16 %v1969_v4 }
 0x6b7   :  { %v1974_v58 = vrot.slane %v1973_v25, 7 }
 0x6b9   :  { %v1975_v15 = vsel %vm459_vm5, %v1974_v58, %v1972_v11 }
 0x6ba   :  { %v1976_v61 = vpack.c.b16 %v1975_v15, %v1975_v15 }
 0x6bc   :  { %3396 = vmatmul.msk.bf16.vlgmr.msra.gmra.mxu1 %vm269_vm1, %v1976_v61  ;;  %3397 = vmatmul.msk.bf16.vlgmr.msra.gmra.mxu2 %vm269_vm1, %v1976_v61 }
 0x6bd   :  { %3398 = vmatmul.msk.bf16.vlgmr.msra.gmra.mxu3 %vm269_vm1, %v1976_v61  ;;  %2360 = vmatpush.bf16.msra.mxu1 %v4694_v6 }
 0x6be   :  { %2489 = vmatpush.bf16.msra.mxu2 %v4626_v7  ;;  %2509 = vmatpush.bf16.msra.mxu3 %v4657_v32 }
 0x6c1   :  { %2361 = vmatpush.bf16.msra.mxu1 %v4697_v62 }
 0x6c2   :  { %2490 = vmatpush.bf16.msra.mxu2 %v4632_v16  ;;  %2510 = vmatpush.bf16.msra.mxu3 %v4670_v37 }
 0x739   :  { %v1989_v63 = vpop.f32.mrf.mxu1 }
 0x73a   :  { %v1994_v24 = vrot.slane %v1989_v63, 7  ;;  %v1998_v29 = vadd.f32 %v1989_v63, %v4726_v43 }
 0x73c   :  { %v1997_v2 = vadd.f32 %v1994_v24, %v4723_v38  ;;  %v3400_v60 = vmul.f32 -1.442695, %v1998_v29 }
 0x73e   :  { %v3399_v5 = vmul.f32 -1.442695, %v1997_v2  ;;  %3683 = vpow2.f32 %v3400_v60 }
 0x73f   :  { %v2008_v9 = vpop.f32.mrf.mxu2 }
 0x740   :  { %3685 = vpow2.f32 %v3399_v5  ;;  %v2013_v12 = vrot.slane %v2008_v9, 7  ;;  %v2017_v14 = vadd.f32 %v2008_v9, %v4731_v35  ;;  %v2027_v41 = vpop.f32.mrf.mxu3 }
 0x741   :  { %v1991_v17 = vpop.f32.mrf.mxu1  ;;  %v2028_v8 = vadd.f32 %v4738_v50, %v2027_v41 }
 0x742   :  { %v2016_v19 = vadd.f32 %v2013_v12, %v4729_v47  ;;  %v3402_v20 = vmul.f32 -1.442695, %v2017_v14 }
 0x743   :  { %v2108_v27 = vrot.slane %v2028_v8, 7 }
 0x744   :  { %v3684_v21 = vpop.eup %3683  ;;  %v3401_v23 = vmul.f32 -1.442695, %v2016_v19  ;;  %3687 = vpow2.f32 %v3402_v20 }
 0x745   :  { %v2038_v26 = vadd.f32 1.0, %v3684_v21 }
 0x746   :  { %v3686_v31 = vpop.eup %3685  ;;  %3689 = vpow2.f32 %v3401_v23 }
 0x747   :  { %v2037_v28 = vadd.f32 1.0, %v3686_v31  ;;  %3691 = vrcp.f32 %v2038_v26  ;;  %v2010_v33 = vpop.f32.mrf.mxu2  ;;  %v2063_v49 = vand.u32 2147483647, %v2038_v26  ;;  %v2065_v51 = vand.u32 2147483648, %v2038_v26 }
 0x748   :  { %v2029_v34 = vpop.f32.mrf.mxu3  ;;  %vm2059_vm7 = vweird.f32 %v2038_v26 }
 0x749   :  { %3693 = vrcp.f32 %v2037_v28  ;;  %v2048_v59 = vand.u32 2147483647, %v2037_v28  ;;  %v2050_v18 = vand.u32 2147483648, %v2037_v28  ;;  %vm2044_vm12 = vweird.f32 %v2037_v28 }
 0x74a   :  { %v3688_v36 = vpop.eup %3687  ;;  %vm2064_vm13 = vcmp.eq.f32.partialorder %v2063_v49, 8.507059e+37  ;;  %v2066_v4 = vor.u32 1.1754944e-38, %v2065_v51 }
 0x74b   :  { %v4775_v39 = vadd.f32 1.0, %v3688_v36  ;;  %vm4783_vm6 = vcmp.eq.f32.partialorder %v2048_v59, 8.507059e+37  ;;  %v2051_v15 = vor.u32 1.1754944e-38, %v2050_v18 }
 0x74c   :  { %v3690_v48 = vpop.eup %3689 }
 0x74d   :  { %v3692_v44 = vpop.eup %3691  ;;  %v4777_v40 = vadd.f32 1.0, %v3690_v48  ;;  %3695 = vrcp.f32 %v4775_v39  ;;  %vm2097_vm15 = vweird.f32 %v4775_v39  ;;  %v2101_v61 = vand.u32 2147483647, %v4775_v39 }
 0x74e   :  { %v2055_v42 = vmul.f32 %v3692_v44, %v2038_v26  ;;  %vm2060_vm9 = vweird.f32 %v3692_v44  ;;  %v2103_v9 = vand.u32 2147483648, %v4775_v39 }
 0x74f   :  { %v3694_v57 = vpop.eup %3693  ;;  %3697 = vrcp.f32 %v4777_v40  ;;  %vm2061_vm14 = vmor %vm2059_vm7, %vm2060_vm9  ;;  %v2088_v5 = vand.u32 2147483648, %v4777_v40  ;;  %v2086_v20 = vand.u32 2147483647, %v4777_v40 }
 0x750   :  { %v2040_v46 = vmul.f32 %v3694_v57, %v2037_v28  ;;  %v2056_v56 = vsub.f32 1.0, %v2055_v42  ;;  %vm2045_vm11 = vweird.f32 %v3694_v57  ;;  %v2104_v28 = vor.u32 1.1754944e-38, %v2103_v9 }
 0x751   :  { %vm2046_vm3 = vmor %vm2044_vm12, %vm2045_vm11  ;;  %v2089_v33 = vor.u32 1.1754944e-38, %v2088_v5  ;;  %vm2102_vm12 = vcmp.eq.f32.partialorder %v2101_v61, 8.507059e+37 }
 0x752   :  { %v2041_v52 = vsub.f32 1.0, %v2040_v46  ;;  %v2057_v22 = vmul.f32 %v3692_v44, %v2056_v56 }
 0x753   :  { %v3696_v53 = vpop.eup %3695 }
 0x754   :  { %v2093_v30 = vmul.f32 %v3696_v53, %v4775_v39  ;;  %v2042_v54 = vmul.f32 %v3694_v57, %v2041_v52  ;;  %v2058_v10 = vadd.f32 %v3692_v44, %v2057_v22  ;;  %vm2098_vm4 = vweird.f32 %v3696_v53 }
 0x755   :  { %v3698_v55 = vpop.eup %3697  ;;  %vm2099_vm9 = vmor %vm2097_vm15, %vm2098_vm4 }
 0x756   :  { %v2078_v25 = vmul.f32 %v3698_v55, %v4777_v40  ;;  %v2094_v11 = vsub.f32 1.0, %v2093_v30  ;;  %v2043_v58 = vadd.f32 %v3694_v57, %v2042_v54  ;;  %v2062_v63 = vsel %vm2061_vm14, %v3692_v44, %v2058_v10 }
 0x757   :  { %v2067_v60 = vsel %vm2064_vm13, %v2066_v4, %v2062_v63  ;;  %vm2083_vm7 = vweird.f32 %v3698_v55  ;;  %v2124_v44 = vrot.slane %v4753_v0, 7 }
 0x758   :  { %v2079_v24 = vsub.f32 1.0, %v2078_v25  ;;  %v2095_v29 = vmul.f32 %v3696_v53, %v2094_v11  ;;  %v2047_v2 = vsel %vm2046_vm3, %v3694_v57, %v2043_v58  ;;  %v2112_v14 = vmul.f32 %v2067_v60, %v2028_v8 }
 0x759   :  { %v2052_v12 = vsel %vm4783_vm6, %v2051_v15, %v2047_v2  ;;  %vm2082_vm3 = vweird.f32 %v4777_v40  ;;  %vm2087_vm6 = vcmp.eq.f32.partialorder %v2086_v20, 8.507059e+37  ;;  %v2123_v57 = vrot.slane %v4749_v1, 7 }
 0x75a   :  { %v2080_v41 = vmul.f32 %v3698_v55, %v2079_v24  ;;  %v2096_v17 = vadd.f32 %v3696_v53, %v2095_v29  ;;  %v2111_v19 = vmul.f32 %v2108_v27, %v2052_v12  ;;  %v2114_v21 = vadd.f32 %v2112_v14, %v4744_v45  ;;  %vm2084_vm11 = vmor %vm2082_vm3, %vm2083_vm7 }
 0x75c   :  { %v2081_v23 = vadd.f32 %v3698_v55, %v2080_v41  ;;  %v2100_v26 = vsel %vm2099_vm9, %v3696_v53, %v2096_v17  ;;  %v2113_v31 = vadd.f32 %v2111_v19, %v4741_v3  ;;  %3699 = vtanh.f32 %v2114_v21 }
 0x75d   :  { %v2105_v36 = vsel %vm2102_vm12, %v2104_v28, %v2100_v26 }
 0x75e   :  { %v2085_v34 = vsel %vm2084_vm11, %v3698_v55, %v2081_v23  ;;  %3701 = vtanh.f32 %v2113_v31  ;;  %v2118_v39 = vsub.f32 1.0, %v2105_v36  ;;  %v2128_v56 = vmul.f32 %v2124_v44, %v2105_v36 }
 0x75f   :  { %v2090_v48 = vsel %vm2087_vm6, %v2089_v33, %v2085_v34 }
 0x760   :  { %v2117_v40 = vsub.f32 1.0, %v2090_v48  ;;  %v2127_v49 = vmul.f32 %v2123_v57, %v2090_v48 }
 0x762   :  { %v3700_v42 = vpop.eup %3699 }
 0x763   :  { %v2120_v46 = vmul.f32 %v3700_v42, %v2118_v39 }
 0x764   :  { %v3702_v8 = vpop.eup %3701 }
 0x765   :  { %v2119_v59 = vmul.f32 %v3702_v8, %v2117_v40  ;;  %v4806_v51 = vadd.f32 %v2128_v56, %v2120_v46 }
 0x767   :  { %v4808_v52 = vadd.f32 %v2127_v49, %v2119_v59  ;;  %2132 = vst.msk [vmem:[#allocation3 + $0x8] sm:$0x2] %vm616_vm10, %v4806_v51  ;;  %v2134_v1 = vpack.c.bf16 %v4806_v51, %v4806_v51 }
 0x769   :  { %2131 = vst.msk [vmem:[#allocation3] sm:$0x2] %vm616_vm10, %v4808_v52  ;;  %v2133_v0 = vpack.c.bf16 %v4808_v52, %v4808_v52  ;;  %v2138_v22 = vunpack.c.l.b16 %v2134_v1 }
 0x76b   :  { %v2137_v18 = vunpack.c.l.b16 %v2133_v0 }
 0x76d   :  { %v2139_v53 = vrot.slane %v2137_v18, 1 }
 0x76f   :  { %v2140_v27 = vsel %vm459_vm5, %v2138_v22, %v2139_v53 }
 0x770   :  { %v2141_v30 = vpack.c.b16 %v2140_v27, %v2140_v27 }
 0x772   :  { %3403 = vmatmul.msk.bf16.vlgmr.msrb.gmra.mxu0 %vm269_vm1, %v2141_v30  ;;  %3404 = vmatmul.msk.bf16.vlgmr.msrb.gmra.mxu1 %vm269_vm1, %v2141_v30 }
 0x773   :  { %3405 = vmatmul.msk.bf16.vlgmr.msrb.gmra.mxu2 %vm269_vm1, %v2141_v30  ;;  %2529 = vmatpush.bf16.msrb.mxu0 %v4694_v6 }
 0x774   :  { %2658 = vmatpush.bf16.msrb.mxu1 %v4626_v7  ;;  %2678 = vmatpush.bf16.msrb.mxu2 %v4657_v32 }
 0x777   :  { %2530 = vmatpush.bf16.msrb.mxu0 %v4697_v62 }
 0x778   :  { %2659 = vmatpush.bf16.msrb.mxu1 %v4632_v16  ;;  %2679 = vmatpush.bf16.msrb.mxu2 %v4670_v37 }
 0x7ef   :  { %v2154_v54 = vpop.f32.mrf.mxu0  ;;  %v2174_v10 = vpop.f32.mrf.mxu1 }
 0x7f0   :  { %v2159_v55 = vrot.slane %v2154_v54, 6  ;;  %v2160_v13 = vrot.slane %v2154_v54, 7  ;;  %v2179_v4 = vrot.slane %v2174_v10, 6  ;;  %v2180_v25 = vrot.slane %v2174_v10, 7 }
 0x7f2   :  { %v2163_v11 = vadd.f32 %v2159_v55, %v4723_v38  ;;  %v2164_v58 = vadd.f32 %v2160_v13, %v4726_v43  ;;  %v2183_v7 = vadd.f32 %v2179_v4, %v4729_v47  ;;  %v2184_v15 = vadd.f32 %v2180_v25, %v4731_v35 }
 0x7f4   :  { %v3406_v61 = vmul.f32 -1.442695, %v2163_v11  ;;  %v3407_v63 = vmul.f32 -1.442695, %v2164_v58  ;;  %v3408_v24 = vmul.f32 -1.442695, %v2183_v7 }
 0x7f5   :  { %v3409_v16 = vmul.f32 -1.442695, %v2184_v15 }
 0x7f6   :  { %3703 = vpow2.f32 %v3406_v61  ;;  %v2194_v29 = vpop.f32.mrf.mxu2 }
 0x7f7   :  { %3705 = vpow2.f32 %v3407_v63  ;;  %v2156_v2 = vpop.f32.mrf.mxu0  ;;  %v2176_v60 = vpop.f32.mrf.mxu1  ;;  %v2195_v23 = vadd.f32 %v4738_v50, %v2194_v29 }
 0x7f8   :  { %3707 = vpow2.f32 %v3408_v24 }
 0x7f9   :  { %3709 = vpow2.f32 %v3409_v16  ;;  %v2275_v42 = vrot.slane %v2195_v23, 6  ;;  %v2276_v18 = vrot.slane %v2195_v23, 7 }
 0x7fc   :  { %v3704_v5 = vpop.eup %3703 }
 0x7fd   :  { %v3706_v9 = vpop.eup %3705  ;;  %v2204_v12 = vadd.f32 1.0, %v3704_v5 }
 0x7fe   :  { %v3708_v14 = vpop.eup %3707  ;;  %v2205_v41 = vadd.f32 1.0, %v3706_v9  ;;  %v2196_v17 = vpop.f32.mrf.mxu2 }
 0x7ff   :  { %v3710_v19 = vpop.eup %3709  ;;  %3711 = vrcp.f32 %v2204_v12  ;;  %v4832_v20 = vadd.f32 1.0, %v3708_v14  ;;  %v2215_v44 = vand.u32 2147483647, %v2204_v12  ;;  %v2217_v40 = vand.u32 2147483648, %v2204_v12 }
 0x800   :  { %3713 = vrcp.f32 %v2205_v41  ;;  %v4834_v21 = vadd.f32 1.0, %v3710_v19  ;;  %v2230_v46 = vand.u32 2147483647, %v2205_v41  ;;  %v2232_v49 = vand.u32 2147483648, %v2205_v41 }
 0x801   :  { %3715 = vrcp.f32 %v4832_v20  ;;  %vm2211_vm13 = vweird.f32 %v2204_v12  ;;  %vm2226_vm14 = vweird.f32 %v2205_v41  ;;  %v2255_v27 = vand.u32 2147483648, %v4832_v20 }
 0x802   :  { %3717 = vrcp.f32 %v4834_v21  ;;  %v2218_v54 = vor.u32 1.1754944e-38, %v2217_v40  ;;  %vm2216_vm7 = vcmp.eq.f32.partialorder %v2215_v44, 8.507059e+37  ;;  %vm2231_vm3 = vcmp.eq.f32.partialorder %v2230_v46, 8.507059e+37  ;;  %v4868_v46 = vld [vmem:[#allocation12 + $0x8] sm:$0xff] }
 0x803   :  { %v2233_v13 = vor.u32 1.1754944e-38, %v2232_v49  ;;  %vm2249_vm6 = vweird.f32 %v4832_v20  ;;  %v2253_v61 = vand.u32 2147483647, %v4832_v20  ;;  %v2270_v63 = vand.u32 2147483648, %v4834_v21 }
 0x804   :  { %v2268_v16 = vand.u32 2147483647, %v4834_v21  ;;  %v2256_v5 = vor.u32 1.1754944e-38, %v2255_v27  ;;  %v2291_v19 = vrot.slane %v4808_v52, 7 }
 0x805   :  { %v3712_v26 = vpop.eup %3711 }
 0x806   :  { %v3714_v31 = vpop.eup %3713  ;;  %v2207_v28 = vmul.f32 %v3712_v26, %v2204_v12  ;;  %vm2212_vm4 = vweird.f32 %v3712_v26  ;;  %v2271_v12 = vor.u32 1.1754944e-38, %v2270_v63 }
 0x807   :  { %v3716_v33 = vpop.eup %3715  ;;  %v2222_v34 = vmul.f32 %v3714_v31, %v2205_v41  ;;  %vm2227_vm10 = vweird.f32 %v3714_v31  ;;  %vm2213_vm15 = vmor %vm2211_vm13, %vm2212_vm4 }
 0x808   :  { %v3718_v36 = vpop.eup %3717  ;;  %v2245_v48 = vmul.f32 %v3716_v33, %v4832_v20  ;;  %v2208_v39 = vsub.f32 1.0, %v2207_v28  ;;  %vm2228_vm9 = vmor %vm2226_vm14, %vm2227_vm10  ;;  %vm2250_vm11 = vweird.f32 %v3716_v33  ;;  %vm2264_vm10 = vweird.f32 %v4834_v21 }
 0x809   :  { %v2260_v57 = vmul.f32 %v3718_v36, %v4834_v21  ;;  %v2223_v8 = vsub.f32 1.0, %v2222_v34  ;;  %vm2265_vm12 = vweird.f32 %v3718_v36  ;;  %vm2251_vm4 = vmor %vm2249_vm6, %vm2250_vm11  ;;  %vm2254_vm14 = vcmp.eq.f32.partialorder %v2253_v61, 8.507059e+37 }
 0x80a   :  { %v2246_v56 = vsub.f32 1.0, %v2245_v48  ;;  %v2209_v59 = vmul.f32 %v3712_v26, %v2208_v39  ;;  %vm2266_vm13 = vmor %vm2264_vm10, %vm2265_vm12  ;;  %v2292_v21 = vrot.slane %v4806_v51, 7 }
 0x80b   :  { %v2261_v0 = vsub.f32 1.0, %v2260_v57  ;;  %v2224_v1 = vmul.f32 %v3714_v31, %v2223_v8 }
 0x80c   :  { %v2247_v22 = vmul.f32 %v3716_v33, %v2246_v56  ;;  %v2210_v53 = vadd.f32 %v3712_v26, %v2209_v59  ;;  %v4873_v56 = vld [vmem:[#allocation12] sm:$0xff] }
 0x80d   :  { %v2262_v30 = vmul.f32 %v3718_v36, %v2261_v0  ;;  %v2225_v10 = vadd.f32 %v3714_v31, %v2224_v1 }
 0x80e   :  { %v2214_v55 = vsel %vm2213_vm15, %v3712_v26, %v2210_v53  ;;  %v2248_v4 = vadd.f32 %v3716_v33, %v2247_v22  ;;  %vm2269_vm15 = vcmp.eq.f32.partialorder %v2268_v16, 8.507059e+37 }
 0x80f   :  { %v2219_v25 = vsel %vm2216_vm7, %v2218_v54, %v2214_v55  ;;  %v2229_v11 = vsel %vm2228_vm9, %v3714_v31, %v2225_v10  ;;  %v2263_v58 = vadd.f32 %v3718_v36, %v2262_v30 }
 0x810   :  { %v2234_v7 = vsel %vm2231_vm3, %v2233_v13, %v2229_v11  ;;  %v2279_v15 = vmul.f32 %v2275_v42, %v2219_v25  ;;  %v2252_v2 = vsel %vm2251_vm4, %v3716_v33, %v2248_v4 }
 0x811   :  { %v2280_v24 = vmul.f32 %v2276_v18, %v2234_v7  ;;  %v2267_v9 = vsel %vm2266_vm13, %v3718_v36, %v2263_v58  ;;  %v2257_v14 = vsel %vm2254_vm14, %v2256_v5, %v2252_v2 }
 0x812   :  { %v2281_v29 = vadd.f32 %v2279_v15, %v4741_v3  ;;  %v2272_v41 = vsel %vm2269_vm15, %v2271_v12, %v2267_v9  ;;  %v2285_v17 = vsub.f32 1.0, %v2257_v14  ;;  %v2295_v28 = vmul.f32 %v2291_v19, %v2257_v14 }
 0x813   :  { %v2282_v60 = vadd.f32 %v2280_v24, %v4744_v45  ;;  %v2286_v23 = vsub.f32 1.0, %v2272_v41  ;;  %v2296_v34 = vmul.f32 %v2292_v21, %v2272_v41 }
 0x814   :  { %3719 = vtanh.f32 %v2281_v29 }
 0x815   :  { %3721 = vtanh.f32 %v2282_v60 }
 0x81a   :  { %v3720_v20 = vpop.eup %3719 }
 0x81b   :  { %v3722_v26 = vpop.eup %3721  ;;  %v2287_v31 = vmul.f32 %v3720_v20, %v2285_v17 }
 0x81c   :  { %v2288_v33 = vmul.f32 %v3722_v26, %v2286_v23 }
 0x81d   :  { %v4851_v36 = vadd.f32 %v2295_v28, %v2287_v31 }
 0x81e   :  { %v4853_v48 = vadd.f32 %v2296_v34, %v2288_v33 }
 0x81f   :  { %2299 = vst.msk [vmem:[#allocation3] sm:$0x4] %vm785_vm2, %v4851_v36  ;;  %v2301_v39 = vpack.c.bf16 %v4851_v36, %v4851_v36 }
 0x820   :  { %2300 = vst.msk [vmem:[#allocation3 + $0x8] sm:$0x4] %vm785_vm2, %v4853_v48  ;;  %v2302_v51 = vpack.c.bf16 %v4853_v48, %v4853_v48 }
 0x821   :  { %v2305_v52 = vunpack.c.l.b16 %v2301_v39 }
 0x822   :  { %v2306_v44 = vunpack.c.l.b16 %v2302_v51 }
 0x823   :  { %v2307_v42 = vrot.slane %v2305_v52, 2 }
 0x824   :  { %v2308_v57 = vrot.slane %v2306_v44, 1 }
 0x826   :  { %v2309_v40 = vsel %vm459_vm5, %v2308_v57, %v2307_v42 }
 0x827   :  { %v2310_v8 = vpack.c.b16 %v2309_v40, %v2309_v40 }
 0x829   :  { %3410 = vmatmul.msk.bf16.vlgmr.msrb.gmra.mxu3 %vm269_vm1, %v2310_v8  ;;  %3411 = vmatmul.msk.bf16.vlgmr.msra.gmra.mxu0 %vm269_vm1, %v2310_v8 }
 0x82a   :  { %3412 = vmatmul.msk.bf16.vlgmr.msra.gmra.mxu1 %vm269_vm1, %v2310_v8  ;;  %2698 = vmatpush.bf16.msrb.mxu3 %v4694_v6 }
 0x82b   :  { %2827 = vmatpush.bf16.msra.mxu0 %v4868_v46  ;;  %2847 = vmatpush.bf16.msra.mxu1 %v4657_v32 }
 0x82e   :  { %2699 = vmatpush.bf16.msrb.mxu3 %v4697_v62 }
 0x82f   :  { %2828 = vmatpush.bf16.msra.mxu0 %v4873_v56  ;;  %2848 = vmatpush.bf16.msra.mxu1 %v4670_v37 }
 0x8a6   :  { %v2343_v59 = vpop.f32.mrf.mxu0 }
 0x8a7   :  { %v2348_v49 = vrot.slane %v2343_v59, 5  ;;  %v2349_v0 = vrot.slane %v2343_v59, 6  ;;  %v2363_v1 = vpop.f32.mrf.mxu1 }
 0x8a8   :  { %v2364_v9 = vadd.f32 %v4738_v50, %v2363_v1 }
 0x8a9   :  { %v2352_v6 = vadd.f32 %v2348_v49, %v4729_v47  ;;  %v2353_v18 = vadd.f32 %v2349_v0, %v4731_v35 }
 0x8aa   :  { %v2444_v21 = vrot.slane %v2364_v9, 5  ;;  %v2445_v52 = vrot.slane %v2364_v9, 6 }
 0x8ab   :  { %v3415_v22 = vmul.f32 -1.442695, %v2352_v6  ;;  %v3416_v53 = vmul.f32 -1.442695, %v2353_v18 }
 0x8ac   :  { %v2323_v27 = vpop.f32.mrf.mxu3 }
 0x8ad   :  { %3723 = vpow2.f32 %v3415_v22  ;;  %v2328_v32 = vrot.slane %v2323_v27, 5  ;;  %v2329_v62 = vrot.slane %v2323_v27, 6 }
 0x8ae   :  { %3725 = vpow2.f32 %v3416_v53  ;;  %v2345_v30 = vpop.f32.mrf.mxu0 }
 0x8af   :  { %v2332_v54 = vadd.f32 %v2328_v32, %v4723_v38  ;;  %v2333_v37 = vadd.f32 %v2329_v62, %v4726_v43  ;;  %v2365_v10 = vpop.f32.mrf.mxu1 }
 0x8b1   :  { %v3413_v55 = vmul.f32 -1.442695, %v2332_v54  ;;  %v3414_v13 = vmul.f32 -1.442695, %v2333_v37 }
 0x8b3   :  { %v3724_v4 = vpop.eup %3723  ;;  %3727 = vpow2.f32 %v3413_v55 }
 0x8b4   :  { %v3726_v25 = vpop.eup %3725  ;;  %v4881_v11 = vadd.f32 1.0, %v3724_v4  ;;  %3729 = vpow2.f32 %v3414_v13  ;;  %v2325_v58 = vpop.f32.mrf.mxu3 }
 0x8b5   :  { %v4883_v7 = vadd.f32 1.0, %v3726_v25 }
 0x8b6   :  { %3731 = vrcp.f32 %v4881_v11  ;;  %v2424_v42 = vand.u32 2147483648, %v4881_v11  ;;  %vm2418_vm14 = vweird.f32 %v4881_v11  ;;  %v2422_v53 = vand.u32 2147483647, %v4881_v11 }
 0x8b7   :  { %3733 = vrcp.f32 %v4883_v7  ;;  %v2439_v27 = vand.u32 2147483648, %v4883_v7  ;;  %v2437_v62 = vand.u32 2147483647, %v4883_v7 }
 0x8b8   :  { %v2425_v10 = vor.u32 1.1754944e-38, %v2424_v42 }
 0x8b9   :  { %v3728_v15 = vpop.eup %3727  ;;  %v2440_v13 = vor.u32 1.1754944e-38, %v2439_v27 }
 0x8ba   :  { %v3730_v61 = vpop.eup %3729  ;;  %v2373_v63 = vadd.f32 1.0, %v3728_v15  ;;  %v2461_v15 = vrot.slane %v4853_v48, 7 }
 0x8bb   :  { %v2374_v24 = vadd.f32 1.0, %v3730_v61 }
 0x8bc   :  { %3735 = vrcp.f32 %v2373_v63  ;;  %v4887_v16 = vpop.eup %3731  ;;  %v2386_v23 = vand.u32 2147483648, %v2373_v63  ;;  %v2384_v28 = vand.u32 2147483647, %v2373_v63  ;;  %vm2380_vm9 = vweird.f32 %v2373_v63 }
 0x8bd   :  { %3737 = vrcp.f32 %v2374_v24  ;;  %v4889_v29 = vpop.eup %3733  ;;  %v2414_v2 = vmul.f32 %v4887_v16, %v4881_v11  ;;  %v2401_v33 = vand.u32 2147483648, %v2374_v24  ;;  %v2399_v51 = vand.u32 2147483647, %v2374_v24 }
 0x8be   :  { %v2429_v60 = vmul.f32 %v4889_v29, %v4883_v7  ;;  %v2387_v57 = vor.u32 1.1754944e-38, %v2386_v23  ;;  %vm2395_vm11 = vweird.f32 %v2374_v24  ;;  %vm2419_vm12 = vweird.f32 %v4887_v16  ;;  %v4936_v23 = vld [vmem:[#allocation12 + $0x20] sm:$0xff] }
 0x8bf   :  { %v2415_v41 = vsub.f32 1.0, %v2414_v2  ;;  %vm2385_vm6 = vcmp.eq.f32.partialorder %v2384_v28, 8.507059e+37  ;;  %v2402_v59 = vor.u32 1.1754944e-38, %v2401_v33  ;;  %vm2400_vm10 = vcmp.eq.f32.partialorder %v2399_v51, 8.507059e+37  ;;  %vm2420_vm15 = vmor %vm2418_vm14, %vm2419_vm12 }
 0x8c0   :  { %v2430_v19 = vsub.f32 1.0, %v2429_v60  ;;  %vm2434_vm13 = vweird.f32 %v4889_v29  ;;  %v2460_v11 = vrot.slane %v4851_v36, 7 }
 0x8c1   :  { %v2416_v34 = vmul.f32 %v4887_v16, %v2415_v41 }
 0x8c2   :  { %v3736_v5 = vpop.eup %3735  ;;  %v2431_v50 = vmul.f32 %v4889_v29, %v2430_v19 }
 0x8c3   :  { %v3738_v12 = vpop.eup %3737  ;;  %v2376_v14 = vmul.f32 %v3736_v5, %v2373_v63  ;;  %vm2381_vm2 = vweird.f32 %v3736_v5  ;;  %v2417_v49 = vadd.f32 %v4887_v16, %v2416_v34 }
 0x8c4   :  { %v2391_v17 = vmul.f32 %v3738_v12, %v2374_v24  ;;  %vm2396_vm7 = vweird.f32 %v3738_v12  ;;  %vm2382_vm3 = vmor %vm2380_vm9, %vm2381_vm2  ;;  %v2432_v6 = vadd.f32 %v4889_v29, %v2431_v50  ;;  %vm2433_vm2 = vweird.f32 %v4883_v7 }
 0x8c5   :  { %v2377_v20 = vsub.f32 1.0, %v2376_v14  ;;  %vm2397_vm4 = vmor %vm2395_vm11, %vm2396_vm7  ;;  %v2421_v54 = vsel %vm2420_vm15, %v4887_v16, %v2417_v49  ;;  %vm2423_vm9 = vcmp.eq.f32.partialorder %v2422_v53, 8.507059e+37  ;;  %vm5163_vm11 = vcmask 257027  }
 0x8c6   :  { %v2392_v26 = vsub.f32 1.0, %v2391_v17  ;;  %vm2435_vm7 = vmor %vm2433_vm2, %vm2434_vm13  ;;  %v2426_v4 = vsel %vm2423_vm9, %v2425_v10, %v2421_v54 }
 0x8c7   :  { %v2378_v31 = vmul.f32 %v3736_v5, %v2377_v20  ;;  %v2436_v55 = vsel %vm2435_vm7, %v4889_v29, %v2432_v6  ;;  %v2454_v58 = vsub.f32 1.0, %v2426_v4  ;;  %v2464_v24 = vmul.f32 %v2460_v11, %v2426_v4  ;;  %vm5164_vm12 = vmmov %vm5163_vm11  ;;  %v4932_v20 = vld [vmem:[#allocation12 + $0x28] sm:$0xff] }
 0x8c8   :  { %v2393_v39 = vmul.f32 %v3738_v12, %v2392_v26  ;;  %v3835_v26 = vld [vmem:[#allocation12 + $0x10] sm:$0xff] }
 0x8c9   :  { %v2379_v44 = vadd.f32 %v3736_v5, %v2378_v31 }
 0x8ca   :  { %v2394_v40 = vadd.f32 %v3738_v12, %v2393_v39 }
 0x8cb   :  { %v2383_v8 = vsel %vm2382_vm3, %v3736_v5, %v2379_v44  ;;  %vm2438_vm3 = vcmp.eq.f32.partialorder %v2437_v62, 8.507059e+37 }
 0x8cc   :  { %v2388_v0 = vsel %vm2385_vm6, %v2387_v57, %v2383_v8  ;;  %v2398_v1 = vsel %vm2397_vm4, %v3738_v12, %v2394_v40  ;;  %v2441_v25 = vsel %vm2438_vm3, %v2440_v13, %v2436_v55 }
 0x8cd   :  { %v2403_v18 = vsel %vm2400_vm10, %v2402_v59, %v2398_v1  ;;  %v2448_v22 = vmul.f32 %v2444_v21, %v2388_v0  ;;  %v2455_v61 = vsub.f32 1.0, %v2441_v25  ;;  %v2465_v2 = vmul.f32 %v2461_v15, %v2441_v25  ;;  %v3833_v21 = vld [vmem:[#allocation12 + $0x18] sm:$0xff] }
 0x8ce   :  { %v2449_v32 = vmul.f32 %v2445_v52, %v2403_v18 }
 0x8cf   :  { %v2450_v30 = vadd.f32 %v2448_v22, %v4741_v3 }
 0x8d0   :  { %v2451_v37 = vadd.f32 %v2449_v32, %v4744_v45 }
 0x8d1   :  { %3739 = vtanh.f32 %v2450_v30  ;;  %v4952_v30 = vld [vmem:[%s5145_s9] ss:$0 sm:$0xff] }
 0x8d2   :  { %3741 = vtanh.f32 %v2451_v37 }
 0x8d7   :  { %v3740_v7 = vpop.eup %3739 }
 0x8d8   :  { %v3742_v63 = vpop.eup %3741  ;;  %v2456_v16 = vmul.f32 %v3740_v7, %v2454_v58 }
 0x8d9   :  { %v2457_v60 = vmul.f32 %v3742_v63, %v2455_v61 }
 0x8da   :  { %v4916_v29 = vadd.f32 %v2464_v24, %v2456_v16 }
 0x8db   :  { %v4918_v5 = vadd.f32 %v2465_v2, %v2457_v60 }
 0x8dc   :  { %2468 = vst.msk [vmem:[#allocation3] sm:$0x8] %vm5163_vm11, %v4916_v29  ;;  %v2470_v36 = vpack.c.bf16 %v4916_v29, %v4916_v29 }
 0x8dd   :  { %2469 = vst.msk [vmem:[#allocation3 + $0x8] sm:$0x8] %vm5164_vm12, %v4918_v5  ;;  %v2471_v48 = vpack.c.bf16 %v4918_v5, %v4918_v5 }
 0x8de   :  { %v2474_v9 = vunpack.c.l.b16 %v2470_v36 }
 0x8df   :  { %v2475_v12 = vunpack.c.l.b16 %v2471_v48 }
 0x8e0   :  { %v2476_v14 = vrot.slane %v2474_v9, 3 }
 0x8e1   :  { %v2477_v41 = vrot.slane %v2475_v12, 2 }
 0x8e3   :  { %v2478_v17 = vsel %vm459_vm5, %v2477_v41, %v2476_v14 }
 0x8e4   :  { %v2479_v19 = vpack.c.b16 %v2478_v17, %v2478_v17 }
 0x8e6   :  { %3417 = vmatmul.msk.bf16.vlgmr.msra.gmra.mxu2 %vm269_vm1, %v2479_v19  ;;  %3418 = vmatmul.msk.bf16.vlgmr.msra.gmra.mxu3 %vm269_vm1, %v2479_v19 }
 0x8e7   :  { %3419 = vmatmul.msk.bf16.vlgmr.msrb.gmra.mxu0 %vm269_vm1, %v2479_v19  ;;  %2867 = vmatpush.bf16.msra.mxu2 %v4932_v20 }
 0x8e8   :  { %2996 = vmatpush.bf16.msra.mxu3 %v4868_v46  ;;  %3016 = vmatpush.bf16.msrb.mxu0 %v3833_v21 }
 0x8eb   :  { %2868 = vmatpush.bf16.msra.mxu2 %v4936_v23 }
 0x8ec   :  { %2997 = vmatpush.bf16.msra.mxu3 %v4873_v56  ;;  %3017 = vmatpush.bf16.msrb.mxu0 %v3835_v26 }
 0x964   :  { %v2532_v31 = vpop.f32.mrf.mxu0 }
 0x965   :  { %v2533_v54 = vadd.f32 %v4952_v30, %v2532_v31 }
 0x967   :  { %v2613_v4 = vrot.slane %v2533_v54, 4  ;;  %v2614_v15 = vrot.slane %v2533_v54, 5 }
 0x969   :  { %v2492_v28 = vpop.f32.mrf.mxu2  ;;  %v2512_v33 = vpop.f32.mrf.mxu3 }
 0x96a   :  { %v2497_v34 = vrot.slane %v2492_v28, 4  ;;  %v2498_v39 = vrot.slane %v2492_v28, 5  ;;  %v2517_v51 = vrot.slane %v2512_v33, 4  ;;  %v2518_v50 = vrot.slane %v2512_v33, 5 }
 0x96c   :  { %v2501_v52 = vadd.f32 %v2497_v34, %v4723_v38  ;;  %v2502_v46 = vadd.f32 %v2498_v39, %v4726_v43  ;;  %v2521_v44 = vadd.f32 %v2517_v51, %v4729_v47  ;;  %v2522_v42 = vadd.f32 %v2518_v50, %v4731_v35  ;;  %v2534_v57 = vpop.f32.mrf.mxu0 }
 0x96e   :  { %v3420_v40 = vmul.f32 -1.442695, %v2501_v52  ;;  %v3421_v56 = vmul.f32 -1.442695, %v2502_v46  ;;  %v3422_v8 = vmul.f32 -1.442695, %v2521_v44 }
 0x96f   :  { %v3423_v59 = vmul.f32 -1.442695, %v2522_v42 }
 0x970   :  { %3743 = vpow2.f32 %v3420_v40 }
 0x971   :  { %3745 = vpow2.f32 %v3421_v56  ;;  %v2494_v49 = vpop.f32.mrf.mxu2  ;;  %v2514_v0 = vpop.f32.mrf.mxu3 }
 0x972   :  { %3747 = vpow2.f32 %v3422_v8 }
 0x973   :  { %3749 = vpow2.f32 %v3423_v59 }
 0x976   :  { %v3744_v1 = vpop.eup %3743 }
 0x977   :  { %v3746_v6 = vpop.eup %3745  ;;  %v2542_v18 = vadd.f32 1.0, %v3744_v1 }
 0x978   :  { %v3748_v22 = vpop.eup %3747  ;;  %v2543_v53 = vadd.f32 1.0, %v3746_v6 }
 0x979   :  { %v3750_v27 = vpop.eup %3749  ;;  %3751 = vrcp.f32 %v2542_v18  ;;  %v4944_v32 = vadd.f32 1.0, %v3748_v22  ;;  %v2553_v11 = vand.u32 2147483647, %v2542_v18  ;;  %v2555_v58 = vand.u32 2147483648, %v2542_v18 }
 0x97a   :  { %3753 = vrcp.f32 %v2543_v53  ;;  %v4946_v62 = vadd.f32 1.0, %v3750_v27  ;;  %v2568_v63 = vand.u32 2147483647, %v2543_v53  ;;  %v2570_v24 = vand.u32 2147483648, %v2543_v53 }
 0x97b   :  { %3755 = vrcp.f32 %v4944_v32  ;;  %vm2549_vm6 = vweird.f32 %v2542_v18  ;;  %vm2564_vm10 = vweird.f32 %v2543_v53  ;;  %vm2554_vm14 = vcmp.eq.f32.partialorder %v2553_v11, 8.507059e+37 }
 0x97c   :  { %3757 = vrcp.f32 %v4946_v62  ;;  %v2556_v12 = vor.u32 1.1754944e-38, %v2555_v58  ;;  %vm2569_vm2 = vcmp.eq.f32.partialorder %v2568_v63, 8.507059e+37  ;;  %v2571_v17 = vor.u32 1.1754944e-38, %v2570_v24 }
 0x97d   :  { %vm2587_vm9 = vweird.f32 %v4944_v32  ;;  %v2593_v31 = vand.u32 2147483648, %v4944_v32  ;;  %v2591_v46 = vand.u32 2147483647, %v4944_v32  ;;  %v2608_v42 = vand.u32 2147483648, %v4946_v62 }
 0x97e   :  { %v2606_v40 = vand.u32 2147483647, %v4946_v62  ;;  %v2629_v22 = vrot.slane %v4916_v29, 7 }
 0x97f   :  { %v3752_v37 = vpop.eup %3751  ;;  %v2594_v59 = vor.u32 1.1754944e-38, %v2593_v31  ;;  %v2609_v0 = vor.u32 1.1754944e-38, %v2608_v42 }
 0x980   :  { %v3754_v10 = vpop.eup %3753  ;;  %v2545_v55 = vmul.f32 %v3752_v37, %v2542_v18  ;;  %vm2550_vm4 = vweird.f32 %v3752_v37 }
 0x981   :  { %v2560_v13 = vmul.f32 %v3754_v10, %v2543_v53  ;;  %v3756_v7 = vpop.eup %3755  ;;  %vm2565_vm13 = vweird.f32 %v3754_v10  ;;  %vm2551_vm15 = vmor %vm2549_vm6, %vm2550_vm4  ;;  %vm2602_vm6 = vweird.f32 %v4946_v62 }
 0x982   :  { %v2546_v25 = vsub.f32 1.0, %v2545_v55  ;;  %v3758_v16 = vpop.eup %3757  ;;  %v2583_v60 = vmul.f32 %v3756_v7, %v4944_v32  ;;  %vm2566_vm7 = vmor %vm2564_vm10, %vm2565_vm13  ;;  %vm2588_vm3 = vweird.f32 %v3756_v7  ;;  %vm2592_vm10 = vcmp.eq.f32.partialorder %v2591_v46, 8.507059e+37 }
 0x983   :  { %v2561_v61 = vsub.f32 1.0, %v2560_v13  ;;  %v2598_v48 = vmul.f32 %v3758_v16, %v4946_v62  ;;  %vm2603_vm11 = vweird.f32 %v3758_v16  ;;  %vm2589_vm12 = vmor %vm2587_vm9, %vm2588_vm3  ;;  %vm2607_vm13 = vcmp.eq.f32.partialorder %v2606_v40, 8.507059e+37 }
 0x984   :  { %v2547_v2 = vmul.f32 %v3752_v37, %v2546_v25  ;;  %v2584_v14 = vsub.f32 1.0, %v2583_v60  ;;  %vm2604_vm4 = vmor %vm2602_vm6, %vm2603_vm11  ;;  %v2630_v32 = vrot.slane %v4918_v5, 7 }
 0x985   :  { %v2562_v36 = vmul.f32 %v3754_v10, %v2561_v61  ;;  %v2599_v19 = vsub.f32 1.0, %v2598_v48 }
 0x986   :  { %v2548_v9 = vadd.f32 %v3752_v37, %v2547_v2  ;;  %v2585_v26 = vmul.f32 %v3756_v7, %v2584_v14 }
 0x987   :  { %v2563_v41 = vadd.f32 %v3754_v10, %v2562_v36  ;;  %v2600_v34 = vmul.f32 %v3758_v16, %v2599_v19 }
 0x988   :  { %v2552_v21 = vsel %vm2551_vm15, %v3752_v37, %v2548_v9  ;;  %v2586_v50 = vadd.f32 %v3756_v7, %v2585_v26 }
 0x989   :  { %v2557_v28 = vsel %vm2554_vm14, %v2556_v12, %v2552_v21  ;;  %v2567_v33 = vsel %vm2566_vm7, %v3754_v10, %v2563_v41  ;;  %v2601_v44 = vadd.f32 %v3758_v16, %v2600_v34  ;;  %vm5165_vm14 = vcmask 258052  }
 0x98a   :  { %v2572_v39 = vsel %vm2569_vm2, %v2571_v17, %v2567_v33  ;;  %v2617_v51 = vmul.f32 %v2613_v4, %v2557_v28  ;;  %v2590_v8 = vsel %vm2589_vm12, %v3756_v7, %v2586_v50  ;;  %vm5166_vm15 = vmmov %vm5165_vm14 }
 0x98b   :  { %v2618_v52 = vmul.f32 %v2614_v15, %v2572_v39  ;;  %v2605_v49 = vsel %vm2604_vm4, %v3758_v16, %v2601_v44  ;;  %v2595_v1 = vsel %vm2592_vm10, %v2594_v59, %v2590_v8 }
 0x98c   :  { %v2619_v57 = vadd.f32 %v2617_v51, %v4741_v3  ;;  %v2610_v6 = vsel %vm2607_vm13, %v2609_v0, %v2605_v49  ;;  %v2623_v18 = vsub.f32 1.0, %v2595_v1  ;;  %v2633_v54 = vmul.f32 %v2629_v22, %v2595_v1 }
 0x98d   :  { %v2620_v56 = vadd.f32 %v2618_v52, %v4744_v45  ;;  %v2624_v27 = vsub.f32 1.0, %v2610_v6  ;;  %v2634_v10 = vmul.f32 %v2630_v32, %v2610_v6 }
 0x98e   :  { %3759 = vtanh.f32 %v2619_v57 }
 0x98f   :  { %3761 = vtanh.f32 %v2620_v56 }
 0x994   :  { %v3760_v53 = vpop.eup %3759 }
 0x995   :  { %v3762_v62 = vpop.eup %3761  ;;  %v2625_v37 = vmul.f32 %v3760_v53, %v2623_v18 }
 0x996   :  { %v2626_v55 = vmul.f32 %v3762_v62, %v2624_v27 }
 0x997   :  { %v4970_v13 = vadd.f32 %v2633_v54, %v2625_v37 }
 0x998   :  { %v4972_v4 = vadd.f32 %v2634_v10, %v2626_v55 }
 0x999   :  { %2637 = vst.msk [vmem:[#allocation3] sm:$0x10] %vm5165_vm14, %v4970_v13  ;;  %v2639_v25 = vpack.c.bf16 %v4970_v13, %v4970_v13 }
 0x99a   :  { %2638 = vst.msk [vmem:[#allocation3 + $0x8] sm:$0x10] %vm5166_vm15, %v4972_v4  ;;  %v2640_v29 = vpack.c.bf16 %v4972_v4, %v4972_v4 }
 0x99b   :  { %v2643_v5 = vunpack.c.l.b16 %v2639_v25 }
 0x99c   :  { %v2644_v11 = vunpack.c.l.b16 %v2640_v29 }
 0x99d   :  { %v2645_v58 = vrot.slane %v2643_v5, 4 }
 0x99e   :  { %v2646_v7 = vrot.slane %v2644_v11, 3 }
 0x9a0   :  { %v2647_v15 = vsel %vm459_vm5, %v2646_v7, %v2645_v58 }
 0x9a1   :  { %v2648_v61 = vpack.c.b16 %v2647_v15, %v2647_v15 }
 0x9a3   :  { %3424 = vmatmul.msk.bf16.vlgmr.msrb.gmra.mxu1 %vm269_vm1, %v2648_v61  ;;  %3425 = vmatmul.msk.bf16.vlgmr.msrb.gmra.mxu2 %vm269_vm1, %v2648_v61 }
 0x9a4   :  { %3426 = vmatmul.msk.bf16.vlgmr.msrb.gmra.mxu3 %vm269_vm1, %v2648_v61  ;;  %3036 = vmatpush.bf16.msrb.mxu1 %v4932_v20 }
 0x9a8   :  { %3037 = vmatpush.bf16.msrb.mxu1 %v4936_v23 }
 0xa20   :  { %v2661_v63 = vpop.f32.mrf.mxu1 }
 0xa21   :  { %v2666_v24 = vrot.slane %v2661_v63, 3  ;;  %v2667_v16 = vrot.slane %v2661_v63, 4 }
 0xa23   :  { %v2670_v2 = vadd.f32 %v2666_v24, %v4723_v38  ;;  %v2671_v60 = vadd.f32 %v2667_v16, %v4726_v43 }
 0xa25   :  { %v3427_v36 = vmul.f32 -1.442695, %v2670_v2  ;;  %v3428_v48 = vmul.f32 -1.442695, %v2671_v60 }
 0xa26   :  { %v2681_v9 = vpop.f32.mrf.mxu2 }
 0xa27   :  { %3763 = vpow2.f32 %v3427_v36  ;;  %v2686_v12 = vrot.slane %v2681_v9, 3  ;;  %v2687_v14 = vrot.slane %v2681_v9, 4  ;;  %v2701_v41 = vpop.f32.mrf.mxu3 }
 0xa28   :  { %3765 = vpow2.f32 %v3428_v48  ;;  %v2663_v17 = vpop.f32.mrf.mxu1  ;;  %v2702_v57 = vadd.f32 %v4952_v30, %v2701_v41 }
 0xa29   :  { %v2690_v20 = vadd.f32 %v2686_v12, %v4729_v47  ;;  %v2691_v23 = vadd.f32 %v2687_v14, %v4731_v35 }
 0xa2a   :  { %v2782_v18 = vrot.slane %v2702_v57, 3  ;;  %v2783_v32 = vrot.slane %v2702_v57, 4 }
 0xa2b   :  { %v3429_v19 = vmul.f32 -1.442695, %v2690_v20  ;;  %v3430_v21 = vmul.f32 -1.442695, %v2691_v23 }
 0xa2d   :  { %v3764_v26 = vpop.eup %3763  ;;  %3767 = vpow2.f32 %v3429_v19 }
 0xa2e   :  { %v3766_v31 = vpop.eup %3765  ;;  %v2711_v28 = vadd.f32 1.0, %v3764_v26  ;;  %3769 = vpow2.f32 %v3430_v21  ;;  %v2683_v33 = vpop.f32.mrf.mxu2 }
 0xa2f   :  { %v2712_v34 = vadd.f32 1.0, %v3766_v31  ;;  %v2703_v39 = vpop.f32.mrf.mxu3 }
 0xa30   :  { %3771 = vrcp.f32 %v2711_v28  ;;  %v2722_v8 = vand.u32 2147483647, %v2711_v28  ;;  %v2724_v49 = vand.u32 2147483648, %v2711_v28  ;;  %vm2718_vm9 = vweird.f32 %v2711_v28 }
 0xa31   :  { %3773 = vrcp.f32 %v2712_v34  ;;  %v2737_v1 = vand.u32 2147483647, %v2712_v34  ;;  %v2739_v6 = vand.u32 2147483648, %v2712_v34  ;;  %vm2733_vm11 = vweird.f32 %v2712_v34 }
 0xa32   :  { %vm5000_vm3 = vcmp.eq.f32.partialorder %v2722_v8, 8.507059e+37  ;;  %v2725_v25 = vor.u32 1.1754944e-38, %v2724_v49 }
 0xa33   :  { %v3768_v51 = vpop.eup %3767  ;;  %vm2738_vm10 = vcmp.eq.f32.partialorder %v2737_v1, 8.507059e+37  ;;  %v2740_v11 = vor.u32 1.1754944e-38, %v2739_v6 }
 0xa34   :  { %v3770_v50 = vpop.eup %3769  ;;  %v4992_v52 = vadd.f32 1.0, %v3768_v51 }
 0xa35   :  { %v4994_v46 = vadd.f32 1.0, %v3770_v50  ;;  %v2799_v50 = vrot.slane %v4972_v4, 7 }
 0xa36   :  { %v3772_v44 = vpop.eup %3771  ;;  %3775 = vrcp.f32 %v4992_v52  ;;  %vm2756_vm6 = vweird.f32 %v4992_v52  ;;  %v2762_v58 = vand.u32 2147483648, %v4992_v52  ;;  %v2760_v9 = vand.u32 2147483647, %v4992_v52 }
 0xa37   :  { %v3774_v42 = vpop.eup %3773  ;;  %3777 = vrcp.f32 %v4994_v46  ;;  %v2714_v40 = vmul.f32 %v3772_v44, %v2711_v28  ;;  %vm2719_vm2 = vweird.f32 %v3772_v44  ;;  %vm2771_vm15 = vweird.f32 %v4994_v46 }
 0xa38   :  { %v2729_v56 = vmul.f32 %v3774_v42, %v2712_v34  ;;  %vm2734_vm7 = vweird.f32 %v3774_v42  ;;  %vm2720_vm12 = vmor %vm2718_vm9, %vm2719_vm2  ;;  %v2777_v12 = vand.u32 2147483648, %v4994_v46  ;;  %v2775_v41 = vand.u32 2147483647, %v4994_v46 }
 0xa39   :  { %v2715_v59 = vsub.f32 1.0, %v2714_v40  ;;  %vm2735_vm4 = vmor %vm2733_vm11, %vm2734_vm7  ;;  %v2763_v19 = vor.u32 1.1754944e-38, %v2762_v58  ;;  %vm2761_vm9 = vcmp.eq.f32.partialorder %v2760_v9, 8.507059e+37  ;;  %v2798_v34 = vrot.slane %v4970_v13, 7 }
 0xa3a   :  { %v2730_v0 = vsub.f32 1.0, %v2729_v56  ;;  %v2778_v26 = vor.u32 1.1754944e-38, %v2777_v12 }
 0xa3b   :  { %v2716_v53 = vmul.f32 %v3772_v44, %v2715_v59 }
 0xa3c   :  { %v3776_v22 = vpop.eup %3775  ;;  %v2731_v27 = vmul.f32 %v3774_v42, %v2730_v0 }
 0xa3d   :  { %v3778_v62 = vpop.eup %3777  ;;  %v2752_v54 = vmul.f32 %v3776_v22, %v4992_v52  ;;  %v2717_v55 = vadd.f32 %v3772_v44, %v2716_v53  ;;  %vm2757_vm13 = vweird.f32 %v3776_v22 }
 0xa3e   :  { %v2767_v10 = vmul.f32 %v3778_v62, %v4994_v46  ;;  %v2732_v29 = vadd.f32 %v3774_v42, %v2731_v27  ;;  %vm2772_vm14 = vweird.f32 %v3778_v62  ;;  %vm2758_vm2 = vmor %vm2756_vm6, %vm2757_vm13 }
 0xa3f   :  { %v2753_v5 = vsub.f32 1.0, %v2752_v54  ;;  %v2721_v15 = vsel %vm2720_vm12, %v3772_v44, %v2717_v55  ;;  %vm2773_vm7 = vmor %vm2771_vm15, %vm2772_vm14 }
 0xa40   :  { %v2768_v7 = vsub.f32 1.0, %v2767_v10  ;;  %v2736_v61 = vsel %vm2735_vm4, %v3774_v42, %v2732_v29  ;;  %v2726_v24 = vsel %vm5000_vm3, %v2725_v25, %v2721_v15  ;;  %vm2776_vm3 = vcmp.eq.f32.partialorder %v2775_v41, 8.507059e+37 }
 0xa41   :  { %v2754_v63 = vmul.f32 %v3776_v22, %v2753_v5  ;;  %v2741_v16 = vsel %vm2738_vm10, %v2740_v11, %v2736_v61  ;;  %v2786_v60 = vmul.f32 %v2782_v18, %v2726_v24 }
 0xa42   :  { %v2769_v2 = vmul.f32 %v3778_v62, %v2768_v7  ;;  %v2787_v36 = vmul.f32 %v2783_v32, %v2741_v16 }
 0xa43   :  { %v2755_v48 = vadd.f32 %v3776_v22, %v2754_v63  ;;  %v2788_v17 = vadd.f32 %v2786_v60, %v4741_v3 }
 0xa44   :  { %v2770_v14 = vadd.f32 %v3778_v62, %v2769_v2  ;;  %v2789_v20 = vadd.f32 %v2787_v36, %v4744_v45 }
 0xa45   :  { %v2759_v23 = vsel %vm2758_vm2, %v3776_v22, %v2755_v48  ;;  %3779 = vtanh.f32 %v2788_v17 }
 0xa46   :  { %v2774_v21 = vsel %vm2773_vm7, %v3778_v62, %v2770_v14  ;;  %3781 = vtanh.f32 %v2789_v20  ;;  %v2764_v31 = vsel %vm2761_vm9, %v2763_v19, %v2759_v23 }
 0xa47   :  { %v2779_v28 = vsel %vm2776_vm3, %v2778_v26, %v2774_v21  ;;  %v2792_v33 = vsub.f32 1.0, %v2764_v31  ;;  %v2802_v44 = vmul.f32 %v2798_v34, %v2764_v31 }
 0xa48   :  { %v2793_v51 = vsub.f32 1.0, %v2779_v28  ;;  %v2803_v57 = vmul.f32 %v2799_v50, %v2779_v28 }
 0xa4b   :  { %v3780_v39 = vpop.eup %3779 }
 0xa4c   :  { %v3782_v52 = vpop.eup %3781  ;;  %v2794_v46 = vmul.f32 %v3780_v39, %v2792_v33 }
 0xa4d   :  { %v2795_v42 = vmul.f32 %v3782_v52, %v2793_v51 }
 0xa4e   :  { %v5020_v40 = vadd.f32 %v2802_v44, %v2794_v46 }
 0xa4f   :  { %v5022_v56 = vadd.f32 %v2803_v57, %v2795_v42 }
 0xa50   :  { %2806 = vst.msk [vmem:[#allocation3] sm:$0x20] %vm1295_vm0, %v5020_v40  ;;  %v2808_v8 = vpack.c.bf16 %v5020_v40, %v5020_v40 }
 0xa51   :  { %2807 = vst.msk [vmem:[#allocation3 + $0x8] sm:$0x20] %vm1295_vm0, %v5022_v56  ;;  %v2809_v13 = vpack.c.bf16 %v5022_v56, %v5022_v56 }
 0xa52   :  { %v2812_v4 = vunpack.c.l.b16 %v2808_v8 }
 0xa53   :  { %v2813_v59 = vunpack.c.l.b16 %v2809_v13 }
 0xa54   :  { %v2814_v49 = vrot.slane %v2812_v4, 5 }
 0xa55   :  { %v2815_v0 = vrot.slane %v2813_v59, 4 }
 0xa57   :  { %v2816_v1 = vsel %vm459_vm5, %v2815_v0, %v2814_v49 }
 0xa58   :  { %v2817_v6 = vpack.c.b16 %v2816_v1, %v2816_v1 }
 0xa5a   :  { %3431 = vmatmul.msk.bf16.vlgmr.msra.gmra.mxu0 %vm269_vm1, %v2817_v6  ;;  %3432 = vmatmul.msk.bf16.vlgmr.msra.gmra.mxu1 %vm269_vm1, %v2817_v6 }
 0xa5b   :  { %3433 = vmatmul.msk.bf16.vlgmr.msra.gmra.mxu2 %vm269_vm1, %v2817_v6 }
 0xad7   :  { %v2830_v18 = vpop.f32.mrf.mxu0  ;;  %v2850_v22 = vpop.f32.mrf.mxu1 }
 0xad8   :  { %v2835_v53 = vrot.slane %v2830_v18, 2  ;;  %v2836_v27 = vrot.slane %v2830_v18, 3  ;;  %v2855_v32 = vrot.slane %v2850_v22, 2  ;;  %v2856_v62 = vrot.slane %v2850_v22, 3 }
 0xada   :  { %v2839_v54 = vadd.f32 %v2835_v53, %v4723_v38  ;;  %v2840_v37 = vadd.f32 %v2836_v27, %v4726_v43  ;;  %v2859_v10 = vadd.f32 %v2855_v32, %v4729_v47  ;;  %v2860_v55 = vadd.f32 %v2856_v62, %v4731_v35 }
 0xadc   :  { %v3434_v25 = vmul.f32 -1.442695, %v2839_v54  ;;  %v3435_v29 = vmul.f32 -1.442695, %v2840_v37  ;;  %v3436_v5 = vmul.f32 -1.442695, %v2859_v10 }
 0xadd   :  { %v3437_v11 = vmul.f32 -1.442695, %v2860_v55 }
 0xade   :  { %3783 = vpow2.f32 %v3434_v25  ;;  %v2870_v58 = vpop.f32.mrf.mxu2 }
 0xadf   :  { %3785 = vpow2.f32 %v3435_v29  ;;  %v2832_v7 = vpop.f32.mrf.mxu0  ;;  %v2852_v15 = vpop.f32.mrf.mxu1  ;;  %v2871_v12 = vadd.f32 %v4952_v30, %v2870_v58 }
 0xae0   :  { %3787 = vpow2.f32 %v3436_v5 }
 0xae1   :  { %3789 = vpow2.f32 %v3437_v11  ;;  %v2951_v28 = vrot.slane %v2871_v12, 2  ;;  %v2952_v57 = vrot.slane %v2871_v12, 3 }
 0xae4   :  { %v3784_v61 = vpop.eup %3783 }
 0xae5   :  { %v3786_v63 = vpop.eup %3785  ;;  %v2880_v24 = vadd.f32 1.0, %v3784_v61 }
 0xae6   :  { %v3788_v16 = vpop.eup %3787  ;;  %v2881_v2 = vadd.f32 1.0, %v3786_v63  ;;  %v2872_v60 = vpop.f32.mrf.mxu2 }
 0xae7   :  { %v3790_v36 = vpop.eup %3789  ;;  %3791 = vrcp.f32 %v2880_v24  ;;  %v5040_v48 = vadd.f32 1.0, %v3788_v16  ;;  %v2891_v31 = vand.u32 2147483647, %v2880_v24  ;;  %v2893_v34 = vand.u32 2147483648, %v2880_v24 }
 0xae8   :  { %3793 = vrcp.f32 %v2881_v2  ;;  %v5042_v9 = vadd.f32 1.0, %v3790_v36  ;;  %v2906_v51 = vand.u32 2147483647, %v2881_v2  ;;  %v2908_v46 = vand.u32 2147483648, %v2881_v2 }
 0xae9   :  { %3795 = vrcp.f32 %v5040_v48  ;;  %vm2887_vm12 = vweird.f32 %v2880_v24  ;;  %vm2902_vm6 = vweird.f32 %v2881_v2  ;;  %v2931_v4 = vand.u32 2147483648, %v5040_v48 }
 0xaea   :  { %3797 = vrcp.f32 %v5042_v9  ;;  %v2894_v49 = vor.u32 1.1754944e-38, %v2893_v34  ;;  %vm2892_vm10 = vcmp.eq.f32.partialorder %v2891_v31, 8.507059e+37  ;;  %vm2907_vm14 = vcmp.eq.f32.partialorder %v2906_v51, 8.507059e+37 }
 0xaeb   :  { %v2909_v6 = vor.u32 1.1754944e-38, %v2908_v46  ;;  %vm2925_vm7 = vweird.f32 %v5040_v48  ;;  %v2929_v54 = vand.u32 2147483647, %v5040_v48  ;;  %v2946_v37 = vand.u32 2147483648, %v5042_v9 }
 0xaec   :  { %vm2940_vm3 = vweird.f32 %v5042_v9  ;;  %v2944_v55 = vand.u32 2147483647, %v5042_v9  ;;  %v2932_v11 = vor.u32 1.1754944e-38, %v2931_v4  ;;  %v2968_v60 = vrot.slane %v5022_v56, 7 }
 0xaed   :  { %v3792_v14 = vpop.eup %3791  ;;  %v2947_v7 = vor.u32 1.1754944e-38, %v2946_v37  ;;  %v3475_v37 = vld [vmem:[%s5146_s10] sm:$0xff] }
 0xaee   :  { %v3794_v41 = vpop.eup %3793  ;;  %v2883_v17 = vmul.f32 %v3792_v14, %v2880_v24  ;;  %vm2888_vm0 = vweird.f32 %v3792_v14  ;;  %v2967_v24 = vrot.slane %v5020_v40, 7 }
 0xaef   :  { %v3796_v20 = vpop.eup %3795  ;;  %v2898_v23 = vmul.f32 %v3794_v41, %v2881_v2  ;;  %vm2903_vm11 = vweird.f32 %v3794_v41  ;;  %vm2889_vm4 = vmor %vm2887_vm12, %vm2888_vm0  ;;  %vm2945_vm12 = vcmp.eq.f32.partialorder %v2944_v55, 8.507059e+37 }
 0xaf0   :  { %v3798_v19 = vpop.eup %3797  ;;  %v2921_v21 = vmul.f32 %v3796_v20, %v5040_v48  ;;  %v2884_v26 = vsub.f32 1.0, %v2883_v17  ;;  %vm2904_vm13 = vmor %vm2902_vm6, %vm2903_vm11  ;;  %vm2926_vm15 = vweird.f32 %v3796_v20  ;;  %vm2930_vm11 = vcmp.eq.f32.partialorder %v2929_v54, 8.507059e+37 }
 0xaf1   :  { %v2936_v33 = vmul.f32 %v3798_v19, %v5042_v9  ;;  %v2899_v39 = vsub.f32 1.0, %v2898_v23  ;;  %vm2941_vm2 = vweird.f32 %v3798_v19  ;;  %vm2927_vm9 = vmor %vm2925_vm7, %vm2926_vm15 }
 0xaf2   :  { %v2922_v50 = vsub.f32 1.0, %v2921_v21  ;;  %v2885_v52 = vmul.f32 %v3792_v14, %v2884_v26  ;;  %vm2942_vm0 = vmor %vm2940_vm3, %vm2941_vm2 }
 0xaf3   :  { %v2937_v44 = vsub.f32 1.0, %v2936_v33  ;;  %v2900_v42 = vmul.f32 %v3794_v41, %v2899_v39 }
 0xaf4   :  { %v2923_v8 = vmul.f32 %v3796_v20, %v2922_v50  ;;  %v2886_v13 = vadd.f32 %v3792_v14, %v2885_v52 }
 0xaf5   :  { %v2938_v59 = vmul.f32 %v3798_v19, %v2937_v44  ;;  %v2901_v0 = vadd.f32 %v3794_v41, %v2900_v42 }
 0xaf6   :  { %v2890_v1 = vsel %vm2889_vm4, %v3792_v14, %v2886_v13  ;;  %v2924_v18 = vadd.f32 %v3796_v20, %v2923_v8 }
 0xaf7   :  { %v2895_v22 = vsel %vm2892_vm10, %v2894_v49, %v2890_v1  ;;  %v2905_v53 = vsel %vm2904_vm13, %v3794_v41, %v2901_v0  ;;  %v2939_v27 = vadd.f32 %v3798_v19, %v2938_v59 }
 0xaf8   :  { %v2910_v32 = vsel %vm2907_vm14, %v2909_v6, %v2905_v53  ;;  %v2955_v62 = vmul.f32 %v2951_v28, %v2895_v22  ;;  %v2928_v29 = vsel %vm2927_vm9, %v3796_v20, %v2924_v18 }
 0xaf9   :  { %v2956_v10 = vmul.f32 %v2952_v57, %v2910_v32  ;;  %v2943_v58 = vsel %vm2942_vm0, %v3798_v19, %v2939_v27  ;;  %v2933_v15 = vsel %vm2930_vm11, %v2932_v11, %v2928_v29 }
 0xafa   :  { %v2957_v25 = vadd.f32 %v2955_v62, %v4741_v3  ;;  %v2948_v61 = vsel %vm2945_vm12, %v2947_v7, %v2943_v58  ;;  %v2961_v63 = vsub.f32 1.0, %v2933_v15  ;;  %v2971_v9 = vmul.f32 %v2967_v24, %v2933_v15  ;;  %v3476_v62 = vld [vmem:[%s5146_s10 + $0x8] sm:$0xff]  ;;  %s4078_s10 = smov [#allocation17]  }
 0xafb   :  { %v2958_v5 = vadd.f32 %v2956_v10, %v4744_v45  ;;  %v2962_v2 = vsub.f32 1.0, %v2948_v61  ;;  %v2972_v14 = vmul.f32 %v2968_v60, %v2948_v61  ;;  %3186 = vmatpush.bf16.msrb.mxu2 %v3476_v62  ;;  %s3213_s5 = sshll.u32 %s4078_s10, 4  ;;  %s3214_s5 = int_to_ptr.vmem [resolvable:$true] %s3213_s5 }
 0xafc   :  { %3799 = vtanh.f32 %v2957_v25 }
 0xafd   :  { %3801 = vtanh.f32 %v2958_v5 }
 0xaff   :  { %3187 = vmatpush.bf16.msrb.mxu2 %v3475_v37 }
 0xb02   :  { %v3800_v16 = vpop.eup %3799 }
 0xb03   :  { %v3802_v36 = vpop.eup %3801  ;;  %v2963_v48 = vmul.f32 %v3800_v16, %v2961_v63 }
 0xb04   :  { %v2964_v12 = vmul.f32 %v3802_v36, %v2962_v2 }
 0xb05   :  { %v5059_v41 = vadd.f32 %v2971_v9, %v2963_v48 }
 0xb06   :  { %v5061_v17 = vadd.f32 %v2972_v14, %v2964_v12 }
 0xb07   :  { %2975 = vst.msk [vmem:[#allocation3] sm:$0x40] %vm1465_vm8, %v5059_v41  ;;  %v2977_v20 = vpack.c.bf16 %v5059_v41, %v5059_v41 }
 0xb08   :  { %2976 = vst.msk [vmem:[#allocation3 + $0x8] sm:$0x40] %vm1465_vm8, %v5061_v17  ;;  %v2978_v40 = vpack.c.bf16 %v5061_v17, %v5061_v17 }
 0xb09   :  { %v2981_v56 = vunpack.c.l.b16 %v2977_v20 }
 0xb0a   :  { %v2982_v23 = vunpack.c.l.b16 %v2978_v40 }
 0xb0b   :  { %v2983_v19 = vrot.slane %v2981_v56, 6 }
 0xb0c   :  { %v2984_v21 = vrot.slane %v2982_v23, 5 }
 0xb0e   :  { %v2985_v26 = vsel %vm459_vm5, %v2984_v21, %v2983_v19 }
 0xb0f   :  { %v2986_v31 = vpack.c.b16 %v2985_v26, %v2985_v26 }
 0xb11   :  { %3438 = vmatmul.msk.bf16.vlgmr.msra.gmra.mxu3 %vm269_vm1, %v2986_v31  ;;  %3439 = vmatmul.msk.bf16.vlgmr.msrb.gmra.mxu0 %vm269_vm1, %v2986_v31 }
 0xb12   :  { %3440 = vmatmul.msk.bf16.vlgmr.msrb.gmra.mxu1 %vm269_vm1, %v2986_v31 }
 0xb8e   :  { %v3019_v28 = vpop.f32.mrf.mxu0 }
 0xb8f   :  { %v3024_v33 = vrot.slane %v3019_v28, 1  ;;  %v3025_v34 = vrot.slane %v3019_v28, 2  ;;  %v3039_v39 = vpop.f32.mrf.mxu1 }
 0xb90   :  { %v3040_v25 = vadd.f32 %v4952_v30, %v3039_v39 }
 0xb91   :  { %v3028_v51 = vadd.f32 %v3024_v33, %v4729_v47  ;;  %v3029_v50 = vadd.f32 %v3025_v34, %v4731_v35 }
 0xb92   :  { %v3120_v61 = vrot.slane %v3040_v25, 1  ;;  %v3121_v12 = vrot.slane %v3040_v25, 2 }
 0xb93   :  { %v3443_v52 = vmul.f32 -1.442695, %v3028_v51  ;;  %v3444_v46 = vmul.f32 -1.442695, %v3029_v50 }
 0xb94   :  { %v2999_v44 = vpop.f32.mrf.mxu3 }
 0xb95   :  { %3803 = vpow2.f32 %v3443_v52  ;;  %v3004_v42 = vrot.slane %v2999_v44, 1  ;;  %v3005_v57 = vrot.slane %v2999_v44, 2 }
 0xb96   :  { %3805 = vpow2.f32 %v3444_v46  ;;  %v3021_v8 = vpop.f32.mrf.mxu0 }
 0xb97   :  { %v3008_v13 = vadd.f32 %v3004_v42, %v4723_v38  ;;  %v3009_v4 = vadd.f32 %v3005_v57, %v4726_v43  ;;  %v3041_v59 = vpop.f32.mrf.mxu1 }
 0xb99   :  { %v3441_v49 = vmul.f32 -1.442695, %v3008_v13  ;;  %v3442_v0 = vmul.f32 -1.442695, %v3009_v4 }
 0xb9b   :  { %v3804_v1 = vpop.eup %3803  ;;  %3807 = vpow2.f32 %v3441_v49  ;;  %v3136_v49 = vrot.slane %v5059_v41, 7 }
 0xb9c   :  { %v3806_v47 = vpop.eup %3805  ;;  %v5079_v6 = vadd.f32 1.0, %v3804_v1  ;;  %3809 = vpow2.f32 %v3442_v0  ;;  %v3001_v35 = vpop.f32.mrf.mxu3 }
 0xb9d   :  { %v5081_v18 = vadd.f32 1.0, %v3806_v47 }
 0xb9e   :  { %3811 = vrcp.f32 %v5079_v6  ;;  %v3100_v20 = vand.u32 2147483648, %v5079_v6  ;;  %vm3094_vm9 = vweird.f32 %v5079_v6  ;;  %v3098_v39 = vand.u32 2147483647, %v5079_v6 }
 0xb9f   :  { %3813 = vrcp.f32 %v5081_v18  ;;  %v3115_v51 = vand.u32 2147483648, %v5081_v18  ;;  %vm3109_vm0 = vweird.f32 %v5081_v18  ;;  %v3113_v52 = vand.u32 2147483647, %v5081_v18 }
 0xba0   :  { %v3101_v57 = vor.u32 1.1754944e-38, %v3100_v20  ;;  %vm3099_vm12 = vcmp.eq.f32.partialorder %v3098_v39, 8.507059e+37 }
 0xba1   :  { %v3808_v22 = vpop.eup %3807  ;;  %v3116_v13 = vor.u32 1.1754944e-38, %v3115_v51 }
 0xba2   :  { %v3810_v38 = vpop.eup %3809  ;;  %v3049_v53 = vadd.f32 1.0, %v3808_v22 }
 0xba3   :  { %v3050_v43 = vadd.f32 1.0, %v3810_v38 }
 0xba4   :  { %3815 = vrcp.f32 %v3049_v53  ;;  %v5085_v27 = vpop.eup %3811  ;;  %v3062_v63 = vand.u32 2147483648, %v3049_v53  ;;  %v3060_v2 = vand.u32 2147483647, %v3049_v53  ;;  %vm3056_vm6 = vweird.f32 %v3049_v53 }
 0xba5   :  { %3817 = vrcp.f32 %v3050_v43  ;;  %v5087_v32 = vpop.eup %3813  ;;  %v3090_v54 = vmul.f32 %v5085_v27, %v5079_v6  ;;  %v3077_v60 = vand.u32 2147483648, %v3050_v43  ;;  %v3075_v9 = vand.u32 2147483647, %v3050_v43 }
 0xba6   :  { %v3105_v10 = vmul.f32 %v5087_v32, %v5081_v18  ;;  %v3063_v40 = vor.u32 1.1754944e-38, %v3062_v63  ;;  %vm3071_vm10 = vweird.f32 %v3050_v43  ;;  %vm3095_vm13 = vweird.f32 %v5085_v27 }
 0xba7   :  { %v3091_v11 = vsub.f32 1.0, %v3090_v54  ;;  %vm3061_vm14 = vcmp.eq.f32.partialorder %v3060_v2, 8.507059e+37  ;;  %v3078_v19 = vor.u32 1.1754944e-38, %v3077_v60  ;;  %vm3076_vm2 = vcmp.eq.f32.partialorder %v3075_v9, 8.507059e+37  ;;  %vm3096_vm3 = vmor %vm3094_vm9, %vm3095_vm13 }
 0xba8   :  { %v3106_v7 = vsub.f32 1.0, %v3105_v10  ;;  %vm3110_vm7 = vweird.f32 %v5087_v32  ;;  %vm5173_vm13 = vcmask 130048  }
 0xba9   :  { %v3092_v36 = vmul.f32 %v5085_v27, %v3091_v11  ;;  %vm3111_vm11 = vmor %vm3109_vm0, %vm3110_vm7 }
 0xbaa   :  { %v3816_v55 = vpop.eup %3815  ;;  %v3107_v30 = vmul.f32 %v5087_v32, %v3106_v7 }
 0xbab   :  { %v3818_v29 = vpop.eup %3817  ;;  %v3052_v5 = vmul.f32 %v3816_v55, %v3049_v53  ;;  %vm3057_vm5 = vweird.f32 %v3816_v55  ;;  %v3093_v21 = vadd.f32 %v5085_v27, %v3092_v36 }
 0xbac   :  { %v3067_v58 = vmul.f32 %v3818_v29, %v3050_v43  ;;  %vm3072_vm8 = vweird.f32 %v3818_v29  ;;  %vm3058_vm4 = vmor %vm3056_vm6, %vm3057_vm5  ;;  %v3108_v28 = vadd.f32 %v5087_v32, %v3107_v30  ;;  %vm3114_vm5 = vcmp.eq.f32.partialorder %v3113_v52, 8.507059e+37 }
 0xbad   :  { %v3053_v15 = vsub.f32 1.0, %v3052_v5  ;;  %vm3073_vm15 = vmor %vm3071_vm10, %vm3072_vm8  ;;  %v3097_v44 = vsel %vm3096_vm3, %v5085_v27, %v3093_v21  ;;  %vm5169_vm8 = vcmask 261127   ;;  %vm5172_vm10 = vcmask 253952  }
 0xbae   :  { %v3068_v24 = vsub.f32 1.0, %v3067_v58  ;;  %v3112_v8 = vsel %vm3111_vm11, %v5087_v32, %v3108_v28  ;;  %v3102_v4 = vsel %vm3099_vm12, %v3101_v57, %v3097_v44  ;;  %vm5170_vm6 = vmmov %vm5169_vm8  ;;  %v3502_v32 = vld [vmem:[#allocation15] ss:$0 sm:$0xff] }
 0xbaf   :  { %v3054_v16 = vmul.f32 %v3816_v55, %v3053_v15  ;;  %v3117_v59 = vsel %vm3114_vm5, %v3116_v13, %v3112_v8  ;;  %v3130_v0 = vsub.f32 1.0, %v3102_v4  ;;  %v3140_v35 = vmul.f32 %v3136_v49, %v3102_v4 }
 0xbb0   :  { %v3069_v48 = vmul.f32 %v3818_v29, %v3068_v24  ;;  %v3131_v47 = vsub.f32 1.0, %v3117_v59 }
 0xbb1   :  { %v3055_v14 = vadd.f32 %v3816_v55, %v3054_v16 }
 0xbb2   :  { %v3070_v56 = vadd.f32 %v3818_v29, %v3069_v48 }
 0xbb3   :  { %v3059_v23 = vsel %vm3058_vm4, %v3816_v55, %v3055_v14  ;;  %vm5171_vm4 = vmmov %vm5170_vm6 }
 0xbb4   :  { %v3064_v26 = vsel %vm3061_vm14, %v3063_v40, %v3059_v23  ;;  %v3074_v31 = vsel %vm3073_vm15, %v3818_v29, %v3070_v56 }
 0xbb5   :  { %v3079_v33 = vsel %vm3076_vm2, %v3078_v19, %v3074_v31  ;;  %v3124_v34 = vmul.f32 %v3120_v61, %v3064_v26 }
 0xbb6   :  { %v3125_v50 = vmul.f32 %v3121_v12, %v3079_v33 }
 0xbb7   :  { %v3126_v46 = vadd.f32 %v3124_v34, %v4741_v3  ;;  %v3137_v3 = vrot.slane %v5061_v17, 7 }
 0xbb8   :  { %v3127_v42 = vadd.f32 %v3125_v50, %v4744_v45 }
 0xbb9   :  { %3819 = vtanh.f32 %v3126_v46  ;;  %v3141_v18 = vmul.f32 %v3137_v3, %v3117_v59 }
 0xbba   :  { %3821 = vtanh.f32 %v3127_v42 }
 0xbbf   :  { %v3820_v1 = vpop.eup %3819 }
 0xbc0   :  { %v3822_v6 = vpop.eup %3821  ;;  %v3132_v45 = vmul.f32 %v3820_v1, %v3130_v0 }
 0xbc1   :  { %v3133_v22 = vmul.f32 %v3822_v6, %v3131_v47 }
 0xbc2   :  { %v3142_v38 = vadd.f32 %v3140_v35, %v3132_v45 }
 0xbc3   :  { %v3143_v53 = vadd.f32 %v3141_v18, %v3133_v22 }
 0xbc4   :  { %3144 = vst.msk [vmem:[#allocation3] sm:$0x80] %vm5169_vm8, %v3142_v38 }
 0xbc5   :  { %3145 = vst.msk [vmem:[#allocation3 + $0x8] sm:$0x80] %vm5170_vm6, %v3143_v53  ;;  %v3148_v43 = vrot.slane %v3143_v53, 7 }
 0xbc6   :  { %3152 = vst.msk [vmem:[#allocation17 - $0x5] sm:$0x80] %vm5171_vm4, %v3142_v38 }
 0xbc7   :  { %3153 = vst.msk [vmem:[#allocation17 + $0x3] sm:$0x1] %vm5172_vm10, %v3148_v43 }
 0xbc8   :  { %3221 = dma.vmem_to_hbm [thread:$0]  %s3214_s5, 64, %s3216_s11, [#allocation18], %s4079_s16, %s4079_s16, %s4080_s17  }
 0xbcb   :  { %v3154_v41 = vld [vmem:[#allocation3] sm:$0xff] }
 0xbcc   :  { %v3155_v27 = vld [vmem:[#allocation3 + $0x8] sm:$0xff] }
 0xbcd   :  { %v3156_v17 = vpack.c.bf16 %v3155_v27, %v3154_v41 }
 0xbcf   :  { %3453 = vmatmul.msk.bf16.vlgmr.msrb.gmra.mxu2 %vm269_vm1, %v3156_v17  ;;  %vm5174_vm1 = vmmov %vm5173_vm13 }
 0xc52   :  { %v3189_v62 = vpop.f32.mrf.mxu2 }
 0xc53   :  { %v3190_v54 = vadd.f32 %v3502_v32, %v3189_v62 }
 0xc55   :  { %3194 = vst.msk [vmem:[#allocation16] sm:$0xff] %vm5173_vm13, %v3190_v54 }
 0xc5a   :  { %v3191_v37 = vpop.f32.mrf.mxu2 }
 0xc5b   :  { %v3192_v10 = vadd.f32 %v3502_v32, %v3191_v37 }
 0xc5d   :  { %3195 = vst.msk [vmem:[#allocation16 + $0x8] sm:$0xff] %vm5174_vm1, %v3192_v10 }
 0xc5e   :  { %3208 = dma.vmem_to_hbm [thread:$0]  %s3201_s28, 256, %s3203_s2, [#allocation6], %s4073_s8, %s4073_s8, %s4074_s30  }
 0xc5f   :  { %4061 = dma.done.wait [#allocation6], 256  }
 0xc60   :  { %4062 = vsyncadd [#allocation6], 4294967040 }
 0xc61   :  { %4063 = dma.done.wait [#allocation18], 64  }
 0xc62   :  { %4064 = vsyncadd [#allocation18], 4294967232 }
 0xc63   :  { %3230 = vsyncpa [#allocation5], 1 }
 0xc64   :  { %3231 = vsyncpa [#allocation8], 1 }
 0xc65   :  { %3232 = vsyncpa [#allocation11], 1 }
 0xc66   :  { %3233 = vsyncpa [#allocation14], 1 }
 0xc67   :  { %3234 = vsyncpa [#allocation6], 1 }
 0xc68   :  { %3235 = vsyncpa [#allocation18], 1 }

</bundles_post_ra>
